<compile_context>
chip_gen: v7x
topology: tpu7x:2x2x1
jax: 0.10.0
libtpu: 0.0.40
codegen_flags: <defaults>
</compile_context>

<pallas_src>
import jax
import jax.numpy as jnp
from jax import lax
from jax.experimental import pallas as pl
from jax.experimental.pallas import tpu as pltpu

_EPS = 1e-5
_VMEM_LIMIT = 32 * 1024 * 1024  # safe on v5e/v6e/v7x; blocks here are small


def _round_up(x, m):
    return (x + m - 1) // m * m


# ----------------------------------------------------------------------------
# Kernel A: fused direct conv (static tap loop, one MXU dot per tap, f32 acc)
#           + per-image BN moment partials.   Grid = (N,), one image per step.
# ----------------------------------------------------------------------------
def _make_conv_stats_kernel(kh, kw, ho, wo, cin_p, cout_p):
    kt = kh * kw

    def kernel(x_ref, w_ref, y_ref, s_ref):
        # x_ref: (1, Hp, Wp, cin_p) bf16  spatially pre-padded, pre-activated
        # w_ref: (kt, cin_p, cout_p) f32  per-tap weight matrices (resident)
        # y_ref: (1, ho*wo, cout_p) bf16  raw (pre-BN) conv output
        # s_ref: (1, 8, cout_p) f32       rows 0/1 = per-image sum / sum-of-sq
        acc = jnp.zeros((ho * wo, cout_p), jnp.float32)
        for t in range(kt):
            di, dj = divmod(t, kw)
            patch = x_ref[0, di:di + ho, dj:dj + wo, :].astype(jnp.float32)
            acc = acc + jnp.dot(patch.reshape(ho * wo, cin_p), w_ref[t],
                                preferred_element_type=jnp.float32)
        y_ref[0] = acc.astype(y_ref.dtype)
        ssum = jnp.sum(acc, axis=0, keepdims=True)
        ssq = jnp.sum(acc * acc, axis=0, keepdims=True)
        s_ref[0] = jnp.concatenate(
            [ssum, ssq, jnp.zeros((6, cout_p), jnp.float32)], axis=0)

    return kernel


# ----------------------------------------------------------------------------
# Kernel B: in-place  out = ReLU(y * scale + shift)  (per-channel scale/shift)
# ----------------------------------------------------------------------------
def _bn_relu_kernel(y_ref, scale_ref, shift_ref, o_ref):
    y = y_ref[...].astype(jnp.float32)
    o_ref[...] = jnp.maximum(y * scale_ref[...] + shift_ref[...],
                             0.0).astype(o_ref.dtype)


# ----------------------------------------------------------------------------
# One "Conv + BatchNorm(batch stats) + ReLU" stage.
# ----------------------------------------------------------------------------
def _conv_bn_relu(x_p, w_taps, gamma, beta, kh, kw):
    """x_p:    (N, Hp, Wp, cin_p) bf16, spatially zero-padded activated input
       w_taps: (kh*kw, cin_p, cout_p) f32 per-tap weight matrices
       returns (N, Ho, Wo, cout_p) bf16; padded channels are exactly zero."""
    x_p = x_p.astype(jnp.bfloat16)
    w_taps = w_taps.astype(jnp.float32)
    n, hp, wp, cin_p = x_p.shape
    kt, _, cout_p = w_taps.shape
    ho, wo = hp - kh + 1, wp - kw + 1
    cout = gamma.shape[0]
    m = n * ho * wo

    conv_kernel = _make_conv_stats_kernel(kh, kw, ho, wo, cin_p, cout_p)
    flops_a = 2 * m * kt * cin_p * cout_p
    bytes_a = (n * hp * wp * cin_p * 2 + kt * cin_p * cout_p * 4
               + m * cout_p * 2 + n * 8 * cout_p * 4)
    y, stats = pl.pallas_call(
        conv_kernel,
        out_shape=(jax.ShapeDtypeStruct((n, ho * wo, cout_p), jnp.bfloat16),
                   jax.ShapeDtypeStruct((n, 8, cout_p), jnp.float32)),
        grid=(n,),
        in_specs=[
            pl.BlockSpec((1, hp, wp, cin_p), lambda i: (i, 0, 0, 0)),
            # TODO(synk): pl.Buffered(1) for this resident block on v7x.
            pl.BlockSpec((kt, cin_p, cout_p), lambda i: (0, 0, 0)),
        ],
        out_specs=(
            pl.BlockSpec((1, ho * wo, cout_p), lambda i: (i, 0, 0)),
            pl.BlockSpec((1, 8, cout_p), lambda i: (i, 0, 0)),
        ),
        compiler_params=pltpu.CompilerParams(
            dimension_semantics=("parallel",),
            vmem_limit_bytes=_VMEM_LIMIT),
        cost_estimate=pl.CostEstimate(flops=flops_a, transcendentals=0,
                                      bytes_accessed=bytes_a),
    )(x_p, w_taps)

    # Finalize BN statistics in f32 (PyTorch training mode: biased variance).
    s1 = jnp.sum(stats[:, 0, :], axis=0)
    s2 = jnp.sum(stats[:, 1, :], axis=0)
    mean = s1 / m
    var = jnp.maximum(s2 / m - mean * mean, 0.0)
    rstd = lax.rsqrt(var + _EPS)
    g = jnp.pad(gamma.astype(jnp.float32), (0, cout_p - cout))
    b = jnp.pad(beta.astype(jnp.float32), (0, cout_p - cout))
    scale = (g * rstd).reshape(1, cout_p)
    shift = (b - mean * g * rstd).reshape(1, cout_p)

    bytes_b = 2 * m * cout_p * 2 + 2 * cout_p * 4
    out = pl.pallas_call(
        _bn_relu_kernel,
        out_shape=jax.ShapeDtypeStruct((n, ho * wo, cout_p), jnp.bfloat16),
        grid=(n,),
        in_specs=[
            pl.BlockSpec((1, ho * wo, cout_p), lambda i: (i, 0, 0)),
            pl.BlockSpec((1, cout_p), lambda i: (0, 0)),
            pl.BlockSpec((1, cout_p), lambda i: (0, 0)),
        ],
        out_specs=pl.BlockSpec((1, ho * wo, cout_p), lambda i: (i, 0, 0)),
        input_output_aliases={0: 0},  # BN+ReLU runs in place on y
        compiler_params=pltpu.CompilerParams(
            dimension_semantics=("parallel",),
            vmem_limit_bytes=_VMEM_LIMIT),
        cost_estimate=pl.CostEstimate(flops=3 * m * cout_p, transcendentals=0,
                                      bytes_accessed=bytes_b),
    )(y, scale, shift)
    return out.reshape(n, ho, wo, cout_p)


# ----------------------------------------------------------------------------
# Weight-tap builders and space-to-depth (thin XLA glue, 1x data)
# ----------------------------------------------------------------------------
def _taps_kxk(w, cin_p, cout_p):
    """[Cout, Cin, kh, kw] -> [kh*kw, cin_p, cout_p] per-tap matrices."""
    cout, cin, kh, kw = w.shape
    wt = jnp.transpose(w, (2, 3, 1, 0)).reshape(kh * kw, cin, cout)
    return jnp.pad(wt, ((0, 0), (0, cin_p - cin), (0, cout_p - cout)))


def _taps_4x4_stride2(w, cin_p, cout_p):
    """[Cout, Cin, 4, 4] stride-2 conv -> taps of the equivalent 2x2 stride-1
    conv over the space-to-depth input (channel layout (u, v, c), c padded)."""
    cout, cin = w.shape[0], w.shape[1]
    wt = jnp.transpose(w, (2, 3, 1, 0))          # [di, dj, cin, cout]
    wt = wt.reshape(2, 2, 2, 2, cin, cout)       # [a, u, b, v, cin, cout]
    wt = jnp.transpose(wt, (0, 2, 1, 3, 4, 5))   # [a, b, u, v, cin, cout]
    wt = jnp.pad(wt, ((0, 0), (0, 0), (0, 0), (0, 0),
                      (0, cin_p - cin), (0, cout_p - cout)))
    return wt.reshape(4, 4 * cin_p, cout_p)


def _space_to_depth2(x):
    n, h, w, c = x.shape
    x = x.reshape(n, h // 2, 2, w // 2, 2, c)
    x = jnp.transpose(x, (0, 1, 3, 2, 4, 5))
    return x.reshape(n, h // 2, w // 2, 4 * c)


def _pad_hw1(x):
    return jnp.pad(x, ((0, 0), (1, 1), (1, 1), (0, 0)))


# ----------------------------------------------------------------------------
# Parameter init (matches the PyTorch module's init scheme) and forward
# ----------------------------------------------------------------------------
def _xavier_uniform(key, shape):
    cout, cin, kh, kw = shape
    fan_in, fan_out = cin * kh * kw, cout * kh * kw
    bound = (6.0 / (fan_in + fan_out)) ** 0.5
    return jax.random.uniform(key, shape, jnp.float32, -bound, bound)


def init_unet_down_params(key, in_size, out_size):
    ks = jax.random.split(key, 6)

    def conv_params(kw_key, kb_key, cin, cout, k):
        w = _xavier_uniform(kw_key, (cout, cin, k, k))
        bb = 1.0 / ((cin * k * k) ** 0.5)
        b = jax.random.uniform(kb_key, (cout,), jnp.float32, -bb, bb)
        return w, b

    p = {}
    p["w1"], p["b1"] = conv_params(ks[0], ks[1], in_size, out_size, 3)
    p["w2"], p["b2"] = conv_params(ks[2], ks[3], out_size, out_size, 3)
    p["w3"], p["b3"] = conv_params(ks[4], ks[5], out_size, out_size, 4)
    ones = jnp.ones((out_size,), jnp.float32)
    zeros = jnp.zeros((out_size,), jnp.float32)
    for i in (1, 2, 3):
        p[f"gamma{i}"] = ones
        p[f"beta{i}"] = zeros
    return p


@jax.jit
def unet_down_forward(params, x_nchw):
    # NCHW -> NHWC internally.  Conv biases params["b*"] are NOT applied:
    # training-mode BatchNorm subtracts the batch mean, so they cancel exactly.
    n_b, c_in, hgt, wid = x_nchw.shape
    assert hgt % 2 == 0 and wid % 2 == 0, "even spatial dims required"
    out_size = params["gamma1"].shape[0]
    cin_p = _round_up(c_in, 8)
    c_p = _round_up(out_size, 8)

    x = jnp.transpose(x_nchw, (0, 2, 3, 1)).astype(jnp.float32)
    x = jnp.pad(x, ((0, 0), (0, 0), (0, 0), (0, cin_p - c_in)))
    x = x.astype(jnp.bfloat16)

    # block: Conv3x3(pad1)+BN+ReLU, Conv3x3(pad1)+BN+ReLU  -> skip
    h1 = _conv_bn_relu(_pad_hw1(x), _taps_kxk(params["w1"], cin_p, c_p),
                       params["gamma1"], params["beta1"], 3, 3)
    skip_p = _conv_bn_relu(_pad_hw1(h1), _taps_kxk(params["w2"], c_p, c_p),
                           params["gamma2"], params["beta2"], 3, 3)

    # down: Conv4x4(stride2, pad1)+BN+ReLU, as a 2x2 conv on the s2d input
    s2d = _space_to_depth2(_pad_hw1(skip_p))
    down_p = _conv_bn_relu(s2d, _taps_4x4_stride2(params["w3"], c_p, c_p),
                           params["gamma3"], params["beta3"], 2, 2)

    down = jnp.transpose(down_p[..., :out_size], (0, 3, 1, 2)).astype(jnp.float32)
    skip = jnp.transpose(skip_p[..., :out_size], (0, 3, 1, 2)).astype(jnp.float32)
    return down, skip


# ----------------------------------------------------------------------------
# Pure-XLA f32 reference (for the numerical check only)
# ----------------------------------------------------------------------------
def _reference_forward(params, x):
    def conv(x, w, b, stride, pad):
        y = lax.conv_general_dilated(
            x, w, (stride, stride), ((pad, pad), (pad, pad)),
            dimension_numbers=("NCHW", "OIHW", "NCHW"),
            precision=lax.Precision.HIGHEST)
        return y + b.reshape(1, -1, 1, 1)

    def bn_relu(y, gamma, beta):
        mean = jnp.mean(y, axis=(0, 2, 3), keepdims=True)
        var = jnp.mean(jnp.square(y - mean), axis=(0, 2, 3), keepdims=True)
        yn = (y - mean) * lax.rsqrt(var + _EPS)
        return jnp.maximum(yn * gamma.reshape(1, -1, 1, 1)
                           + beta.reshape(1, -1, 1, 1), 0.0)

    h = bn_relu(conv(x, params["w1"], params["b1"], 1, 1),
                params["gamma1"], params["beta1"])
    skip = bn_relu(conv(h, params["w2"], params["b2"], 1, 1),
                   params["gamma2"], params["beta2"])
    down = bn_relu(conv(skip, params["w3"], params["b3"], 2, 1),
                   params["gamma3"], params["beta3"])
    return down, skip


if __name__ == "__main__":
    key = jax.random.PRNGKey(0)
    k_param, k_x = jax.random.split(key)

    in_size, out_size = 4, 8
    N, H, W = 2, 16, 16

    params = init_unet_down_params(k_param, in_size, out_size)
    x = jax.random.normal(k_x, (N, in_size, H, W), jnp.float32)

    down, skip = unet_down_forward(params, x)
    jax.block_until_ready((down, skip))

    assert skip.shape == (N, out_size, H, W), skip.shape
    assert down.shape == (N, out_size, H // 2, W // 2), down.shape
    assert bool(jnp.all(jnp.isfinite(down))) and bool(jnp.all(jnp.isfinite(skip)))

    # Numerical check vs a pure-XLA f32 reference (bf16 activation storage ->
    # loose absolute tolerance; values are O(1) after BatchNorm).
    down_ref, skip_ref = _reference_forward(params, x)
    err = max(float(jnp.max(jnp.abs(down - down_ref))),
              float(jnp.max(jnp.abs(skip - skip_ref))))
    assert err < 0.3, f"max abs err vs f32 reference: {err}"

    print("KERNEL_OK")
</pallas_src>

<mosaic_0001>
module attributes {stable_mosaic.version = 11 : i64} {
  func.func @kernel(%arg0: i32, %arg1: memref<1x18x18x8xbf16, #tpu.memory_space<vmem>>, %arg2: memref<9x8x8xf32, #tpu.memory_space<vmem>>, %arg3: memref<1x256x8xbf16, #tpu.memory_space<vmem>>, %arg4: memref<1x8x8xf32, #tpu.memory_space<vmem>>) attributes {dimension_semantics = [#tpu.dimension_semantics<parallel>], iteration_bounds = array<i64: 2>, scalar_prefetch = 0 : i64, scratch_operands = 0 : i64, tpu.core_type = #tpu.core_type<tc>, window_params = [{transform_indices = @transform_0, window_bounds = array<i64: 1, 18, 18, 8>}, {pipeline_mode = #tpu.pipeline_mode<synchronous>, transform_indices = @transform_1, window_bounds = array<i64: 9, 8, 8>}, {transform_indices = @transform_2, window_bounds = array<i64: 1, 256, 8>}, {transform_indices = @transform_3, window_bounds = array<i64: 1, 8, 8>}]} {
    %cst = arith.constant 0.000000e+00 : f32
    %0 = vector.broadcast %cst : f32 to vector<256x8xf32>
    %c0 = arith.constant 0 : index
    %c0_0 = arith.constant 0 : index
    %c0_1 = arith.constant 0 : index
    %c0_2 = arith.constant 0 : index
    %1 = vector.load %arg1[%c0, %c0_0, %c0_1, %c0_2] : memref<1x18x18x8xbf16, #tpu.memory_space<vmem>>, vector<1x16x16x8xbf16>
    %2 = vector.shape_cast %1 : vector<1x16x16x8xbf16> to vector<16x16x8xbf16>
    %3 = arith.extf %2 : vector<16x16x8xbf16> to vector<16x16x8xf32>
    %4 = vector.shape_cast %3 : vector<16x16x8xf32> to vector<256x8xf32>
    %c0_3 = arith.constant 0 : index
    %c0_4 = arith.constant 0 : index
    %c0_5 = arith.constant 0 : index
    %5 = vector.load %arg2[%c0_3, %c0_4, %c0_5] : memref<9x8x8xf32, #tpu.memory_space<vmem>>, vector<1x8x8xf32>
    %6 = vector.shape_cast %5 : vector<1x8x8xf32> to vector<8x8xf32>
    %cst_6 = arith.constant dense<0.000000e+00> : vector<256x8xf32>
    %7 = tpu.matmul %4, %6, %cst_6 {dimension_numbers = #tpu.dot_dimension_numbers<[1], [0], [0], [1], [0, 0, 1, 1], [], []>} : vector<256x8xf32>, vector<8x8xf32>, vector<256x8xf32> -> vector<256x8xf32>
    %8 = arith.addf %0, %7 : vector<256x8xf32>
    %c0_7 = arith.constant 0 : index
    %c0_8 = arith.constant 0 : index
    %c1 = arith.constant 1 : index
    %c0_9 = arith.constant 0 : index
    %9 = vector.load %arg1[%c0_7, %c0_8, %c1, %c0_9] : memref<1x18x18x8xbf16, #tpu.memory_space<vmem>>, vector<1x16x16x8xbf16>
    %10 = vector.shape_cast %9 : vector<1x16x16x8xbf16> to vector<16x16x8xbf16>
    %11 = arith.extf %10 : vector<16x16x8xbf16> to vector<16x16x8xf32>
    %12 = vector.shape_cast %11 : vector<16x16x8xf32> to vector<256x8xf32>
    %c1_10 = arith.constant 1 : index
    %c0_11 = arith.constant 0 : index
    %c0_12 = arith.constant 0 : index
    %13 = vector.load %arg2[%c1_10, %c0_11, %c0_12] : memref<9x8x8xf32, #tpu.memory_space<vmem>>, vector<1x8x8xf32>
    %14 = vector.shape_cast %13 : vector<1x8x8xf32> to vector<8x8xf32>
    %cst_13 = arith.constant dense<0.000000e+00> : vector<256x8xf32>
    %15 = tpu.matmul %12, %14, %cst_13 {dimension_numbers = #tpu.dot_dimension_numbers<[1], [0], [0], [1], [0, 0, 1, 1], [], []>} : vector<256x8xf32>, vector<8x8xf32>, vector<256x8xf32> -> vector<256x8xf32>
    %16 = arith.addf %8, %15 : vector<256x8xf32>
    %c0_14 = arith.constant 0 : index
    %c0_15 = arith.constant 0 : index
    %c2 = arith.constant 2 : index
    %c0_16 = arith.constant 0 : index
    %17 = vector.load %arg1[%c0_14, %c0_15, %c2, %c0_16] : memref<1x18x18x8xbf16, #tpu.memory_space<vmem>>, vector<1x16x16x8xbf16>
    %18 = vector.shape_cast %17 : vector<1x16x16x8xbf16> to vector<16x16x8xbf16>
    %19 = arith.extf %18 : vector<16x16x8xbf16> to vector<16x16x8xf32>
    %20 = vector.shape_cast %19 : vector<16x16x8xf32> to vector<256x8xf32>
    %c2_17 = arith.constant 2 : index
    %c0_18 = arith.constant 0 : index
    %c0_19 = arith.constant 0 : index
    %21 = vector.load %arg2[%c2_17, %c0_18, %c0_19] : memref<9x8x8xf32, #tpu.memory_space<vmem>>, vector<1x8x8xf32>
    %22 = vector.shape_cast %21 : vector<1x8x8xf32> to vector<8x8xf32>
    %cst_20 = arith.constant dense<0.000000e+00> : vector<256x8xf32>
    %23 = tpu.matmul %20, %22, %cst_20 {dimension_numbers = #tpu.dot_dimension_numbers<[1], [0], [0], [1], [0, 0, 1, 1], [], []>} : vector<256x8xf32>, vector<8x8xf32>, vector<256x8xf32> -> vector<256x8xf32>
    %24 = arith.addf %16, %23 : vector<256x8xf32>
    %c0_21 = arith.constant 0 : index
    %c1_22 = arith.constant 1 : index
    %c0_23 = arith.constant 0 : index
    %c0_24 = arith.constant 0 : index
    %25 = vector.load %arg1[%c0_21, %c1_22, %c0_23, %c0_24] : memref<1x18x18x8xbf16, #tpu.memory_space<vmem>>, vector<1x16x16x8xbf16>
    %26 = vector.shape_cast %25 : vector<1x16x16x8xbf16> to vector<16x16x8xbf16>
    %27 = arith.extf %26 : vector<16x16x8xbf16> to vector<16x16x8xf32>
    %28 = vector.shape_cast %27 : vector<16x16x8xf32> to vector<256x8xf32>
    %c3 = arith.constant 3 : index
    %c0_25 = arith.constant 0 : index
    %c0_26 = arith.constant 0 : index
    %29 = vector.load %arg2[%c3, %c0_25, %c0_26] : memref<9x8x8xf32, #tpu.memory_space<vmem>>, vector<1x8x8xf32>
    %30 = vector.shape_cast %29 : vector<1x8x8xf32> to vector<8x8xf32>
    %cst_27 = arith.constant dense<0.000000e+00> : vector<256x8xf32>
    %31 = tpu.matmul %28, %30, %cst_27 {dimension_numbers = #tpu.dot_dimension_numbers<[1], [0], [0], [1], [0, 0, 1, 1], [], []>} : vector<256x8xf32>, vector<8x8xf32>, vector<256x8xf32> -> vector<256x8xf32>
    %32 = arith.addf %24, %31 : vector<256x8xf32>
    %c0_28 = arith.constant 0 : index
    %c1_29 = arith.constant 1 : index
    %c1_30 = arith.constant 1 : index
    %c0_31 = arith.constant 0 : index
    %33 = vector.load %arg1[%c0_28, %c1_29, %c1_30, %c0_31] : memref<1x18x18x8xbf16, #tpu.memory_space<vmem>>, vector<1x16x16x8xbf16>
    %34 = vector.shape_cast %33 : vector<1x16x16x8xbf16> to vector<16x16x8xbf16>
    %35 = arith.extf %34 : vector<16x16x8xbf16> to vector<16x16x8xf32>
    %36 = vector.shape_cast %35 : vector<16x16x8xf32> to vector<256x8xf32>
    %c4 = arith.constant 4 : index
    %c0_32 = arith.constant 0 : index
    %c0_33 = arith.constant 0 : index
    %37 = vector.load %arg2[%c4, %c0_32, %c0_33] : memref<9x8x8xf32, #tpu.memory_space<vmem>>, vector<1x8x8xf32>
    %38 = vector.shape_cast %37 : vector<1x8x8xf32> to vector<8x8xf32>
    %cst_34 = arith.constant dense<0.000000e+00> : vector<256x8xf32>
    %39 = tpu.matmul %36, %38, %cst_34 {dimension_numbers = #tpu.dot_dimension_numbers<[1], [0], [0], [1], [0, 0, 1, 1], [], []>} : vector<256x8xf32>, vector<8x8xf32>, vector<256x8xf32> -> vector<256x8xf32>
    %40 = arith.addf %32, %39 : vector<256x8xf32>
    %c0_35 = arith.constant 0 : index
    %c1_36 = arith.constant 1 : index
    %c2_37 = arith.constant 2 : index
    %c0_38 = arith.constant 0 : index
    %41 = vector.load %arg1[%c0_35, %c1_36, %c2_37, %c0_38] : memref<1x18x18x8xbf16, #tpu.memory_space<vmem>>, vector<1x16x16x8xbf16>
    %42 = vector.shape_cast %41 : vector<1x16x16x8xbf16> to vector<16x16x8xbf16>
    %43 = arith.extf %42 : vector<16x16x8xbf16> to vector<16x16x8xf32>
    %44 = vector.shape_cast %43 : vector<16x16x8xf32> to vector<256x8xf32>
    %c5 = arith.constant 5 : index
    %c0_39 = arith.constant 0 : index
    %c0_40 = arith.constant 0 : index
    %45 = vector.load %arg2[%c5, %c0_39, %c0_40] : memref<9x8x8xf32, #tpu.memory_space<vmem>>, vector<1x8x8xf32>
    %46 = vector.shape_cast %45 : vector<1x8x8xf32> to vector<8x8xf32>
    %cst_41 = arith.constant dense<0.000000e+00> : vector<256x8xf32>
    %47 = tpu.matmul %44, %46, %cst_41 {dimension_numbers = #tpu.dot_dimension_numbers<[1], [0], [0], [1], [0, 0, 1, 1], [], []>} : vector<256x8xf32>, vector<8x8xf32>, vector<256x8xf32> -> vector<256x8xf32>
    %48 = arith.addf %40, %47 : vector<256x8xf32>
    %c0_42 = arith.constant 0 : index
    %c2_43 = arith.constant 2 : index
    %c0_44 = arith.constant 0 : index
    %c0_45 = arith.constant 0 : index
    %49 = vector.load %arg1[%c0_42, %c2_43, %c0_44, %c0_45] : memref<1x18x18x8xbf16, #tpu.memory_space<vmem>>, vector<1x16x16x8xbf16>
    %50 = vector.shape_cast %49 : vector<1x16x16x8xbf16> to vector<16x16x8xbf16>
    %51 = arith.extf %50 : vector<16x16x8xbf16> to vector<16x16x8xf32>
    %52 = vector.shape_cast %51 : vector<16x16x8xf32> to vector<256x8xf32>
    %c6 = arith.constant 6 : index
    %c0_46 = arith.constant 0 : index
    %c0_47 = arith.constant 0 : index
    %53 = vector.load %arg2[%c6, %c0_46, %c0_47] : memref<9x8x8xf32, #tpu.memory_space<vmem>>, vector<1x8x8xf32>
    %54 = vector.shape_cast %53 : vector<1x8x8xf32> to vector<8x8xf32>
    %cst_48 = arith.constant dense<0.000000e+00> : vector<256x8xf32>
    %55 = tpu.matmul %52, %54, %cst_48 {dimension_numbers = #tpu.dot_dimension_numbers<[1], [0], [0], [1], [0, 0, 1, 1], [], []>} : vector<256x8xf32>, vector<8x8xf32>, vector<256x8xf32> -> vector<256x8xf32>
    %56 = arith.addf %48, %55 : vector<256x8xf32>
    %c0_49 = arith.constant 0 : index
    %c2_50 = arith.constant 2 : index
    %c1_51 = arith.constant 1 : index
    %c0_52 = arith.constant 0 : index
    %57 = vector.load %arg1[%c0_49, %c2_50, %c1_51, %c0_52] : memref<1x18x18x8xbf16, #tpu.memory_space<vmem>>, vector<1x16x16x8xbf16>
    %58 = vector.shape_cast %57 : vector<1x16x16x8xbf16> to vector<16x16x8xbf16>
    %59 = arith.extf %58 : vector<16x16x8xbf16> to vector<16x16x8xf32>
    %60 = vector.shape_cast %59 : vector<16x16x8xf32> to vector<256x8xf32>
    %c7 = arith.constant 7 : index
    %c0_53 = arith.constant 0 : index
    %c0_54 = arith.constant 0 : index
    %61 = vector.load %arg2[%c7, %c0_53, %c0_54] : memref<9x8x8xf32, #tpu.memory_space<vmem>>, vector<1x8x8xf32>
    %62 = vector.shape_cast %61 : vector<1x8x8xf32> to vector<8x8xf32>
    %cst_55 = arith.constant dense<0.000000e+00> : vector<256x8xf32>
    %63 = tpu.matmul %60, %62, %cst_55 {dimension_numbers = #tpu.dot_dimension_numbers<[1], [0], [0], [1], [0, 0, 1, 1], [], []>} : vector<256x8xf32>, vector<8x8xf32>, vector<256x8xf32> -> vector<256x8xf32>
    %64 = arith.addf %56, %63 : vector<256x8xf32>
    %c0_56 = arith.constant 0 : index
    %c2_57 = arith.constant 2 : index
    %c2_58 = arith.constant 2 : index
    %c0_59 = arith.constant 0 : index
    %65 = vector.load %arg1[%c0_56, %c2_57, %c2_58, %c0_59] : memref<1x18x18x8xbf16, #tpu.memory_space<vmem>>, vector<1x16x16x8xbf16>
    %66 = vector.shape_cast %65 : vector<1x16x16x8xbf16> to vector<16x16x8xbf16>
    %67 = arith.extf %66 : vector<16x16x8xbf16> to vector<16x16x8xf32>
    %68 = vector.shape_cast %67 : vector<16x16x8xf32> to vector<256x8xf32>
    %c8 = arith.constant 8 : index
    %c0_60 = arith.constant 0 : index
    %c0_61 = arith.constant 0 : index
    %69 = vector.load %arg2[%c8, %c0_60, %c0_61] : memref<9x8x8xf32, #tpu.memory_space<vmem>>, vector<1x8x8xf32>
    %70 = vector.shape_cast %69 : vector<1x8x8xf32> to vector<8x8xf32>
    %cst_62 = arith.constant dense<0.000000e+00> : vector<256x8xf32>
    %71 = tpu.matmul %68, %70, %cst_62 {dimension_numbers = #tpu.dot_dimension_numbers<[1], [0], [0], [1], [0, 0, 1, 1], [], []>} : vector<256x8xf32>, vector<8x8xf32>, vector<256x8xf32> -> vector<256x8xf32>
    %72 = arith.addf %64, %71 : vector<256x8xf32>
    %73 = arith.truncf %72 : vector<256x8xf32> to vector<256x8xbf16>
    %c0_63 = arith.constant 0 : index
    %c0_64 = arith.constant 0 : index
    %c0_65 = arith.constant 0 : index
    %74 = vector.load %arg3[%c0_63, %c0_64, %c0_65] : memref<1x256x8xbf16, #tpu.memory_space<vmem>>, vector<1x256x8xbf16>
    %75 = vector.shape_cast %74 : vector<1x256x8xbf16> to vector<256x8xbf16>
    %76 = vector.shape_cast %73 : vector<256x8xbf16> to vector<1x256x8xbf16>
    tpu.vector_store %arg3[%c0_63, %c0_64, %c0_65], %76 {strides = array<i32>} : memref<1x256x8xbf16, #tpu.memory_space<vmem>>, vector<1x256x8xbf16>,
    %cst_66 = arith.constant dense<0.000000e+00> : vector<8xf32>
    %77 = vector.multi_reduction <add>, %72, %cst_66 [0] : vector<256x8xf32> to vector<8xf32>
    %78 = vector.shape_cast %77 : vector<8xf32> to vector<1x8xf32>
    %79 = arith.mulf %72, %72 : vector<256x8xf32>
    %cst_67 = arith.constant dense<0.000000e+00> : vector<8xf32>
    %80 = vector.multi_reduction <add>, %79, %cst_67 [0] : vector<256x8xf32> to vector<8xf32>
    %81 = vector.shape_cast %80 : vector<8xf32> to vector<1x8xf32>
    %cst_68 = arith.constant 0.000000e+00 : f32
    %82 = vector.broadcast %cst_68 : f32 to vector<6x8xf32>
    %83 = tpu.concatenate %78, %81, %82 in 0 : vector<1x8xf32>, vector<1x8xf32>, vector<6x8xf32> -> vector<8x8xf32>
    %c0_69 = arith.constant 0 : index
    %c0_70 = arith.constant 0 : index
    %c0_71 = arith.constant 0 : index
    %84 = vector.load %arg4[%c0_69, %c0_70, %c0_71] : memref<1x8x8xf32, #tpu.memory_space<vmem>>, vector<1x8x8xf32>
    %85 = vector.shape_cast %84 : vector<1x8x8xf32> to vector<8x8xf32>
    %86 = vector.shape_cast %83 : vector<8x8xf32> to vector<1x8x8xf32>
    tpu.vector_store %arg4[%c0_69, %c0_70, %c0_71], %86 {strides = array<i32>} : memref<1x8x8xf32, #tpu.memory_space<vmem>>, vector<1x8x8xf32>,
    return
  }
  func.func @transform_0(%arg0: i32) -> (i32, i32, i32, i32) {
    %c0_i32 = arith.constant 0 : i32
    %c0_i32_0 = arith.constant 0 : i32
    %c0_i32_1 = arith.constant 0 : i32
    %c0_i32_2 = arith.constant 0 : i32
    return %arg0, %c0_i32, %c0_i32_0, %c0_i32_1 : i32, i32, i32, i32
  }
  func.func @transform_1(%arg0: i32) -> (i32, i32, i32) {
    %c0_i32 = arith.constant 0 : i32
    %c0_i32_0 = arith.constant 0 : i32
    %c0_i32_1 = arith.constant 0 : i32
    %c0_i32_2 = arith.constant 0 : i32
    return %c0_i32, %c0_i32_0, %c0_i32_1 : i32, i32, i32
  }
  func.func @transform_2(%arg0: i32) -> (i32, i32, i32) {
    %c0_i32 = arith.constant 0 : i32
    %c0_i32_0 = arith.constant 0 : i32
    %c0_i32_1 = arith.constant 0 : i32
    return %arg0, %c0_i32, %c0_i32_0 : i32, i32, i32
  }
  func.func @transform_3(%arg0: i32) -> (i32, i32, i32) {
    %c0_i32 = arith.constant 0 : i32
    %c0_i32_0 = arith.constant 0 : i32
    %c0_i32_1 = arith.constant 0 : i32
    return %arg0, %c0_i32, %c0_i32_0 : i32, i32, i32
  }
}

module attributes {stable_mosaic.version = 11 : i64} {
  func.func @_bn_relu_kernel(%arg0: i32, %arg1: memref<1x256x8xbf16, #tpu.memory_space<vmem>>, %arg2: memref<1x8xf32, #tpu.memory_space<vmem>>, %arg3: memref<1x8xf32, #tpu.memory_space<vmem>>, %arg4: memref<1x256x8xbf16, #tpu.memory_space<vmem>>) attributes {dimension_semantics = [#tpu.dimension_semantics<parallel>], iteration_bounds = array<i64: 2>, scalar_prefetch = 0 : i64, scratch_operands = 0 : i64, tpu.core_type = #tpu.core_type<tc>, window_params = [{transform_indices = @transform_0, window_bounds = array<i64: 1, 256, 8>}, {pipeline_mode = #tpu.pipeline_mode<synchronous>, transform_indices = @transform_1, window_bounds = array<i64: 1, 8>}, {pipeline_mode = #tpu.pipeline_mode<synchronous>, transform_indices = @transform_2, window_bounds = array<i64: 1, 8>}, {transform_indices = @transform_3, window_bounds = array<i64: 1, 256, 8>}]} {
    %c0 = arith.constant 0 : index
    %c0_0 = arith.constant 0 : index
    %c0_1 = arith.constant 0 : index
    %0 = vector.load %arg1[%c0, %c0_0, %c0_1] : memref<1x256x8xbf16, #tpu.memory_space<vmem>>, vector<1x256x8xbf16>
    %1 = arith.extf %0 : vector<1x256x8xbf16> to vector<1x256x8xf32>
    %c0_2 = arith.constant 0 : index
    %c0_3 = arith.constant 0 : index
    %2 = vector.load %arg2[%c0_2, %c0_3] : memref<1x8xf32, #tpu.memory_space<vmem>>, vector<1x8xf32>
    %3 = vector.shape_cast %2 : vector<1x8xf32> to vector<1x1x8xf32>
    %4 = vector.broadcast %3 : vector<1x1x8xf32> to vector<1x256x8xf32>
    %5 = arith.mulf %1, %4 : vector<1x256x8xf32>
    %c0_4 = arith.constant 0 : index
    %c0_5 = arith.constant 0 : index
    %6 = vector.load %arg3[%c0_4, %c0_5] : memref<1x8xf32, #tpu.memory_space<vmem>>, vector<1x8xf32>
    %7 = vector.shape_cast %6 : vector<1x8xf32> to vector<1x1x8xf32>
    %8 = vector.broadcast %7 : vector<1x1x8xf32> to vector<1x256x8xf32>
    %9 = arith.addf %5, %8 : vector<1x256x8xf32>
    %cst = arith.constant 0.000000e+00 : f32
    %10 = vector.broadcast %cst : f32 to vector<1x256x8xf32>
    %11 = arith.maximumf %9, %10 : vector<1x256x8xf32>
    %12 = arith.truncf %11 : vector<1x256x8xf32> to vector<1x256x8xbf16>
    %c0_6 = arith.constant 0 : index
    %c0_7 = arith.constant 0 : index
    %c0_8 = arith.constant 0 : index
    %13 = vector.load %arg4[%c0_6, %c0_7, %c0_8] : memref<1x256x8xbf16, #tpu.memory_space<vmem>>, vector<1x256x8xbf16>
    tpu.vector_store %arg4[%c0_6, %c0_7, %c0_8], %12 {strides = array<i32>} : memref<1x256x8xbf16, #tpu.memory_space<vmem>>, vector<1x256x8xbf16>,
    return
  }
  func.func @transform_0(%arg0: i32) -> (i32, i32, i32) {
    %c0_i32 = arith.constant 0 : i32
    %c0_i32_0 = arith.constant 0 : i32
    %c0_i32_1 = arith.constant 0 : i32
    return %arg0, %c0_i32, %c0_i32_0 : i32, i32, i32
  }
  func.func @transform_1(%arg0: i32) -> (i32, i32) {
    %c0_i32 = arith.constant 0 : i32
    %c0_i32_0 = arith.constant 0 : i32
    %c0_i32_1 = arith.constant 0 : i32
    return %c0_i32, %c0_i32_0 : i32, i32
  }
  func.func @transform_2(%arg0: i32) -> (i32, i32) {
    %c0_i32 = arith.constant 0 : i32
    %c0_i32_0 = arith.constant 0 : i32
    %c0_i32_1 = arith.constant 0 : i32
    return %c0_i32, %c0_i32_0 : i32, i32
  }
  func.func @transform_3(%arg0: i32) -> (i32, i32, i32) {
    %c0_i32 = arith.constant 0 : i32
    %c0_i32_0 = arith.constant 0 : i32
    %c0_i32_1 = arith.constant 0 : i32
    return %arg0, %c0_i32, %c0_i32_0 : i32, i32, i32
  }
}

module attributes {stable_mosaic.version = 11 : i64} {
  func.func @kernel(%arg0: i32, %arg1: memref<1x9x9x32xbf16, #tpu.memory_space<vmem>>, %arg2: memref<4x32x8xf32, #tpu.memory_space<vmem>>, %arg3: memref<1x64x8xbf16, #tpu.memory_space<vmem>>, %arg4: memref<1x8x8xf32, #tpu.memory_space<vmem>>) attributes {dimension_semantics = [#tpu.dimension_semantics<parallel>], iteration_bounds = array<i64: 2>, scalar_prefetch = 0 : i64, scratch_operands = 0 : i64, tpu.core_type = #tpu.core_type<tc>, window_params = [{transform_indices = @transform_0, window_bounds = array<i64: 1, 9, 9, 32>}, {pipeline_mode = #tpu.pipeline_mode<synchronous>, transform_indices = @transform_1, window_bounds = array<i64: 4, 32, 8>}, {transform_indices = @transform_2, window_bounds = array<i64: 1, 64, 8>}, {transform_indices = @transform_3, window_bounds = array<i64: 1, 8, 8>}]} {
    %cst = arith.constant 0.000000e+00 : f32
    %0 = vector.broadcast %cst : f32 to vector<64x8xf32>
    %c0 = arith.constant 0 : index
    %c0_0 = arith.constant 0 : index
    %c0_1 = arith.constant 0 : index
    %c0_2 = arith.constant 0 : index
    %1 = vector.load %arg1[%c0, %c0_0, %c0_1, %c0_2] : memref<1x9x9x32xbf16, #tpu.memory_space<vmem>>, vector<1x8x8x32xbf16>
    %2 = vector.shape_cast %1 : vector<1x8x8x32xbf16> to vector<8x8x32xbf16>
    %3 = arith.extf %2 : vector<8x8x32xbf16> to vector<8x8x32xf32>
    %4 = vector.shape_cast %3 : vector<8x8x32xf32> to vector<64x32xf32>
    %c0_3 = arith.constant 0 : index
    %c0_4 = arith.constant 0 : index
    %c0_5 = arith.constant 0 : index
    %5 = vector.load %arg2[%c0_3, %c0_4, %c0_5] : memref<4x32x8xf32, #tpu.memory_space<vmem>>, vector<1x32x8xf32>
    %6 = vector.shape_cast %5 : vector<1x32x8xf32> to vector<32x8xf32>
    %cst_6 = arith.constant dense<0.000000e+00> : vector<64x8xf32>
    %7 = tpu.matmul %4, %6, %cst_6 {dimension_numbers = #tpu.dot_dimension_numbers<[1], [0], [0], [1], [0, 0, 1, 1], [], []>} : vector<64x32xf32>, vector<32x8xf32>, vector<64x8xf32> -> vector<64x8xf32>
    %8 = arith.addf %0, %7 : vector<64x8xf32>
    %c0_7 = arith.constant 0 : index
    %c0_8 = arith.constant 0 : index
    %c1 = arith.constant 1 : index
    %c0_9 = arith.constant 0 : index
    %9 = vector.load %arg1[%c0_7, %c0_8, %c1, %c0_9] : memref<1x9x9x32xbf16, #tpu.memory_space<vmem>>, vector<1x8x8x32xbf16>
    %10 = vector.shape_cast %9 : vector<1x8x8x32xbf16> to vector<8x8x32xbf16>
    %11 = arith.extf %10 : vector<8x8x32xbf16> to vector<8x8x32xf32>
    %12 = vector.shape_cast %11 : vector<8x8x32xf32> to vector<64x32xf32>
    %c1_10 = arith.constant 1 : index
    %c0_11 = arith.constant 0 : index
    %c0_12 = arith.constant 0 : index
    %13 = vector.load %arg2[%c1_10, %c0_11, %c0_12] : memref<4x32x8xf32, #tpu.memory_space<vmem>>, vector<1x32x8xf32>
    %14 = vector.shape_cast %13 : vector<1x32x8xf32> to vector<32x8xf32>
    %cst_13 = arith.constant dense<0.000000e+00> : vector<64x8xf32>
    %15 = tpu.matmul %12, %14, %cst_13 {dimension_numbers = #tpu.dot_dimension_numbers<[1], [0], [0], [1], [0, 0, 1, 1], [], []>} : vector<64x32xf32>, vector<32x8xf32>, vector<64x8xf32> -> vector<64x8xf32>
    %16 = arith.addf %8, %15 : vector<64x8xf32>
    %c0_14 = arith.constant 0 : index
    %c1_15 = arith.constant 1 : index
    %c0_16 = arith.constant 0 : index
    %c0_17 = arith.constant 0 : index
    %17 = vector.load %arg1[%c0_14, %c1_15, %c0_16, %c0_17] : memref<1x9x9x32xbf16, #tpu.memory_space<vmem>>, vector<1x8x8x32xbf16>
    %18 = vector.shape_cast %17 : vector<1x8x8x32xbf16> to vector<8x8x32xbf16>
    %19 = arith.extf %18 : vector<8x8x32xbf16> to vector<8x8x32xf32>
    %20 = vector.shape_cast %19 : vector<8x8x32xf32> to vector<64x32xf32>
    %c2 = arith.constant 2 : index
    %c0_18 = arith.constant 0 : index
    %c0_19 = arith.constant 0 : index
    %21 = vector.load %arg2[%c2, %c0_18, %c0_19] : memref<4x32x8xf32, #tpu.memory_space<vmem>>, vector<1x32x8xf32>
    %22 = vector.shape_cast %21 : vector<1x32x8xf32> to vector<32x8xf32>
    %cst_20 = arith.constant dense<0.000000e+00> : vector<64x8xf32>
    %23 = tpu.matmul %20, %22, %cst_20 {dimension_numbers = #tpu.dot_dimension_numbers<[1], [0], [0], [1], [0, 0, 1, 1], [], []>} : vector<64x32xf32>, vector<32x8xf32>, vector<64x8xf32> -> vector<64x8xf32>
    %24 = arith.addf %16, %23 : vector<64x8xf32>
    %c0_21 = arith.constant 0 : index
    %c1_22 = arith.constant 1 : index
    %c1_23 = arith.constant 1 : index
    %c0_24 = arith.constant 0 : index
    %25 = vector.load %arg1[%c0_21, %c1_22, %c1_23, %c0_24] : memref<1x9x9x32xbf16, #tpu.memory_space<vmem>>, vector<1x8x8x32xbf16>
    %26 = vector.shape_cast %25 : vector<1x8x8x32xbf16> to vector<8x8x32xbf16>
    %27 = arith.extf %26 : vector<8x8x32xbf16> to vector<8x8x32xf32>
    %28 = vector.shape_cast %27 : vector<8x8x32xf32> to vector<64x32xf32>
    %c3 = arith.constant 3 : index
    %c0_25 = arith.constant 0 : index
    %c0_26 = arith.constant 0 : index
    %29 = vector.load %arg2[%c3, %c0_25, %c0_26] : memref<4x32x8xf32, #tpu.memory_space<vmem>>, vector<1x32x8xf32>
    %30 = vector.shape_cast %29 : vector<1x32x8xf32> to vector<32x8xf32>
    %cst_27 = arith.constant dense<0.000000e+00> : vector<64x8xf32>
    %31 = tpu.matmul %28, %30, %cst_27 {dimension_numbers = #tpu.dot_dimension_numbers<[1], [0], [0], [1], [0, 0, 1, 1], [], []>} : vector<64x32xf32>, vector<32x8xf32>, vector<64x8xf32> -> vector<64x8xf32>
    %32 = arith.addf %24, %31 : vector<64x8xf32>
    %33 = arith.truncf %32 : vector<64x8xf32> to vector<64x8xbf16>
    %c0_28 = arith.constant 0 : index
    %c0_29 = arith.constant 0 : index
    %c0_30 = arith.constant 0 : index
    %34 = vector.load %arg3[%c0_28, %c0_29, %c0_30] : memref<1x64x8xbf16, #tpu.memory_space<vmem>>, vector<1x64x8xbf16>
    %35 = vector.shape_cast %34 : vector<1x64x8xbf16> to vector<64x8xbf16>
    %36 = vector.shape_cast %33 : vector<64x8xbf16> to vector<1x64x8xbf16>
    tpu.vector_store %arg3[%c0_28, %c0_29, %c0_30], %36 {strides = array<i32>} : memref<1x64x8xbf16, #tpu.memory_space<vmem>>, vector<1x64x8xbf16>,
    %cst_31 = arith.constant dense<0.000000e+00> : vector<8xf32>
    %37 = vector.multi_reduction <add>, %32, %cst_31 [0] : vector<64x8xf32> to vector<8xf32>
    %38 = vector.shape_cast %37 : vector<8xf32> to vector<1x8xf32>
    %39 = arith.mulf %32, %32 : vector<64x8xf32>
    %cst_32 = arith.constant dense<0.000000e+00> : vector<8xf32>
    %40 = vector.multi_reduction <add>, %39, %cst_32 [0] : vector<64x8xf32> to vector<8xf32>
    %41 = vector.shape_cast %40 : vector<8xf32> to vector<1x8xf32>
    %cst_33 = arith.constant 0.000000e+00 : f32
    %42 = vector.broadcast %cst_33 : f32 to vector<6x8xf32>
    %43 = tpu.concatenate %38, %41, %42 in 0 : vector<1x8xf32>, vector<1x8xf32>, vector<6x8xf32> -> vector<8x8xf32>
    %c0_34 = arith.constant 0 : index
    %c0_35 = arith.constant 0 : index
    %c0_36 = arith.constant 0 : index
    %44 = vector.load %arg4[%c0_34, %c0_35, %c0_36] : memref<1x8x8xf32, #tpu.memory_space<vmem>>, vector<1x8x8xf32>
    %45 = vector.shape_cast %44 : vector<1x8x8xf32> to vector<8x8xf32>
    %46 = vector.shape_cast %43 : vector<8x8xf32> to vector<1x8x8xf32>
    tpu.vector_store %arg4[%c0_34, %c0_35, %c0_36], %46 {strides = array<i32>} : memref<1x8x8xf32, #tpu.memory_space<vmem>>, vector<1x8x8xf32>,
    return
  }
  func.func @transform_0(%arg0: i32) -> (i32, i32, i32, i32) {
    %c0_i32 = arith.constant 0 : i32
    %c0_i32_0 = arith.constant 0 : i32
    %c0_i32_1 = arith.constant 0 : i32
    %c0_i32_2 = arith.constant 0 : i32
    return %arg0, %c0_i32, %c0_i32_0, %c0_i32_1 : i32, i32, i32, i32
  }
  func.func @transform_1(%arg0: i32) -> (i32, i32, i32) {
    %c0_i32 = arith.constant 0 : i32
    %c0_i32_0 = arith.constant 0 : i32
    %c0_i32_1 = arith.constant 0 : i32
    %c0_i32_2 = arith.constant 0 : i32
    return %c0_i32, %c0_i32_0, %c0_i32_1 : i32, i32, i32
  }
  func.func @transform_2(%arg0: i32) -> (i32, i32, i32) {
    %c0_i32 = arith.constant 0 : i32
    %c0_i32_0 = arith.constant 0 : i32
    %c0_i32_1 = arith.constant 0 : i32
    return %arg0, %c0_i32, %c0_i32_0 : i32, i32, i32
  }
  func.func @transform_3(%arg0: i32) -> (i32, i32, i32) {
    %c0_i32 = arith.constant 0 : i32
    %c0_i32_0 = arith.constant 0 : i32
    %c0_i32_1 = arith.constant 0 : i32
    return %arg0, %c0_i32, %c0_i32_0 : i32, i32, i32
  }
}

module attributes {stable_mosaic.version = 11 : i64} {
  func.func @_bn_relu_kernel(%arg0: i32, %arg1: memref<1x64x8xbf16, #tpu.memory_space<vmem>>, %arg2: memref<1x8xf32, #tpu.memory_space<vmem>>, %arg3: memref<1x8xf32, #tpu.memory_space<vmem>>, %arg4: memref<1x64x8xbf16, #tpu.memory_space<vmem>>) attributes {dimension_semantics = [#tpu.dimension_semantics<parallel>], iteration_bounds = array<i64: 2>, scalar_prefetch = 0 : i64, scratch_operands = 0 : i64, tpu.core_type = #tpu.core_type<tc>, window_params = [{transform_indices = @transform_0, window_bounds = array<i64: 1, 64, 8>}, {pipeline_mode = #tpu.pipeline_mode<synchronous>, transform_indices = @transform_1, window_bounds = array<i64: 1, 8>}, {pipeline_mode = #tpu.pipeline_mode<synchronous>, transform_indices = @transform_2, window_bounds = array<i64: 1, 8>}, {transform_indices = @transform_3, window_bounds = array<i64: 1, 64, 8>}]} {
    %c0 = arith.constant 0 : index
    %c0_0 = arith.constant 0 : index
    %c0_1 = arith.constant 0 : index
    %0 = vector.load %arg1[%c0, %c0_0, %c0_1] : memref<1x64x8xbf16, #tpu.memory_space<vmem>>, vector<1x64x8xbf16>
    %1 = arith.extf %0 : vector<1x64x8xbf16> to vector<1x64x8xf32>
    %c0_2 = arith.constant 0 : index
    %c0_3 = arith.constant 0 : index
    %2 = vector.load %arg2[%c0_2, %c0_3] : memref<1x8xf32, #tpu.memory_space<vmem>>, vector<1x8xf32>
    %3 = vector.shape_cast %2 : vector<1x8xf32> to vector<1x1x8xf32>
    %4 = vector.broadcast %3 : vector<1x1x8xf32> to vector<1x64x8xf32>
    %5 = arith.mulf %1, %4 : vector<1x64x8xf32>
    %c0_4 = arith.constant 0 : index
    %c0_5 = arith.constant 0 : index
    %6 = vector.load %arg3[%c0_4, %c0_5] : memref<1x8xf32, #tpu.memory_space<vmem>>, vector<1x8xf32>
    %7 = vector.shape_cast %6 : vector<1x8xf32> to vector<1x1x8xf32>
    %8 = vector.broadcast %7 : vector<1x1x8xf32> to vector<1x64x8xf32>
    %9 = arith.addf %5, %8 : vector<1x64x8xf32>
    %cst = arith.constant 0.000000e+00 : f32
    %10 = vector.broadcast %cst : f32 to vector<1x64x8xf32>
    %11 = arith.maximumf %9, %10 : vector<1x64x8xf32>
    %12 = arith.truncf %11 : vector<1x64x8xf32> to vector<1x64x8xbf16>
    %c0_6 = arith.constant 0 : index
    %c0_7 = arith.constant 0 : index
    %c0_8 = arith.constant 0 : index
    %13 = vector.load %arg4[%c0_6, %c0_7, %c0_8] : memref<1x64x8xbf16, #tpu.memory_space<vmem>>, vector<1x64x8xbf16>
    tpu.vector_store %arg4[%c0_6, %c0_7, %c0_8], %12 {strides = array<i32>} : memref<1x64x8xbf16, #tpu.memory_space<vmem>>, vector<1x64x8xbf16>,
    return
  }
  func.func @transform_0(%arg0: i32) -> (i32, i32, i32) {
    %c0_i32 = arith.constant 0 : i32
    %c0_i32_0 = arith.constant 0 : i32
    %c0_i32_1 = arith.constant 0 : i32
    return %arg0, %c0_i32, %c0_i32_0 : i32, i32, i32
  }
  func.func @transform_1(%arg0: i32) -> (i32, i32) {
    %c0_i32 = arith.constant 0 : i32
    %c0_i32_0 = arith.constant 0 : i32
    %c0_i32_1 = arith.constant 0 : i32
    return %c0_i32, %c0_i32_0 : i32, i32
  }
  func.func @transform_2(%arg0: i32) -> (i32, i32) {
    %c0_i32 = arith.constant 0 : i32
    %c0_i32_0 = arith.constant 0 : i32
    %c0_i32_1 = arith.constant 0 : i32
    return %c0_i32, %c0_i32_0 : i32, i32
  }
  func.func @transform_3(%arg0: i32) -> (i32, i32, i32) {
    %c0_i32 = arith.constant 0 : i32
    %c0_i32_0 = arith.constant 0 : i32
    %c0_i32_1 = arith.constant 0 : i32
    return %arg0, %c0_i32, %c0_i32_0 : i32, i32, i32
  }
}

</mosaic_0001>

<bundles_post_ra>
// kernel: unet_down_forward.7
= control target key start
LH: loop header
LB: loop body
LE: loop exit
PB: predicated region body
PF: predicated region fallthrough
CT: control target
= control target key end

     0   :  { %s755_s12 = smov 0   ;;  %s969_s0 = inlined_call_operand.vmem [shape: bf16[2,256,8], index: 0, kind: input, shape index: {}, may-alias: {0,3}]   ;;  %s970_s1 = inlined_call_operand.vmem [shape: f32[1,8], index: 1, kind: input, shape index: {}]   ;;  %s971_s2 = inlined_call_operand.vmem [shape: f32[1,8], index: 2, kind: input, shape index: {}]   ;;  %s972_s3 = inlined_call_operand.vmem [shape: bf16[2,256,8], index: 3, kind: output, shape index: {}, may-alias: {0,3}]  }
   0x1 LB: > { %s561_s13 = sadd.s32 4294967295, %s733_s12   ;;  %p565_p0 = scmp.ge.s32.totalorder %s733_s12, 1  ;;  %s733_s12 = sphi %s755_s12, %s13_s12  }
   0x2   : > { %p137_p1 = scmp.lt.s32.totalorder %s733_s12, 3 }
   0x4   : > { %p138_p2 = pnand %p565_p0, %p137_p1 }
   0x5   : > { %p161_p3 = scmp.lt.s32.totalorder (!%p138_p2), %s561_s13, 1  ;;  %v776_v0 = vld [vmem:[%s970_s1] ss:$0 sm:$0xff] (!%p138_p2)  ;;  %vm473_vm0 = vcmask (!%p138_p2), 60416  }
   0x6   : > { %141 = sbr.rel (%p138_p2) target bundleno = 61 (0x3d), region = 32  ;;  %v785_v9 = vld [vmem:[%s971_s2] ss:$0 sm:$0xff] (!%p138_p2) }
   0xd   : > { %s974_s13 = smov (!%p161_p3, %s561_s13), 1 }
   0xe   : > { %s606_s14 = sshll.u32 %s974_s13, 7 }
   0xf   : > { %s771_s17 = scalar_lea.vmem %s969_s0, %s606_s14  ;;  %s812_s24 = scalar_lea.vmem %s972_s3, %s606_s14 }
  0x10   : > { %v641_v1 = vld [vmem:[%s771_s17] sm:$0xff]   ;;  %v704_v2 = vld [vmem:[%s771_s17 + $0x8] sm:$0xff]   ;;  %v705_v3 = vld [vmem:[%s771_s17 + $0x10] sm:$0xff]  }
  0x11   : > { %v642_v4 = vunpack.c.l.bf16 %v641_v1  ;;  %v706_v5 = vld [vmem:[%s771_s17 + $0x18] sm:$0xff]   ;;  %v643_v6 = vunpack.c.h.bf16 %v641_v1  ;;  %v646_v7 = vunpack.c.l.bf16 %v704_v2  ;;  %v647_v8 = vunpack.c.h.bf16 %v704_v2  ;;  %v707_v26 = vld [vmem:[%s771_s17 + $0x20] sm:$0xff]   ;;  %v708_v27 = vld [vmem:[%s771_s17 + $0x28] sm:$0xff]  }
  0x12   : > { %v650_v10 = vunpack.c.l.bf16 %v705_v3  ;;  %v651_v11 = vunpack.c.h.bf16 %v705_v3  ;;  %v654_v12 = vunpack.c.l.bf16 %v706_v5  ;;  %v655_v13 = vunpack.c.h.bf16 %v706_v5  ;;  %v709_v32 = vld [vmem:[%s771_s17 + $0x30] sm:$0xff]   ;;  %v710_v33 = vld [vmem:[%s771_s17 + $0x38] sm:$0xff]   ;;  %v815_v38 = vld [vmem:[%s771_s17 + $0x40] sm:$0xff]  }
  0x13   : > { %v242_v14 = vmul.f32 %v642_v4, %v776_v0  ;;  %v243_v15 = vmul.f32 %v643_v6, %v776_v0  ;;  %v244_v16 = vmul.f32 %v646_v7, %v776_v0  ;;  %v245_v17 = vmul.f32 %v647_v8, %v776_v0  ;;  %v818_v39 = vld [vmem:[%s771_s17 + $0x48] sm:$0xff]   ;;  %v821_v44 = vld [vmem:[%s771_s17 + $0x50] sm:$0xff]   ;;  %v824_v45 = vld [vmem:[%s771_s17 + $0x58] sm:$0xff]  }
  0x14   : > { %v246_v18 = vmul.f32 %v650_v10, %v776_v0  ;;  %v247_v19 = vmul.f32 %v651_v11, %v776_v0  ;;  %v248_v20 = vmul.f32 %v654_v12, %v776_v0  ;;  %v249_v21 = vmul.f32 %v655_v13, %v776_v0  ;;  %v827_v46 = vld [vmem:[%s771_s17 + $0x60] sm:$0xff]   ;;  %v830_v51 = vld [vmem:[%s771_s17 + $0x68] sm:$0xff]   ;;  %v833_v52 = vld [vmem:[%s771_s17 + $0x70] sm:$0xff]  }
  0x15   : > { %v281_v22 = vadd.f32 %v785_v9, %v242_v14  ;;  %v282_v23 = vadd.f32 %v785_v9, %v243_v15  ;;  %v283_v24 = vadd.f32 %v785_v9, %v244_v16  ;;  %v284_v25 = vadd.f32 %v785_v9, %v245_v17  ;;  %v836_v53 = vld [vmem:[%s771_s17 + $0x78] sm:$0xff]  }
  0x16   : > { %v285_v28 = vadd.f32 %v785_v9, %v246_v18  ;;  %v286_v29 = vadd.f32 %v785_v9, %v247_v19  ;;  %v287_v30 = vadd.f32 %v785_v9, %v248_v20  ;;  %v288_v31 = vadd.f32 %v785_v9, %v249_v21 }
  0x17   : > { %v313_v34 = vmax.f32 %v281_v22, 0.0  ;;  %v314_v35 = vmax.f32 %v282_v23, 0.0  ;;  %v315_v36 = vmax.f32 %v283_v24, 0.0  ;;  %v316_v37 = vmax.f32 %v284_v25, 0.0 }
  0x18   : > { %v317_v40 = vmax.f32 %v285_v28, 0.0  ;;  %v318_v41 = vmax.f32 %v286_v29, 0.0  ;;  %v319_v42 = vmax.f32 %v287_v30, 0.0  ;;  %v320_v43 = vmax.f32 %v288_v31, 0.0 }
  0x19   : > { %v608_v47 = vpack.c.bf16 %v313_v34, %v313_v34  ;;  %v609_v48 = vpack.c.bf16 %v314_v35, %v314_v35  ;;  %v610_v49 = vpack.c.bf16 %v315_v36, %v315_v36  ;;  %v611_v50 = vpack.c.bf16 %v316_v37, %v316_v37 }
  0x1a   : > { %v612_v54 = vpack.c.bf16 %v317_v40, %v317_v40  ;;  %v613_v55 = vpack.c.bf16 %v318_v41, %v318_v41  ;;  %v614_v56 = vpack.c.bf16 %v319_v42, %v319_v42  ;;  %v615_v57 = vpack.c.bf16 %v320_v43, %v320_v43 }
  0x1b   : > { %474 = vst.msk [vmem:[%s812_s24] sm:$0xf] %vm473_vm0, %v608_v47  ;;  %475 = vst.msk [vmem:[%s812_s24 + $0x4] sm:$0xf] %vm473_vm0, %v609_v48  ;;  %v658_v58 = vunpack.c.l.bf16 %v707_v26  ;;  %v659_v59 = vunpack.c.h.bf16 %v707_v26  ;;  %v662_v60 = vunpack.c.l.bf16 %v708_v27  ;;  %v663_v61 = vunpack.c.h.bf16 %v708_v27 }
  0x1c   : > { %476 = vst.msk [vmem:[%s812_s24 + $0x8] sm:$0xf] %vm473_vm0, %v610_v49  ;;  %477 = vst.msk [vmem:[%s812_s24 + $0xc] sm:$0xf] %vm473_vm0, %v611_v50  ;;  %v666_v62 = vunpack.c.l.bf16 %v709_v32  ;;  %v667_v63 = vunpack.c.h.bf16 %v709_v32  ;;  %v670_v1 = vunpack.c.l.bf16 %v710_v33  ;;  %v671_v2 = vunpack.c.h.bf16 %v710_v33 }
  0x1d   : > { %478 = vst.msk [vmem:[%s812_s24 + $0x10] sm:$0xf] %vm473_vm0, %v612_v54  ;;  %479 = vst.msk [vmem:[%s812_s24 + $0x14] sm:$0xf] %vm473_vm0, %v613_v55  ;;  %v250_v3 = vmul.f32 %v658_v58, %v776_v0  ;;  %v251_v4 = vmul.f32 %v659_v59, %v776_v0  ;;  %v252_v5 = vmul.f32 %v662_v60, %v776_v0  ;;  %v674_v36 = vunpack.c.l.bf16 %v815_v38 }
  0x1e   : > { %480 = vst.msk [vmem:[%s812_s24 + $0x18] sm:$0xf] %vm473_vm0, %v614_v56  ;;  %481 = vst.msk [vmem:[%s812_s24 + $0x1c] sm:$0xf] %vm473_vm0, %v615_v57  ;;  %v253_v6 = vmul.f32 %v663_v61, %v776_v0  ;;  %v254_v7 = vmul.f32 %v666_v62, %v776_v0  ;;  %v255_v8 = vmul.f32 %v667_v63, %v776_v0  ;;  %v675_v37 = vunpack.c.h.bf16 %v815_v38 }
  0x1f   : > { %v256_v10 = vmul.f32 %v670_v1, %v776_v0  ;;  %v257_v11 = vmul.f32 %v671_v2, %v776_v0  ;;  %v289_v12 = vadd.f32 %v785_v9, %v250_v3  ;;  %v290_v13 = vadd.f32 %v785_v9, %v251_v4 }
  0x20   : > { %v291_v14 = vadd.f32 %v785_v9, %v252_v5  ;;  %v292_v15 = vadd.f32 %v785_v9, %v253_v6  ;;  %v293_v16 = vadd.f32 %v785_v9, %v254_v7  ;;  %v294_v17 = vadd.f32 %v785_v9, %v255_v8 }
  0x21   : > { %v295_v18 = vadd.f32 %v785_v9, %v256_v10  ;;  %v296_v19 = vadd.f32 %v785_v9, %v257_v11  ;;  %v321_v20 = vmax.f32 %v289_v12, 0.0  ;;  %v322_v21 = vmax.f32 %v290_v13, 0.0 }
  0x22   : > { %v323_v22 = vmax.f32 %v291_v14, 0.0  ;;  %v324_v23 = vmax.f32 %v292_v15, 0.0  ;;  %v325_v24 = vmax.f32 %v293_v16, 0.0  ;;  %v326_v25 = vmax.f32 %v294_v17, 0.0 }
  0x23   : > { %v327_v26 = vmax.f32 %v295_v18, 0.0  ;;  %v328_v27 = vmax.f32 %v296_v19, 0.0  ;;  %v616_v28 = vpack.c.bf16 %v321_v20, %v321_v20  ;;  %v617_v29 = vpack.c.bf16 %v322_v21, %v322_v21 }
  0x24   : > { %v618_v30 = vpack.c.bf16 %v323_v22, %v323_v22  ;;  %v619_v31 = vpack.c.bf16 %v324_v23, %v324_v23  ;;  %v620_v32 = vpack.c.bf16 %v325_v24, %v325_v24  ;;  %v621_v33 = vpack.c.bf16 %v326_v25, %v326_v25 }
  0x25   : > { %v622_v34 = vpack.c.bf16 %v327_v26, %v327_v26  ;;  %v623_v35 = vpack.c.bf16 %v328_v27, %v328_v27  ;;  %482 = vst.msk [vmem:[%s812_s24 + $0x20] sm:$0xf] %vm473_vm0, %v616_v28  ;;  %483 = vst.msk [vmem:[%s812_s24 + $0x24] sm:$0xf] %vm473_vm0, %v617_v29  ;;  %v678_v40 = vunpack.c.l.bf16 %v818_v39  ;;  %v679_v41 = vunpack.c.h.bf16 %v818_v39 }
  0x26   : > { %484 = vst.msk [vmem:[%s812_s24 + $0x28] sm:$0xf] %vm473_vm0, %v618_v30  ;;  %485 = vst.msk [vmem:[%s812_s24 + $0x2c] sm:$0xf] %vm473_vm0, %v619_v31  ;;  %v682_v42 = vunpack.c.l.bf16 %v821_v44  ;;  %v683_v43 = vunpack.c.h.bf16 %v821_v44  ;;  %v686_v47 = vunpack.c.l.bf16 %v824_v45  ;;  %v687_v38 = vunpack.c.h.bf16 %v824_v45 }
  0x27   : > { %486 = vst.msk [vmem:[%s812_s24 + $0x30] sm:$0xf] %vm473_vm0, %v620_v32  ;;  %487 = vst.msk [vmem:[%s812_s24 + $0x34] sm:$0xf] %vm473_vm0, %v621_v33  ;;  %v258_v48 = vmul.f32 %v674_v36, %v776_v0  ;;  %v259_v39 = vmul.f32 %v675_v37, %v776_v0  ;;  %v260_v49 = vmul.f32 %v678_v40, %v776_v0  ;;  %v690_v18 = vunpack.c.l.bf16 %v827_v46 }
  0x28   : > { %488 = vst.msk [vmem:[%s812_s24 + $0x38] sm:$0xf] %vm473_vm0, %v622_v34  ;;  %489 = vst.msk [vmem:[%s812_s24 + $0x3c] sm:$0xf] %vm473_vm0, %v623_v35  ;;  %v261_v50 = vmul.f32 %v679_v41, %v776_v0  ;;  %v262_v54 = vmul.f32 %v682_v42, %v776_v0  ;;  %v263_v55 = vmul.f32 %v683_v43, %v776_v0  ;;  %v691_v19 = vunpack.c.h.bf16 %v827_v46 }
  0x29   : > { %v264_v56 = vmul.f32 %v686_v47, %v776_v0  ;;  %v265_v44 = vmul.f32 %v687_v38, %v776_v0  ;;  %v297_v57 = vadd.f32 %v785_v9, %v258_v48  ;;  %v298_v45 = vadd.f32 %v785_v9, %v259_v39 }
  0x2a   : > { %v299_v58 = vadd.f32 %v785_v9, %v260_v49  ;;  %v300_v59 = vadd.f32 %v785_v9, %v261_v50  ;;  %v301_v60 = vadd.f32 %v785_v9, %v262_v54  ;;  %v302_v61 = vadd.f32 %v785_v9, %v263_v55 }
  0x2b   : > { %v303_v62 = vadd.f32 %v785_v9, %v264_v56  ;;  %v304_v63 = vadd.f32 %v785_v9, %v265_v44  ;;  %v329_v1 = vmax.f32 %v297_v57, 0.0  ;;  %v330_v2 = vmax.f32 %v298_v45, 0.0 }
  0x2c   : > { %v331_v3 = vmax.f32 %v299_v58, 0.0  ;;  %v332_v4 = vmax.f32 %v300_v59, 0.0  ;;  %v333_v5 = vmax.f32 %v301_v60, 0.0  ;;  %v334_v6 = vmax.f32 %v302_v61, 0.0 }
  0x2d   : > { %v335_v7 = vmax.f32 %v303_v62, 0.0  ;;  %v336_v8 = vmax.f32 %v304_v63, 0.0  ;;  %v624_v10 = vpack.c.bf16 %v329_v1, %v329_v1  ;;  %v625_v11 = vpack.c.bf16 %v330_v2, %v330_v2 }
  0x2e   : > { %v626_v12 = vpack.c.bf16 %v331_v3, %v331_v3  ;;  %v627_v13 = vpack.c.bf16 %v332_v4, %v332_v4  ;;  %v628_v14 = vpack.c.bf16 %v333_v5, %v333_v5  ;;  %v629_v15 = vpack.c.bf16 %v334_v6, %v334_v6 }
  0x2f   : > { %v630_v16 = vpack.c.bf16 %v335_v7, %v335_v7  ;;  %v631_v17 = vpack.c.bf16 %v336_v8, %v336_v8  ;;  %490 = vst.msk [vmem:[%s812_s24 + $0x40] sm:$0xf] %vm473_vm0, %v624_v10  ;;  %491 = vst.msk [vmem:[%s812_s24 + $0x44] sm:$0xf] %vm473_vm0, %v625_v11  ;;  %v694_v20 = vunpack.c.l.bf16 %v830_v51  ;;  %v695_v21 = vunpack.c.h.bf16 %v830_v51 }
  0x30   : > { %492 = vst.msk [vmem:[%s812_s24 + $0x48] sm:$0xf] %vm473_vm0, %v626_v12  ;;  %493 = vst.msk [vmem:[%s812_s24 + $0x4c] sm:$0xf] %vm473_vm0, %v627_v13  ;;  %v698_v22 = vunpack.c.l.bf16 %v833_v52  ;;  %v699_v23 = vunpack.c.h.bf16 %v833_v52  ;;  %v702_v24 = vunpack.c.l.bf16 %v836_v53  ;;  %v703_v46 = vunpack.c.h.bf16 %v836_v53 }
  0x31   : > { %494 = vst.msk [vmem:[%s812_s24 + $0x50] sm:$0xf] %vm473_vm0, %v628_v14  ;;  %495 = vst.msk [vmem:[%s812_s24 + $0x54] sm:$0xf] %vm473_vm0, %v629_v15  ;;  %v266_v25 = vmul.f32 %v690_v18, %v776_v0  ;;  %v267_v51 = vmul.f32 %v691_v19, %v776_v0  ;;  %v268_v26 = vmul.f32 %v694_v20, %v776_v0 }
  0x32   : > { %496 = vst.msk [vmem:[%s812_s24 + $0x58] sm:$0xf] %vm473_vm0, %v630_v16  ;;  %497 = vst.msk [vmem:[%s812_s24 + $0x5c] sm:$0xf] %vm473_vm0, %v631_v17  ;;  %v269_v27 = vmul.f32 %v695_v21, %v776_v0  ;;  %v270_v28 = vmul.f32 %v698_v22, %v776_v0  ;;  %v271_v29 = vmul.f32 %v699_v23, %v776_v0 }
  0x33   : > { %v272_v30 = vmul.f32 %v702_v24, %v776_v0  ;;  %v273_v52 = vmul.f32 %v703_v46, %v776_v0  ;;  %v305_v31 = vadd.f32 %v785_v9, %v266_v25  ;;  %v306_v53 = vadd.f32 %v785_v9, %v267_v51 }
  0x34   : > { %v307_v32 = vadd.f32 %v785_v9, %v268_v26  ;;  %v308_v33 = vadd.f32 %v785_v9, %v269_v27  ;;  %v309_v34 = vadd.f32 %v785_v9, %v270_v28  ;;  %v310_v35 = vadd.f32 %v785_v9, %v271_v29 }
  0x35   : > { %v311_v36 = vadd.f32 %v785_v9, %v272_v30  ;;  %v312_v37 = vadd.f32 %v785_v9, %v273_v52  ;;  %v337_v40 = vmax.f32 %v305_v31, 0.0  ;;  %v338_v41 = vmax.f32 %v306_v53, 0.0 }
  0x36   : > { %v339_v0 = vmax.f32 %v307_v32, 0.0  ;;  %v340_v42 = vmax.f32 %v308_v33, 0.0  ;;  %v341_v43 = vmax.f32 %v309_v34, 0.0  ;;  %v342_v47 = vmax.f32 %v310_v35, 0.0 }
  0x37   : > { %v343_v38 = vmax.f32 %v311_v36, 0.0  ;;  %v344_v48 = vmax.f32 %v312_v37, 0.0  ;;  %v632_v39 = vpack.c.bf16 %v337_v40, %v337_v40  ;;  %v633_v49 = vpack.c.bf16 %v338_v41, %v338_v41 }
  0x38   : > { %v634_v50 = vpack.c.bf16 %v339_v0, %v339_v0  ;;  %v635_v9 = vpack.c.bf16 %v340_v42, %v340_v42  ;;  %v636_v54 = vpack.c.bf16 %v341_v43, %v341_v43  ;;  %v637_v55 = vpack.c.bf16 %v342_v47, %v342_v47 }
  0x39   : > { %v638_v56 = vpack.c.bf16 %v343_v38, %v343_v38  ;;  %v639_v44 = vpack.c.bf16 %v344_v48, %v344_v48  ;;  %498 = vst.msk [vmem:[%s812_s24 + $0x60] sm:$0xf] %vm473_vm0, %v632_v39  ;;  %499 = vst.msk [vmem:[%s812_s24 + $0x64] sm:$0xf] %vm473_vm0, %v633_v49 }
  0x3a   : > { %500 = vst.msk [vmem:[%s812_s24 + $0x68] sm:$0xf] %vm473_vm0, %v634_v50  ;;  %501 = vst.msk [vmem:[%s812_s24 + $0x6c] sm:$0xf] %vm473_vm0, %v635_v9 }
  0x3b   : > { %502 = vst.msk [vmem:[%s812_s24 + $0x70] sm:$0xf] %vm473_vm0, %v636_v54  ;;  %503 = vst.msk [vmem:[%s812_s24 + $0x74] sm:$0xf] %vm473_vm0, %v637_v55 }
  0x3c   : > { %504 = vst.msk [vmem:[%s812_s24 + $0x78] sm:$0xf] %vm473_vm0, %v638_v56  ;;  %505 = vst.msk [vmem:[%s812_s24 + $0x7c] sm:$0xf] %vm473_vm0, %v639_v44 }
  0x3d PF: > { %s13_s12 = sadd.s32 1, %s733_s12  }
  0x3e   : > { %p10_p4 = scmp.ge.s32.totalorder %s13_s12, 4  }
  0x40   :  { %12 = sbr.rel (!%p10_p4) target bundleno = 1 (0x1), region = 62 }

// kernel: unet_down_forward.6
= control target key start
LH: loop header
LB: loop body
LE: loop exit
PB: predicated region body
PF: predicated region fallthrough
CT: control target
= control target key end

     0   :  { %s6509_s12 = smov 0   ;;  %s8337_s0 = inlined_call_operand.vmem [shape: bf16[2,18,18,8], index: 0, kind: input, shape index: {}]   ;;  %s8338_s1 = inlined_call_operand.vmem [shape: f32[9,8,8], index: 1, kind: input, shape index: {}]   ;;  %s8339_s2 = inlined_call_operand.vmem [shape: bf16[2,256,8], index: 2, kind: output, shape index: {0}]   ;;  %s8340_s3 = inlined_call_operand.vmem [shape: f32[2,8,8], index: 3, kind: output, shape index: {1}]  }
   0x1 LB: > { %s4699_s13 = sadd.s32 4294967295, %s6487_s12   ;;  %p4703_p0 = scmp.ge.s32.totalorder %s6487_s12, 1  ;;  %s6487_s12 = sphi %s6509_s12, %s14_s12  }
   0x2   : > { %p140_p1 = scmp.lt.s32.totalorder %s6487_s12, 3 }
   0x4   : > { %p141_p2 = pnand %p4703_p0, %p140_p1 }
   0x6   : > { %144 = sbr.rel (%p141_p2) target bundleno = 548 (0x224), region = 28 }
   0xd   : > { %v4708_v0 = vld [vmem:[%s8338_s1 + $0x8] sm:$0xff]  ;;  %v4919_v1 = vld [vmem:[%s8338_s1 + $0x20] sm:$0xff]  ;;  %p168_p3 = scmp.lt.s32.totalorder %s4699_s13, 1  ;;  %vm327_vm0 = vcmask 1046528   ;;  %vm410_vm1 = vcmask 64512   ;;  %v6605_v37 = vld [vmem:[%s8338_s1 + $0x30] sm:$0xff] }
   0xe   : > { %v246_v2 = vld [vmem:[%s8338_s1] sm:$0xff]  ;;  %5759 = vmatprep.subr.mxu1 %v4708_v0  ;;  %5959 = vmatprep.subr.mxu0 %v4919_v1  ;;  %v4968_v3 = vld [vmem:[%s8338_s1 + $0x28] sm:$0xff]  ;;  %v6619_v43 = vld [vmem:[%s8338_s1 + $0x10] sm:$0xff]  ;;  %vm1037_vm2 = vcmask 1045504   ;;  %vm4405_vm3 = vcmask 60416   ;;  %vm4608_vm4 = vcmask 1040384  }
   0xf   : > { %5760 = vmatpush3.msra.mxu1 %v4708_v0  ;;  %5960 = vmatpush3.msra.mxu0 %v4919_v1  ;;  %s8658_s13 = smov (!%p168_p3, %s4699_s13), 1  ;;  %vm4610_vm5 = vcmask 1041408  }
  0x10   : > { %5809 = vmatprep.subr.mxu1 %v246_v2  ;;  %6009 = vmatprep.subr.mxu0 %v4968_v3  ;;  %s6467_s22 = smul.u32 216, %s8658_s13  ;;  %s5230_s11 = sshll.u32 %s8658_s13, 7 }
  0x11   : > { %s8190_s16 = scalar_lea.vmem %s8339_s2, %s5230_s11  ;;  %s4707_s17 = sshll.u32 %s8658_s13, 3 }
  0x12   : > { %s6535_s25 = scalar_lea.vmem %s8337_s0, %s6467_s22  ;;  %s181_s20 = scalar_lea.vmem %s8340_s3, %s4707_s17 }
  0x13   : > { %v6538_v4 = vld [vmem:[%s6535_s25] sm:$0xff]   ;;  %v6541_v5 = vld [vmem:[%s6535_s25 + $0xc] sm:$0xff]   ;;  %v6544_v6 = vld [vmem:[%s6535_s25 + $0x8] sm:$0x1] }
  0x14   : > { %8434 = vst [vmem:[#allocation2_spill] sm:$0xff] %v6544_v6  ;;  %v8350_v7 = vunpack.c.l.bf16 %v6538_v4  ;;  %v6548_v8 = vunpack.c.h.bf16 %v6538_v4  ;;  %v1909_v9 = vunpack.c.l.bf16 %v6541_v5  ;;  %v1910_v10 = vunpack.c.h.bf16 %v6541_v5  ;;  %v6553_v11 = vld [vmem:[%s6535_s25 + $0x14] sm:$0x1]  ;;  %v6556_v12 = vld [vmem:[%s6535_s25 + $0xc] sm:$0xff]   ;;  %v5438_v17 = vld [vmem:[%s6535_s25 + $0x18] sm:$0xff]  }
  0x15   : > { %v8344_v13 = vunpack.c.l.bf16 %v6544_v6  ;;  %v1911_v14 = vunpack.c.l.bf16 %v6553_v11  ;;  %v8348_v15 = vunpack.c.l.bf16 %v6556_v12  ;;  %v6562_v16 = vunpack.c.h.bf16 %v6556_v12  ;;  %v6571_v22 = vld [vmem:[%s6535_s25 + $0x14] sm:$0x1]  ;;  %v6578_v25 = vld [vmem:[%s6535_s25 + $0x20] sm:$0x1]  ;;  %v6581_v26 = vld [vmem:[%s6535_s25 + $0x24] sm:$0xff]  }
  0x16   : > { %v328_v18 = vrot.slane %v8350_v7, 1  ;;  %v329_v19 = vrot.slane %v6548_v8, 1  ;;  %v2005_v20 = vrot.slane %v1909_v9, 1  ;;  %v2006_v21 = vrot.slane %v1910_v10, 1  ;;  %8435 = vst [vmem:[#allocation3_spill] sm:$0xff] %v6571_v22  ;;  %v6614_v42 = vld [vmem:[%s6535_s25 + $0x24] sm:$0xff]  }
  0x17   : > { %v331_v23 = vrot.slane %v8344_v13, 1  ;;  %v2008_v24 = vrot.slane %v1911_v14, 1  ;;  %v333_v29 = vrot.slane %v8348_v15, 1  ;;  %v334_v30 = vrot.slane %v6562_v16, 1  ;;  %v6589_v31 = vld [vmem:[%s6535_s25 + $0x20] sm:$0x1] }
  0x18   : > { %v330_v27 = vsel %vm327_vm0, %v328_v18, %v329_v19  ;;  %v2007_v28 = vsel %vm327_vm0, %v2005_v20, %v2006_v21  ;;  %8436 = vst [vmem:[#allocation4_spill] sm:$0xff] %v6589_v31  ;;  %v6595_v34 = vunpack.c.l.bf16 %v5438_v17  ;;  %v6597_v35 = vunpack.c.h.bf16 %v5438_v17  ;;  %v6600_v36 = vld [vmem:[%s6535_s25 + $0x2c] sm:$0x1]  ;;  %v5439_v52 = vld [vmem:[%s6535_s25 + $0x30] sm:$0xff]   ;;  %v6652_v62 = vld [vmem:[%s6535_s25 + $0x38] sm:$0x1] }
  0x19   : > { %5761 = vmatprep.mubr.msk.f32.mxu1 %vm410_vm1, %v330_v27  ;;  %5961 = vmatprep.mubr.msk.f32.mxu0 %vm410_vm1, %v2007_v28  ;;  %v332_v32 = vsel %vm327_vm0, %v329_v19, %v331_v23  ;;  %v2009_v33 = vsel %vm327_vm0, %v2006_v21, %v2008_v24  ;;  %v335_v38 = vsel %vm327_vm0, %v333_v29, %v334_v30  ;;  %v8343_v39 = vunpack.c.l.bf16 %v6571_v22  ;;  %v6640_v57 = vld [vmem:[%s6535_s25 + $0x2c] sm:$0x1]  ;;  %v6655_v63 = vld [vmem:[%s6535_s25 + $0x3c] sm:$0xff]   ;;  %v6666_v9 = vld [vmem:[%s6535_s25 + $0x38] sm:$0x1] }
  0x1a   : > { %5762 = vmatmul.mubr.msk.f32.vlgmr.msra.gmra.mrb[0].mxu1 %vm410_vm1, %v332_v32  ;;  %5962 = vmatmul.mubr.msk.f32.vlgmr.msra.gmra.mrb[0].mxu0 %vm410_vm1, %v2009_v33  ;;  %v8361_v40 = vunpack.c.l.bf16 %v6578_v25  ;;  %v1915_v41 = vunpack.c.l.bf16 %v6581_v26  ;;  %v2010_v44 = vrot.slane %v6595_v34, 1  ;;  %v2011_v45 = vrot.slane %v6597_v35, 1  ;;  %8437 = vst [vmem:[#allocation5_spill] sm:$0xff] %v6640_v57  ;;  %v6676_v21 = vld [vmem:[%s6535_s25 + $0x44] sm:$0x1]  ;;  %v6683_v29 = vld [vmem:[%s6535_s25 + $0x3c] sm:$0xff]  }
  0x1b   : > { %5810 = vmatpush3.msra.mxu1 %v246_v2  ;;  %6010 = vmatpush3.msra.mxu0 %v4968_v3  ;;  %v8360_v46 = vunpack.c.h.bf16 %v6581_v26  ;;  %v8342_v47 = vunpack.c.l.bf16 %v6589_v31  ;;  %v336_v48 = vrot.slane %v8343_v39, 1  ;;  %v8359_v51 = vunpack.c.l.bf16 %v6600_v36  ;;  %v5441_v39 = vld [vmem:[%s6535_s25 + $0x60] sm:$0xff]   ;;  %v6761_v15 = vld [vmem:[%s6535_s25 + $0x5c] sm:$0x1] }
  0x1c   : > { %5764 = vmatprep.mubr.msk.f32.mxu1 %vm410_vm1, %v335_v38  ;;  %v2013_v49 = vrot.slane %v8361_v40, 1  ;;  %v2015_v50 = vrot.slane %v1915_v41, 1  ;;  %6059 = vmatprep.subr.mxu0 %v6605_v37  ;;  %v2012_v53 = vsel %vm327_vm0, %v2010_v44, %v2011_v45  ;;  %v8346_v56 = vunpack.c.l.bf16 %v6614_v42  ;;  %8439 = vst [vmem:[#allocation7_spill] sm:$0xff] %v6761_v15  ;;  %v5427_v40 = vld [vmem:[%s6535_s25 + $0x78] sm:$0xff]   ;;  %v6847_v11 = vld [vmem:[%s6535_s25 + $0x84] sm:$0xff]  }
  0x1d   : > { %v2016_v54 = vrot.slane %v8360_v46, 1  ;;  %v341_v55 = vrot.slane %v8342_v47, 1  ;;  %5859 = vmatprep.subr.mxu1 %v6619_v43  ;;  %5964 = vmatprep.mubr.msk.f32.mxu0 %vm410_vm1, %v2012_v53  ;;  %v337_v58 = vsel %vm327_vm0, %v334_v30, %v336_v48  ;;  %v2018_v60 = vrot.slane %v8359_v51, 1  ;;  %v6889_v6 = vld [vmem:[%s8338_s1 + $0x38] sm:$0xff] }
  0x1e   : > { %v2014_v59 = vsel %vm327_vm0, %v2011_v45, %v2013_v49  ;;  %v6649_v61 = vunpack.c.h.bf16 %v6614_v42  ;;  %5765 = vmatmul.mubr.msk.f32.gmra.mrb[2].mxu1 %vm410_vm1, %v337_v58  ;;  %v343_v2 = vrot.slane %v8346_v56, 1  ;;  %v6663_v3 = vunpack.c.l.bf16 %v5439_v52  ;;  %v5440_v49 = vld [vmem:[%s6535_s25 + $0x48] sm:$0xff]   ;;  %v6708_v58 = vld [vmem:[%s6535_s25 + $0x50] sm:$0x1] }
  0x1f   : > { %5965 = vmatmul.mubr.msk.f32.gmra.mrb[2].mxu0 %vm410_vm1, %v2014_v59  ;;  %v2017_v0 = vsel %vm327_vm0, %v2015_v50, %v2016_v54  ;;  %v342_v1 = vsel %vm327_vm0, %v2011_v45, %v341_v55  ;;  %5767 = vmatprep.mubr.msk.f32.mxu1 %vm410_vm1, %v2012_v53  ;;  %v2019_v17 = vsel %vm327_vm0, %v2016_v54, %v2018_v60  ;;  %v6672_v19 = vunpack.c.h.bf16 %v5439_v52  ;;  %v6705_v55 = vld [vmem:[%s6535_s25 + $0x44] sm:$0x1] }
  0x20   : > { %5967 = vmatprep.mubr.msk.f32.mxu0 %vm410_vm1, %v2017_v0  ;;  %v344_v18 = vrot.slane %v6649_v61, 1  ;;  %v8341_v20 = vunpack.c.l.bf16 %v6640_v57  ;;  %v2020_v23 = vrot.slane %v6663_v3, 1  ;;  %v8357_v24 = vunpack.c.l.bf16 %v6652_v62  ;;  %8438 = vst [vmem:[#allocation6_spill] sm:$0xff] %v6705_v55 }
  0x21   : > { %v1921_v27 = vunpack.c.l.bf16 %v6655_v63  ;;  %v8356_v28 = vunpack.c.h.bf16 %v6655_v63  ;;  %v2021_v32 = vrot.slane %v6672_v19, 1  ;;  %v8347_v38 = vunpack.c.l.bf16 %v6666_v9 }
  0x22   : > { %v345_v30 = vsel %vm327_vm0, %v343_v2, %v344_v18  ;;  %v346_v33 = vrot.slane %v8341_v20, 1  ;;  %5768 = vmatmul.mubr.msk.f32.gmra.mrb[4].mxu1 %vm410_vm1, %v342_v1  ;;  %v2023_v41 = vrot.slane %v8357_v24, 1  ;;  %v8354_v48 = vunpack.c.l.bf16 %v6676_v21  ;;  %v6719_v2 = vld [vmem:[%s6535_s25 + $0x54] sm:$0xff]  }
  0x23   : > { %5968 = vmatmul.mubr.msk.f32.gmra.mrb[4].mxu0 %vm410_vm1, %v2019_v17  ;;  %v2025_v44 = vrot.slane %v1921_v27, 1  ;;  %v2026_v45 = vrot.slane %v8356_v28, 1  ;;  %5770 = vmatprep.mubr.msk.f32.mxu1 %vm410_vm1, %v345_v30  ;;  %v2022_v50 = vsel %vm327_vm0, %v2020_v23, %v2021_v32  ;;  %v351_v53 = vrot.slane %v8347_v38, 1  ;;  %v6729_v30 = vld [vmem:[%s6535_s25 + $0x50] sm:$0x1] }
  0x24   : > { %v347_v52 = vsel %vm327_vm0, %v344_v18, %v346_v33  ;;  %v8345_v54 = vunpack.c.l.bf16 %v6683_v29  ;;  %5970 = vmatprep.mubr.msk.f32.mxu0 %vm410_vm1, %v2022_v50  ;;  %v2024_v59 = vsel %vm327_vm0, %v2021_v32, %v2023_v41  ;;  %v2028_v0 = vrot.slane %v8354_v48, 1  ;;  %v6790_v48 = vld [vmem:[%s6535_s25 + $0x68] sm:$0x1] }
  0x25   : > { %v2027_v60 = vsel %vm327_vm0, %v2025_v44, %v2026_v45  ;;  %v6716_v1 = vunpack.c.h.bf16 %v6683_v29  ;;  %v352_v17 = vsel %vm327_vm0, %v2021_v32, %v351_v53  ;;  %v6724_v23 = vunpack.c.l.bf16 %v5440_v49  ;;  %v6738_v53 = vld [vmem:[%s6535_s25 + $0x5c] sm:$0x1] }
  0x26   : > { %v353_v18 = vrot.slane %v8345_v54, 1  ;;  %v6726_v27 = vunpack.c.h.bf16 %v5440_v49  ;;  %5771 = vmatmul.mubr.msk.f32.gmra.mrb[6].mxu1 %vm410_vm1, %v347_v52  ;;  %v2029_v33 = vsel %vm327_vm0, %v2026_v45, %v2028_v0  ;;  %v8349_v32 = vunpack.c.l.bf16 %v6705_v55  ;;  %v6747_v0 = vld [vmem:[%s6535_s25 + $0x54] sm:$0xff]  }
  0x27   : > { %5971 = vmatmul.mubr.msk.f32.gmra.mrb[6].mxu0 %vm410_vm1, %v2024_v59  ;;  %v354_v41 = vrot.slane %v6716_v1, 1  ;;  %v8353_v44 = vunpack.c.l.bf16 %v6708_v58  ;;  %5773 = vmatprep.mubr.msk.f32.mxu1 %vm410_vm1, %v2022_v50  ;;  %v2030_v49 = vrot.slane %v6724_v23, 1  ;;  %v1927_v45 = vunpack.c.l.bf16 %v6719_v2 }
  0x28   : > { %5973 = vmatprep.mubr.msk.f32.mxu0 %vm410_vm1, %v2027_v60  ;;  %v2031_v52 = vrot.slane %v6726_v27, 1  ;;  %v8352_v59 = vunpack.c.h.bf16 %v6719_v2  ;;  %v356_v47 = vrot.slane %v8349_v32, 1  ;;  %v8351_v60 = vunpack.c.l.bf16 %v6729_v30  ;;  %v6770_v32 = vld [vmem:[%s6535_s25 + $0x68] sm:$0x1] }
  0x29   : > { %v355_v20 = vsel %vm327_vm0, %v353_v18, %v354_v41  ;;  %v2033_v50 = vrot.slane %v8353_v44, 1  ;;  %v2035_v54 = vrot.slane %v1927_v45, 1  ;;  %v8355_v38 = vunpack.c.l.bf16 %v6738_v53 }
  0x2a   : > { %v2032_v13 = vsel %vm327_vm0, %v2030_v49, %v2031_v52  ;;  %v2036_v56 = vrot.slane %v8352_v59, 1  ;;  %5774 = vmatmul.mubr.msk.f32.gmra.mrb[8].mxu1 %vm410_vm1, %v352_v17  ;;  %v357_v18 = vsel %vm327_vm0, %v354_v41, %v356_v47  ;;  %v361_v49 = vrot.slane %v8351_v60, 1  ;;  %v4952_v41 = vld [vmem:[%s6535_s25 + $0xc] sm:$0xe] }
  0x2b   : > { %5974 = vmatmul.mubr.msk.f32.gmra.mrb[8].mxu0 %vm410_vm1, %v2029_v33  ;;  %v8358_v45 = vunpack.c.l.bf16 %v6747_v0  ;;  %5776 = vmatprep.mubr.msk.f32.mxu1 %vm410_vm1, %v355_v20  ;;  %v2034_v7 = vsel %vm327_vm0, %v2031_v52, %v2033_v50  ;;  %v2038_v17 = vrot.slane %v8355_v38, 1  ;;  %v6778_v33 = vunpack.c.h.bf16 %v6747_v0  ;;  %v6793_v50 = vld [vmem:[%s6535_s25 + $0x6c] sm:$0xff]  }
  0x2c   : > { %5976 = vmatprep.mubr.msk.f32.mxu0 %vm410_vm1, %v2032_v13  ;;  %v6780_v47 = vunpack.c.l.bf16 %v5441_v39  ;;  %v2037_v60 = vsel %vm327_vm0, %v2035_v54, %v2036_v56  ;;  %v6786_v44 = vunpack.c.h.bf16 %v5441_v39  ;;  %v8362_v20 = vunpack.c.l.bf16 %v6761_v15 }
  0x2d   : > { %v363_v59 = vrot.slane %v8358_v45, 1  ;;  %v364_v38 = vrot.slane %v6778_v33, 1  ;;  %v8363_v24 = vunpack.c.l.bf16 %v6770_v32  ;;  %v362_v39 = vsel %vm327_vm0, %v2031_v52, %v361_v49  ;;  %v4953_v49 = vld [vmem:[%s6535_s25 + $0x18] sm:$0xe]  ;;  %v4954_v52 = vld [vmem:[%s6535_s25 + $0x24] sm:$0xe] }
  0x2e   : > { %v2040_v28 = vrot.slane %v6780_v47, 1  ;;  %5777 = vmatmul.mubr.msk.f32.gmra.mrb[10].mxu1 %vm410_vm1, %v357_v18  ;;  %v2039_v54 = vsel %vm327_vm0, %v2036_v56, %v2038_v17  ;;  %v2041_v45 = vrot.slane %v6786_v44, 1  ;;  %v2424_v51 = vunpack.c.l.bf16 %v4952_v41  ;;  %v6813_v56 = vld [vmem:[%s6535_s25 + $0x74] sm:$0x1] }
  0x2f   : > { %5977 = vmatmul.mubr.msk.f32.gmra.mrb[10].mxu0 %vm410_vm1, %v2034_v7  ;;  %5779 = vmatprep.mubr.msk.f32.mxu1 %vm410_vm1, %v2032_v13  ;;  %v366_v46 = vrot.slane %v8362_v20, 1  ;;  %v2043_v18 = vrot.slane %v8363_v24, 1  ;;  %v8364_v7 = vunpack.c.l.bf16 %v6790_v48  ;;  %8440 = vst [vmem:[#allocation8_spill] sm:$0xff] %v6813_v56  ;;  %v365_v17 = vsel %vm327_vm0, %v363_v59, %v364_v38 }
  0x30   : > { %5979 = vmatprep.mubr.msk.f32.mxu0 %vm410_vm1, %v2037_v60  ;;  %v2042_v13 = vsel %vm327_vm0, %v2040_v28, %v2041_v45  ;;  %v2456_v41 = vrot.slane %v2424_v51, 2  ;;  %v2457_v60 = vrot.slane %v1910_v10, 2  ;;  %v2459_v20 = vrot.slane %v1911_v14, 2 }
  0x31   : > { %v6823_v24 = vunpack.c.h.bf16 %v6793_v50  ;;  %v371_v51 = vrot.slane %v8364_v7, 1  ;;  %v8441_v5 = vunpack.c.l.bf16 %v6793_v50  ;;  %v2425_v28 = vunpack.c.l.bf16 %v4953_v49 }
  0x32   : > { %5780 = vmatmul.mubr.msk.f32.gmra.mrb[12].mxu1 %vm410_vm1, %v362_v39  ;;  %v367_v14 = vsel %vm327_vm0, %v364_v38, %v366_v46  ;;  %v2044_v59 = vsel %vm327_vm0, %v2041_v45, %v2043_v18  ;;  %v2458_v7 = vsel %vm1037_vm2, %v2456_v41, %v2457_v60  ;;  %v6841_v15 = vunpack.c.h.bf16 %v5427_v40  ;;  %v4955_v38 = vld [vmem:[%s6535_s25 + $0x30] sm:$0xe] }
  0x33   : > { %5980 = vmatmul.mubr.msk.f32.gmra.mrb[12].mxu0 %vm410_vm1, %v2039_v54  ;;  %v373_v10 = vrot.slane %v8441_v5, 1  ;;  %5782 = vmatprep.mubr.msk.f32.mxu1 %vm410_vm1, %v365_v17  ;;  %v374_v39 = vrot.slane %v6823_v24, 1  ;;  %v6838_v54 = vunpack.c.l.bf16 %v5427_v40  ;;  %v2426_v49 = vunpack.c.l.bf16 %v4954_v52  ;;  %v6844_v5 = vld [vmem:[%s6535_s25 + $0x80] sm:$0x1] }
  0x34   : > { %5982 = vmatprep.mubr.msk.f32.mxu0 %vm410_vm1, %v2042_v13  ;;  %8442 = vst [vmem:[#allocation9_spill] sm:$0xff] %v6844_v5  ;;  %v2460_v17 = vsel %vm1037_vm2, %v2457_v60, %v2459_v20  ;;  %v2461_v55 = vrot.slane %v2425_v28, 2  ;;  %v6851_v46 = vrot.slane %v6597_v35, 2  ;;  %v372_v40 = vsel %vm327_vm0, %v2041_v45, %v371_v51  ;;  %v6871_v51 = vld [vmem:[%s6535_s25 + $0x8c] sm:$0x1] }
  0x35   : > { %v375_v18 = vsel %vm327_vm0, %v373_v10, %v374_v39  ;;  %v8444_v52 = vunpack.c.l.bf16 %v6813_v56  ;;  %v8445_v20 = vunpack.c.l.bf16 %v6578_v25  ;;  %v378_v28 = vrot.slane %v6838_v54, 1  ;;  %8446 = vst [vmem:[#allocation11_spill] sm:$0xff] %v6871_v51  ;;  %v5428_v10 = vld [vmem:[%s6535_s25 + $0x90] sm:$0xff]   ;;  %v4956_v56 = vld [vmem:[%s6535_s25 + $0x3c] sm:$0xe] }
  0x36   : > { %8443 = vst [vmem:[#allocation10_spill] sm:$0xff] %v6851_v46  ;;  %5783 = vmatmul.mubr.msk.f32.gmra.mrb[14].mxu1 %vm410_vm1, %v367_v14  ;;  %v6868_v45 = vunpack.c.h.bf16 %v6847_v11  ;;  %v2466_v25 = vrot.slane %v2426_v49, 2  ;;  %v2463_v14 = vsel %vm1037_vm2, %v2461_v55, %v6851_v46  ;;  %v8450_v31 = vunpack.c.l.bf16 %v6600_v36 }
  0x37   : > { %5983 = vmatmul.mubr.msk.f32.gmra.mrb[14].mxu0 %vm410_vm1, %v2044_v59  ;;  %v376_v41 = vrot.slane %v8444_v52, 1  ;;  %v2464_v60 = vrot.slane %v8445_v20, 2  ;;  %5785 = vmatprep.mubr.msk.f32.mxu1 %vm410_vm1, %v2042_v13  ;;  %v6875_v52 = vrot.slane %v6841_v15, 1  ;;  %v8448_v13 = vunpack.c.h.bf16 %v6581_v26 }
  0x38   : > { %6011 = vmatprep.mubr.msk.f32.mxu0 %vm410_vm1, %v2458_v7  ;;  %v2427_v7 = vunpack.c.l.bf16 %v4955_v38  ;;  %v8449_v59 = vunpack.c.l.bf16 %v6844_v5  ;;  %v2469_v22 = vrot.slane %v8450_v31, 2  ;;  %v8451_v26 = vunpack.c.l.bf16 %v6847_v11 }
  0x39   : > { %8447 = vst [vmem:[#allocation12_spill] sm:$0xff] %v6875_v52  ;;  %v2467_v20 = vrot.slane %v8448_v13, 2  ;;  %v384_v55 = vrot.slane %v6868_v45, 1  ;;  %v377_v31 = vsel %vm327_vm0, %v374_v39, %v376_v41  ;;  %v2465_v36 = vsel %vm1037_vm2, %v6851_v46, %v2464_v60  ;;  %v6921_v60 = vld [vmem:[%s6535_s25 + $0x9c] sm:$0xff]  }
  0x3a   : > { %v381_v57 = vrot.slane %v8449_v59, 1  ;;  %5786 = vmatmul.mubr.msk.f32.gmra.mrb[16].mxu1 %vm410_vm1, %v372_v40  ;;  %v383_v49 = vrot.slane %v8451_v26, 1  ;;  %v6897_v59 = vunpack.c.l.bf16 %v5428_v10  ;;  %v2428_v40 = vunpack.c.l.bf16 %v4956_v56  ;;  %v4959_v46 = vld [vmem:[%s6535_s25 + $0x60] sm:$0xe] }
  0x3b   : > { %6012 = vmatmul.mubr.msk.f32.vlgmr.msra.gmra.mrb[0].mxu0 %vm410_vm1, %v2460_v17  ;;  %5788 = vmatprep.mubr.msk.f32.mxu1 %vm410_vm1, %v375_v18  ;;  %v6904_v17 = vunpack.c.h.bf16 %v5428_v10  ;;  %v380_v13 = vsel %vm327_vm0, %v378_v28, %v6875_v52  ;;  %v2468_v26 = vsel %vm1037_vm2, %v2466_v25, %v2467_v20  ;;  %v6911_v38 = vrot.slane %v6672_v19, 2  ;;  %v6914_v18 = vld [vmem:[%s6535_s25 + $0x98] sm:$0x1]  ;;  %v4957_v28 = vld [vmem:[%s6535_s25 + $0x48] sm:$0xe] }
  0x3c   : > { %6060 = vmatpush3.msra.mxu0 %v6605_v37  ;;  %6014 = vmatprep.mubr.msk.f32.mxu0 %vm410_vm1, %v2463_v14  ;;  %v2471_v37 = vrot.slane %v2427_v7, 2  ;;  %8452 = vst [vmem:[#allocation13_spill] sm:$0xff] %v6914_v18  ;;  %v2470_v39 = vsel %vm1037_vm2, %v2467_v20, %v2469_v22  ;;  %v8453_v56 = vunpack.c.l.bf16 %v6652_v62  ;;  %v382_v14 = vsel %vm327_vm0, %v6875_v52, %v381_v57  ;;  %v6933_v20 = vld [vmem:[%s6535_s25 + $0xa4] sm:$0x1]  ;;  %v4958_v52 = vld [vmem:[%s6535_s25 + $0x54] sm:$0xe] }
  0x3d   : > { %6109 = vmatprep.subr.mxu0 %v6889_v6  ;;  %v385_v10 = vsel %vm327_vm0, %v383_v49, %v384_v55  ;;  %v8454_v25 = vunpack.c.l.bf16 %v6871_v51  ;;  %v388_v62 = vrot.slane %v6897_v59, 1  ;;  %8455 = vst [vmem:[#allocation14_spill] sm:$0xff] %v6933_v20  ;;  %v6938_v7 = vrot.slane %v6904_v17, 1 }
  0x3e   : > { %v2474_v41 = vrot.slane %v8453_v56, 2  ;;  %5789 = vmatmul.mubr.msk.f32.gmra.mrb[18].mxu1 %vm410_vm1, %v377_v31  ;;  %v2476_v31 = vrot.slane %v2428_v40, 2  ;;  %v5429_v56 = vld [vmem:[%s6535_s25 + $0xa8] sm:$0xff]   ;;  %v8458_v5 = vunpack.c.l.bf16 %v6676_v21  ;;  %v2430_v49 = vunpack.c.l.bf16 %v4958_v52 }
  0x3f   : > { %6015 = vmatmul.mubr.msk.f32.gmra.mrb[2].mxu0 %vm410_vm1, %v2465_v36  ;;  %v386_v22 = vrot.slane %v8454_v25, 1  ;;  %5791 = vmatprep.mubr.msk.f32.mxu1 %vm410_vm1, %v380_v13  ;;  %8456 = vst [vmem:[#allocation15_spill] sm:$0xff] %v6938_v7  ;;  %v8457_v36 = vunpack.c.h.bf16 %v6655_v63  ;;  %v2473_v25 = vsel %vm1037_vm2, %v2471_v37, %v6911_v38  ;;  %v6949_v13 = vunpack.c.h.bf16 %v6921_v60 }
  0x40   : > { %6017 = vmatprep.mubr.msk.f32.mxu0 %vm410_vm1, %v2468_v26  ;;  %v2429_v26 = vunpack.c.l.bf16 %v4957_v28  ;;  %v2479_v40 = vrot.slane %v8458_v5, 2  ;;  %v2475_v37 = vsel %vm1037_vm2, %v6911_v38, %v2474_v41  ;;  %v6960_v51 = vunpack.c.h.bf16 %v5429_v56 }
  0x41   : > { %v2477_v57 = vrot.slane %v8457_v36, 2  ;;  %v6958_v36 = vunpack.c.l.bf16 %v5429_v56  ;;  %v387_v21 = vsel %vm327_vm0, %v384_v55, %v386_v22  ;;  %v390_v5 = vsel %vm327_vm0, %v388_v62, %v6938_v7  ;;  %v6980_v55 = vld [vmem:[%s6535_s25 + $0xb0] sm:$0x1] }
  0x42   : > { %5792 = vmatmul.mubr.msk.f32.gmra.mrb[20].mxu1 %vm410_vm1, %v382_v14  ;;  %v8459_v28 = vunpack.c.l.bf16 %v6914_v18  ;;  %v6971_v14 = vld [vmem:[%s6535_s25 + $0xb4] sm:$0xff]   ;;  %v8460_v56 = vunpack.c.l.bf16 %v6921_v60  ;;  %v394_v63 = vrot.slane %v6949_v13, 1  ;;  %8461 = vst [vmem:[#allocation16_spill] sm:$0xff] %v6980_v55  ;;  %v8462_v62 = vunpack.c.l.bf16 %v6933_v20 }
  0x43   : > { %6018 = vmatmul.mubr.msk.f32.gmra.mrb[4].mxu0 %vm410_vm1, %v2470_v39  ;;  %5794 = vmatprep.mubr.msk.f32.mxu1 %vm410_vm1, %v385_v10  ;;  %v2478_v39 = vsel %vm1037_vm2, %v2476_v31, %v2477_v57  ;;  %v2481_v10 = vrot.slane %v2429_v26, 2  ;;  %v2480_v22 = vsel %vm1037_vm2, %v2477_v57, %v2479_v40  ;;  %v398_v26 = vrot.slane %v6958_v36, 1 }
  0x44   : > { %6020 = vmatprep.mubr.msk.f32.mxu0 %vm410_vm1, %v2473_v25  ;;  %v391_v41 = vrot.slane %v8459_v28, 1  ;;  %v393_v52 = vrot.slane %v8460_v56, 1  ;;  %v6977_v25 = vrot.slane %v6726_v27, 2  ;;  %v396_v31 = vrot.slane %v8462_v62, 1 }
  0x45   : > { %v8463_v28 = vunpack.c.l.bf16 %v6708_v58  ;;  %v6992_v56 = vrot.slane %v6960_v51, 1  ;;  %v2486_v57 = vrot.slane %v2430_v49, 2  ;;  %v8465_v40 = vunpack.c.h.bf16 %v6719_v2 }
  0x46   : > { %5795 = vmatmul.mubr.msk.f32.gmra.mrb[22].mxu1 %vm410_vm1, %v387_v21  ;;  %v392_v58 = vsel %vm327_vm0, %v6938_v7, %v391_v41  ;;  %v395_v20 = vsel %vm327_vm0, %v393_v52, %v394_v63  ;;  %v2483_v2 = vsel %vm1037_vm2, %v2481_v10, %v6977_v25  ;;  %v2431_v49 = vunpack.c.l.bf16 %v4959_v46  ;;  %v4960_v41 = vld [vmem:[%s6535_s25 + $0x6c] sm:$0xe] }
  0x47   : > { %v2484_v18 = vrot.slane %v8463_v28, 2  ;;  %6021 = vmatmul.mubr.msk.f32.gmra.mrb[6].mxu0 %vm410_vm1, %v2475_v37  ;;  %8464 = vst [vmem:[#allocation17_spill] sm:$0xff] %v6992_v56  ;;  %v2487_v62 = vrot.slane %v8465_v40, 2  ;;  %5797 = vmatprep.mubr.msk.f32.mxu1 %vm410_vm1, %v390_v5  ;;  %v7003_v28 = vunpack.c.h.bf16 %v6971_v14  ;;  %v7009_v40 = vld [vmem:[%s6535_s25 + $0xbc] sm:$0x1]  ;;  %v397_v21 = vsel %vm327_vm0, %v394_v63, %v396_v31 }
  0x48   : > { %6023 = vmatprep.mubr.msk.f32.mxu0 %vm410_vm1, %v2478_v39  ;;  %8467 = vst [vmem:[#allocation19_spill] sm:$0xff] %v7009_v40  ;;  %v7014_v39 = vld [vmem:[%s6535_s25 + $0x6c] sm:$0xff]   ;;  %v400_v52 = vsel %vm327_vm0, %v398_v26, %v6992_v56  ;;  %v8469_v10 = vunpack.c.l.bf16 %v6738_v53  ;;  %v8389_v31 = vunpack.c.l.bf16 %v7009_v40  ;;  %v2491_v26 = vrot.slane %v2431_v49, 2 }
  0x49   : > { %8466 = vst [vmem:[#allocation18_spill] sm:$0xff] %v7003_v28  ;;  %v2485_v5 = vsel %vm1037_vm2, %v6977_v25, %v2484_v18  ;;  %8468 = vst [vmem:[#allocation20_spill] sm:$0xff] %v7014_v39  ;;  %v2488_v46 = vsel %vm1037_vm2, %v2486_v57, %v2487_v62  ;;  %v8470_v18 = vunpack.c.l.bf16 %v6980_v55  ;;  %v404_v63 = vrot.slane %v7003_v28, 1  ;;  %v7059_v55 = vld [vmem:[%s6535_s25 + $0x80] sm:$0x1] }
  0x4a   : > { %5798 = vmatmul.mubr.msk.f32.gmra.mrb[24].mxu1 %vm410_vm1, %v392_v58  ;;  %v2489_v37 = vrot.slane %v8469_v10, 2  ;;  %v7034_v57 = vrot.slane %v6786_v44, 2  ;;  %v2432_v10 = vunpack.c.l.bf16 %v4960_v41  ;;  %v406_v41 = vrot.slane %v8389_v31, 1  ;;  %8475 = vst [vmem:[#allocation22_spill] sm:$0xff] %v7059_v55  ;;  %v7548_v40 = vld [vmem:[%s6535_s25 + $0x8c] sm:$0x1] }
  0x4b   : > { %6024 = vmatmul.mubr.msk.f32.gmra.mrb[8].mxu0 %vm410_vm1, %v2480_v22  ;;  %5800 = vmatprep.mubr.msk.f32.mxu1 %vm410_vm1, %v395_v20  ;;  %v401_v58 = vrot.slane %v8470_v18, 1  ;;  %v8471_v22 = vunpack.c.l.bf16 %v6971_v14  ;;  %v7038_v20 = vld [vmem:[%s6535_s25 + $0x74] sm:$0x1]  ;;  %v4961_v18 = vld [vmem:[%s6535_s25 + $0x78] sm:$0xe] }
  0x4c   : > { %6026 = vmatprep.mubr.msk.f32.mxu0 %vm410_vm1, %v2483_v2  ;;  %8472 = vst [vmem:[#allocation21_spill] sm:$0xff] %v7038_v20  ;;  %v2490_v2 = vsel %vm1037_vm2, %v2487_v62, %v2489_v37  ;;  %v8385_v53 = vunpack.c.l.bf16 %v7038_v20  ;;  %v2493_v62 = vsel %vm1037_vm2, %v2491_v26, %v7034_v57  ;;  %v2496_v37 = vrot.slane %v2432_v10, 2  ;;  %v7448_v20 = vld [vmem:[%s6535_s25 + $0x68] sm:$0x1] }
  0x4d   : > { %v403_v7 = vrot.slane %v8471_v22, 1  ;;  %v402_v49 = vsel %vm327_vm0, %v6992_v56, %v401_v58  ;;  %v8473_v22 = vunpack.c.l.bf16 %v6770_v32  ;;  %v2433_v58 = vunpack.c.l.bf16 %v4961_v18  ;;  %v7062_v56 = vld [vmem:[%s6535_s25 + $0x84] sm:$0xff]   ;;  %8517 = vst [vmem:[#allocation35_spill] sm:$0xff] %v7448_v20 }
  0x4e   : > { %5801 = vmatmul.mubr.msk.f32.gmra.mrb[26].mxu1 %vm410_vm1, %v397_v21  ;;  %8476 = vst [vmem:[#allocation23_spill] sm:$0xff] %v7062_v56  ;;  %v4962_v32 = vld [vmem:[%s6535_s25 + $0x84] sm:$0xe]  ;;  %v2499_v10 = vrot.slane %v8385_v53, 2  ;;  %v8387_v18 = vunpack.c.l.bf16 %v7059_v55  ;;  %v7208_v55 = vld [vmem:[%s6535_s25 + $0xc8] sm:$0x1] }
  0x4f   : > { %6027 = vmatmul.mubr.msk.f32.gmra.mrb[10].mxu0 %vm410_vm1, %v2485_v5  ;;  %5803 = vmatprep.mubr.msk.f32.mxu1 %vm410_vm1, %v400_v52  ;;  %v2494_v21 = vrot.slane %v8473_v22, 2  ;;  %v405_v5 = vsel %vm327_vm0, %v403_v7, %v404_v63  ;;  %v8474_v52 = vunpack.c.h.bf16 %v7014_v39  ;;  %v407_v7 = vsel %vm327_vm0, %v404_v63, %v406_v41  ;;  %v4963_v41 = vld [vmem:[%s6535_s25 + $0x90] sm:$0xe]  ;;  %8492 = vst [vmem:[#allocation33_spill] sm:$0xff] %v7208_v55 }
  0x50   : > { %6029 = vmatprep.mubr.msk.f32.mxu0 %vm410_vm1, %v2488_v46  ;;  %v7081_v63 = vrot.slane %v6841_v15, 2  ;;  %v2435_v53 = vunpack.c.l.bf16 %v4963_v41  ;;  %v7122_v41 = vrot.slane %v6904_v17, 2 }
  0x51   : > { %v2497_v46 = vrot.slane %v8474_v52, 2  ;;  %v2495_v26 = vsel %vm1037_vm2, %v7034_v57, %v2494_v21  ;;  %v7078_v52 = vld [vmem:[%s6535_s25 + $0x8c] sm:$0x1]  ;;  %v8478_v21 = vunpack.c.l.bf16 %v6538_v4 }
  0x52   : > { %5804 = vmatmul.mubr.msk.f32.gmra.mrb[28].mxu1 %vm410_vm1, %v402_v49  ;;  %v8386_v49 = vunpack.c.h.bf16 %v7062_v56  ;;  %8477 = vst [vmem:[#allocation24_spill] sm:$0xff] %v7078_v52 }
  0x53   : > { %6030 = vmatmul.mubr.msk.f32.gmra.mrb[12].mxu0 %vm410_vm1, %v2490_v2  ;;  %5806 = vmatprep.mubr.msk.f32.mxu1 %vm410_vm1, %v405_v5  ;;  %v2498_v22 = vsel %vm1037_vm2, %v2496_v37, %v2497_v46  ;;  %v2434_v2 = vunpack.c.l.bf16 %v4962_v32  ;;  %v2501_v5 = vrot.slane %v2433_v58, 2  ;;  %v2504_v37 = vrot.slane %v8387_v18, 2  ;;  %v7126_v18 = vld [vmem:[%s6535_s25 + $0xa4] sm:$0x1] }
  0x54   : > { %6032 = vmatprep.mubr.msk.f32.mxu0 %vm410_vm1, %v2493_v62  ;;  %v2500_v62 = vsel %vm1037_vm2, %v2497_v46, %v2499_v10  ;;  %v8388_v58 = vunpack.c.l.bf16 %v7078_v52  ;;  %v7108_v46 = vld [vmem:[%s8338_s1 + $0x18] sm:$0xff]  ;;  %v8481_v10 = vunpack.c.l.bf16 %v6556_v12  ;;  %8482 = vst [vmem:[#allocation27_spill] sm:$0xff] %v7126_v18  ;;  %v2511_v12 = vrot.slane %v2435_v53, 2  ;;  %v7148_v52 = vld [vmem:[%s6535_s25 + $0xb0] sm:$0x1] }
  0x55   : > { %v2506_v32 = vrot.slane %v2434_v2, 2  ;;  %v2503_v4 = vsel %vm1037_vm2, %v2501_v5, %v7081_v63  ;;  %v2505_v2 = vsel %vm1037_vm2, %v7081_v63, %v2504_v37  ;;  %8483 = vst [vmem:[#allocation28_spill] sm:$0xff] %v7148_v52 }
  0x56   : > { %5807 = vmatmul.mubr.msk.f32.gmra.mrb[30].mxu1 %vm410_vm1, %v407_v7  ;;  %v2507_v7 = vrot.slane %v8386_v49, 2  ;;  %v2509_v5 = vrot.slane %v8388_v58, 2  ;;  %v7151_v58 = vld [vmem:[%s6535_s25 + $0xb4] sm:$0xff]  }
  0x57   : > { %6033 = vmatmul.mubr.msk.f32.gmra.mrb[14].mxu0 %vm410_vm1, %v2495_v26  ;;  %5811 = vmatprep.mubr.msk.f32.mxu1 %vm410_vm1, %v8478_v21  ;;  %v7097_v26 = vld [vmem:[%s6535_s25 + $0x98] sm:$0x1]  ;;  %v7102_v21 = vld [vmem:[%s6535_s25 + $0x9c] sm:$0xff]   ;;  %8484 = vst [vmem:[#allocation29_spill] sm:$0xff] %v7151_v58 }
  0x58   : > { %6035 = vmatprep.mubr.msk.f32.mxu0 %vm410_vm1, %v2498_v22  ;;  %8479 = vst [vmem:[#allocation25_spill] sm:$0xff] %v7097_v26  ;;  %8480 = vst [vmem:[#allocation26_spill] sm:$0xff] %v7102_v21  ;;  %v4964_v22 = vld [vmem:[%s6535_s25 + $0x9c] sm:$0xe]  ;;  %v8392_v49 = vunpack.c.l.bf16 %v7097_v26  ;;  %v2510_v53 = vsel %vm1037_vm2, %v2507_v7, %v2509_v5  ;;  %v7168_v26 = vrot.slane %v6960_v51, 2 }
  0x59   : > { %v2436_v37 = vunpack.c.l.bf16 %v4964_v22  ;;  %v2513_v22 = vsel %vm1037_vm2, %v2511_v12, %v7122_v41  ;;  %v8486_v12 = vunpack.c.l.bf16 %v6666_v9  ;;  %v8398_v9 = vunpack.c.h.bf16 %v7151_v58 }
  0x5a   : > { %5812 = vmatmul.mubr.msk.f32.vlgmr.msra.gmra.mrb[0].mxu1 %vm410_vm1, %v6548_v8 }
  0x5b   : > { %6036 = vmatmul.mubr.msk.f32.gmra.mrb[16].mxu0 %vm410_vm1, %v2500_v62  ;;  %5860 = vmatpush3.msra.mxu1 %v6619_v43  ;;  %v2508_v43 = vsel %vm1037_vm2, %v2506_v32, %v2507_v7  ;;  %v8391_v62 = vunpack.c.h.bf16 %v7102_v21  ;;  %v2514_v32 = vrot.slane %v8392_v49, 2  ;;  %v2516_v31 = vrot.slane %v2436_v37, 2 }
  0x5c   : > { %5814 = vmatprep.mubr.msk.f32.mxu1 %vm410_vm1, %v8481_v10  ;;  %6038 = vmatprep.mubr.msk.f32.mxu0 %vm410_vm1, %v2503_v4  ;;  %v4965_v10 = vld [vmem:[%s6535_s25 + $0xa8] sm:$0xe]  ;;  %v8485_v7 = vunpack.c.l.bf16 %v7126_v18  ;;  %v1061_v37 = vrot.slane %v8486_v12, 2  ;;  %v7174_v18 = vld [vmem:[%s6535_s25 + $0xbc] sm:$0x1] }
  0x5d   : > { %5909 = vmatprep.subr.mxu1 %v7108_v46  ;;  %v2437_v4 = vunpack.c.l.bf16 %v4965_v10  ;;  %v8487_v10 = vunpack.c.l.bf16 %v6614_v42  ;;  %8488 = vst [vmem:[#allocation30_spill] sm:$0xff] %v7174_v18  ;;  %v7177_v42 = vld [vmem:[%s6535_s25 + $0xc0] sm:$0xff]  }
  0x5e   : > { %5815 = vmatmul.mubr.msk.f32.gmra.mrb[2].mxu1 %vm410_vm1, %v6562_v16  ;;  %v2519_v5 = vrot.slane %v8485_v7, 2  ;;  %8489 = vst [vmem:[#allocation31_spill] sm:$0xff] %v7177_v42 }
  0x5f   : > { %6039 = vmatmul.mubr.msk.f32.gmra.mrb[18].mxu0 %vm410_vm1, %v2505_v2  ;;  %5817 = vmatprep.mubr.msk.f32.mxu1 %vm410_vm1, %v6595_v34  ;;  %v2517_v2 = vrot.slane %v8391_v62, 2  ;;  %v2515_v62 = vsel %vm1037_vm2, %v7122_v41, %v2514_v32  ;;  %v2521_v49 = vrot.slane %v2437_v4, 2  ;;  %v4967_v32 = vld [vmem:[%s6535_s25 + $0xc0] sm:$0xe]  ;;  %v8490_v4 = vunpack.c.l.bf16 %v6729_v30 }
  0x60   : > { %6041 = vmatprep.mubr.msk.f32.mxu0 %vm410_vm1, %v2508_v43  ;;  %v4966_v43 = vld [vmem:[%s6535_s25 + $0xb4] sm:$0xe]  ;;  %v7197_v30 = vunpack.c.h.bf16 %v7177_v42 }
  0x61   : > { %v2518_v7 = vsel %vm1037_vm2, %v2516_v31, %v2517_v2  ;;  %v2438_v12 = vunpack.c.l.bf16 %v4966_v43  ;;  %v2520_v31 = vsel %vm1037_vm2, %v2517_v2, %v2519_v5  ;;  %v2527_v5 = vrot.slane %v8398_v9, 2 }
  0x62   : > { %5818 = vmatmul.mubr.msk.f32.gmra.mrb[4].mxu1 %vm410_vm1, %v6597_v35  ;;  %8491 = vst [vmem:[#allocation32_spill] sm:$0xff] %v7197_v30 }
  0x63   : > { %6042 = vmatmul.mubr.msk.f32.gmra.mrb[20].mxu0 %vm410_vm1, %v2510_v53  ;;  %5820 = vmatprep.mubr.msk.f32.mxu1 %vm410_vm1, %v8487_v10  ;;  %v8396_v53 = vunpack.c.l.bf16 %v7148_v52  ;;  %v1071_v10 = vrot.slane %v8490_v4, 2  ;;  %v2526_v2 = vrot.slane %v2438_v12, 2  ;;  %v8495_v12 = vunpack.c.l.bf16 %v7174_v18 }
  0x64   : > { %6044 = vmatprep.mubr.msk.f32.mxu0 %vm410_vm1, %v2513_v22  ;;  %v7181_v22 = vsel %vm1037_vm2, %v6911_v38, %v1061_v37 }
  0x65   : > { %v2524_v43 = vrot.slane %v8396_v53, 2  ;;  %v7201_v4 = vsel %vm1037_vm2, %v6977_v25, %v1071_v10  ;;  %v8493_v53 = vunpack.c.l.bf16 %v6790_v48  ;;  %v8494_v10 = vunpack.c.l.bf16 %v6683_v29 }
  0x66   : > { %5821 = vmatmul.mubr.msk.f32.gmra.mrb[6].mxu1 %vm410_vm1, %v6649_v61  ;;  %v8397_v48 = vunpack.c.l.bf16 %v7208_v55  ;;  %v1054_v55 = vrot.slane %v6649_v61, 2 }
  0x67   : > { %6045 = vmatmul.mubr.msk.f32.gmra.mrb[22].mxu0 %vm410_vm1, %v2515_v62  ;;  %5823 = vmatprep.mubr.msk.f32.mxu1 %vm410_vm1, %v6663_v3  ;;  %v2523_v62 = vsel %vm1037_vm2, %v2521_v49, %v7168_v26  ;;  %v1081_v37 = vrot.slane %v8493_v53, 2  ;;  %v2525_v49 = vsel %vm1037_vm2, %v7168_v26, %v2524_v43 }
  0x68   : > { %6047 = vmatprep.mubr.msk.f32.mxu0 %vm410_vm1, %v2518_v7  ;;  %v2439_v7 = vunpack.c.l.bf16 %v4967_v32  ;;  %v2529_v32 = vrot.slane %v8495_v12, 2 }
  0x69   : > { %v7226_v53 = vsel %vm1037_vm2, %v7034_v57, %v1081_v37  ;;  %v2534_v37 = vrot.slane %v8397_v48, 2 }
  0x6a   : > { %5824 = vmatmul.mubr.msk.f32.gmra.mrb[8].mxu1 %vm410_vm1, %v6672_v19  ;;  %v2531_v29 = vrot.slane %v2439_v7, 2  ;;  %v2530_v43 = vsel %vm1037_vm2, %v2527_v5, %v2529_v32  ;;  %v5003_v7 = vld [vmem:[%s6535_s25 + $0x24] sm:$0xff]   ;;  %v8498_v32 = vunpack.c.l.bf16 %v6793_v50  ;;  %v8499_v50 = vunpack.c.l.bf16 %v6847_v11 }
  0x6b   : > { %6048 = vmatmul.mubr.msk.f32.gmra.mrb[24].mxu0 %vm410_vm1, %v2520_v31  ;;  %5826 = vmatprep.mubr.msk.f32.mxu1 %vm410_vm1, %v8494_v10  ;;  %v2528_v31 = vsel %vm1037_vm2, %v2526_v2, %v2527_v5  ;;  %v7230_v10 = vrot.slane %v7197_v30, 2  ;;  %v8497_v2 = vunpack.c.l.bf16 %v6747_v0  ;;  %v2894_v0 = vunpack.c.l.bf16 %v5003_v7 }
  0x6c   : > { %6050 = vmatprep.mubr.msk.f32.mxu0 %vm410_vm1, %v2523_v62  ;;  %v2895_v12 = vunpack.c.h.bf16 %v5003_v7  ;;  %v7323_v7 = vld [vmem:[%s6535_s25 + $0x18] sm:$0xff]  }
  0x6d   : > { %8496 = vst [vmem:[#allocation34_spill] sm:$0xff] %v7230_v10  ;;  %v2533_v62 = vsel %vm1037_vm2, %v2531_v29, %v7230_v10  ;;  %v2535_v5 = vsel %vm1037_vm2, %v7230_v10, %v2534_v37  ;;  %v8500_v29 = vunpack.c.l.bf16 %v6921_v60  ;;  %v7318_v60 = vld [vmem:[%s6535_s25 + $0x70] ss:$24 sps:$4 sm:$0xff]   ;;  %v7419_v10 = vld [vmem:[%s6535_s25 + $0x5c] sm:$0x1] }
  0x6e   : > { %5827 = vmatmul.mubr.msk.f32.gmra.mrb[10].mxu1 %vm410_vm1, %v6716_v1 }
  0x6f   : > { %6051 = vmatmul.mubr.msk.f32.gmra.mrb[26].mxu0 %vm410_vm1, %v2525_v49  ;;  %5829 = vmatprep.mubr.msk.f32.mxu1 %vm410_vm1, %v6724_v23  ;;  %v7263_v49 = vld [vmem:[%s8338_s1 + $0x40] sm:$0xff] }
  0x70   : > { %6053 = vmatprep.mubr.msk.f32.mxu0 %vm410_vm1, %v2528_v31  ;;  %v5011_v31 = vld [vmem:[%s6535_s25 + $0x54] sm:$0xff]  }
  0x71   : > { %v2903_v11 = vunpack.c.h.bf16 %v5011_v31 }
  0x72   : > { %5830 = vmatmul.mubr.msk.f32.gmra.mrb[12].mxu1 %vm410_vm1, %v6726_v27 }
  0x73   : > { %6054 = vmatmul.mubr.msk.f32.gmra.mrb[28].mxu0 %vm410_vm1, %v2530_v43  ;;  %5832 = vmatprep.mubr.msk.f32.mxu1 %vm410_vm1, %v8497_v2 }
  0x74   : > { %6056 = vmatprep.mubr.msk.f32.mxu0 %vm410_vm1, %v2533_v62  ;;  %v1039_v62 = vrot.slane %v6548_v8, 2  ;;  %v7336_v8 = vld [vmem:[%s6535_s25 + $0x24] sm:$0xff]  }
  0x76   : > { %5833 = vmatmul.mubr.msk.f32.gmra.mrb[14].mxu1 %vm410_vm1, %v6778_v33 }
  0x77   : > { %6057 = vmatmul.mubr.msk.f32.gmra.mrb[30].mxu0 %vm410_vm1, %v2535_v5  ;;  %5835 = vmatprep.mubr.msk.f32.mxu1 %vm410_vm1, %v6780_v47  ;;  %v991_v5 = vld [vmem:[%s6535_s25 + $0x18] sm:$0xe] }
  0x78   : > { %6061 = vmatprep.mubr.msk.f32.mxu0 %vm410_vm1, %v6595_v34  ;;  %v5007_v34 = vld [vmem:[%s6535_s25 + $0x3c] sm:$0xff]  }
  0x7a   : > { %5836 = vmatmul.mubr.msk.f32.gmra.mrb[16].mxu1 %vm410_vm1, %v6786_v44 }
  0x7b   : > { %6062 = vmatmul.mubr.msk.f32.vlgmr.msra.gmra.mrb[0].mxu0 %vm410_vm1, %v6597_v35  ;;  %5838 = vmatprep.mubr.msk.f32.mxu1 %vm410_vm1, %v8498_v32  ;;  %v2899_v35 = vunpack.c.h.bf16 %v5007_v34 }
  0x7c   : > { %6110 = vmatpush3.msra.mxu0 %v6889_v6  ;;  %6064 = vmatprep.mubr.msk.f32.mxu0 %vm410_vm1, %v2894_v0  ;;  %v2898_v6 = vunpack.c.l.bf16 %v5007_v34  ;;  %v8501_v0 = vld [vmem:[#allocation2_spill] sm:$0xff] }
  0x7d   : > { %6159 = vmatprep.subr.mxu0 %v7263_v49  ;;  %v7328_v34 = vld [vmem:[%s6535_s25 + $0x20] sm:$0x1] }
  0x7e   : > { %5839 = vmatmul.mubr.msk.f32.gmra.mrb[18].mxu1 %vm410_vm1, %v6823_v24 }
  0x7f   : > { %6065 = vmatmul.mubr.msk.f32.gmra.mrb[2].mxu0 %vm410_vm1, %v2895_v12  ;;  %5841 = vmatprep.mubr.msk.f32.mxu1 %vm410_vm1, %v6838_v54  ;;  %v8502_v12 = vunpack.c.l.bf16 %v8501_v0 }
  0x80   : > { %6067 = vmatprep.mubr.msk.f32.mxu0 %vm410_vm1, %v6663_v3  ;;  %v2902_v3 = vunpack.c.l.bf16 %v5011_v31 }
  0x81   : > { %v1041_v32 = vrot.slane %v8502_v12, 2  ;;  %v8401_v12 = vunpack.c.h.bf16 %v7336_v8 }
  0x82   : > { %5842 = vmatmul.mubr.msk.f32.gmra.mrb[20].mxu1 %vm410_vm1, %v6841_v15 }
  0x83   : > { %6068 = vmatmul.mubr.msk.f32.gmra.mrb[4].mxu0 %vm410_vm1, %v6672_v19  ;;  %5844 = vmatprep.mubr.msk.f32.mxu1 %vm410_vm1, %v8499_v50  ;;  %v989_v19 = vld [vmem:[%s6535_s25] sm:$0xe]  ;;  %v8504_v50 = vld [vmem:[#allocation3_spill] sm:$0xff]  ;;  %v1042_v0 = vsel %vm1037_vm2, %v1039_v62, %v1041_v32  ;;  %v7375_v32 = vld [vmem:[%s6535_s25 + $0x44] sm:$0x1] }
  0x84   : > { %6070 = vmatprep.mubr.msk.f32.mxu0 %vm410_vm1, %v2898_v6  ;;  %v1005_v43 = vunpack.c.l.bf16 %v989_v19  ;;  %v8503_v6 = vunpack.c.l.bf16 %v6971_v14  ;;  %v8505_v31 = vunpack.c.l.bf16 %v8504_v50  ;;  %v1007_v19 = vunpack.c.l.bf16 %v991_v5 }
  0x85   : > { %v2911_v5 = vunpack.c.h.bf16 %v7318_v60 }
  0x86   : > { %5845 = vmatmul.mubr.msk.f32.gmra.mrb[22].mxu1 %vm410_vm1, %v6868_v45  ;;  %v1038_v37 = vrot.slane %v1005_v43, 2 }
  0x87   : > { %6071 = vmatmul.mubr.msk.f32.gmra.mrb[6].mxu0 %vm410_vm1, %v2899_v35  ;;  %5847 = vmatprep.mubr.msk.f32.mxu1 %vm410_vm1, %v6897_v59  ;;  %v1044_v35 = vrot.slane %v6562_v16, 2  ;;  %v7356_v16 = vld [vmem:[%s6535_s25 + $0x30] sm:$0xff]  }
  0x88   : > { %6073 = vmatprep.mubr.msk.f32.mxu0 %vm410_vm1, %v6724_v23  ;;  %v990_v23 = vld [vmem:[%s6535_s25 + $0xc] sm:$0xe]  ;;  %v1040_v14 = vsel %vm1037_vm2, %v1038_v37, %v1039_v62  ;;  %v8506_v37 = vld [vmem:[#allocation4_spill] sm:$0xff] }
  0x89   : > { %v1006_v2 = vunpack.c.l.bf16 %v990_v23  ;;  %v2910_v23 = vunpack.c.l.bf16 %v7062_v56 }
  0x8a   : > { %5848 = vmatmul.mubr.msk.f32.gmra.mrb[24].mxu1 %vm410_vm1, %v6904_v17 }
  0x8b   : > { %6074 = vmatmul.mubr.msk.f32.gmra.mrb[8].mxu0 %vm410_vm1, %v6726_v27  ;;  %5850 = vmatprep.mubr.msk.f32.mxu1 %vm410_vm1, %v8500_v29  ;;  %v2906_v27 = vunpack.c.l.bf16 %v7014_v39  ;;  %v7350_v29 = vld [vmem:[%s6535_s25 + $0x2c] sm:$0x1]  ;;  %v1043_v43 = vrot.slane %v1006_v2, 2  ;;  %v8507_v2 = vunpack.c.l.bf16 %v8506_v37  ;;  %v1048_v37 = vrot.slane %v1007_v19, 2 }
  0x8c   : > { %6076 = vmatprep.mubr.msk.f32.mxu0 %vm410_vm1, %v2902_v3  ;;  %v1046_v3 = vrot.slane %v8505_v31, 2 }
  0x8d   : > { %v1051_v31 = vrot.slane %v8507_v2, 2  ;;  %v7388_v2 = vrot.slane %v8401_v12, 2  ;;  %v1045_v62 = vsel %vm1037_vm2, %v1043_v43, %v1044_v35  ;;  %v993_v12 = vld [vmem:[%s6535_s25 + $0x30] sm:$0xe]  ;;  %v7407_v43 = vld [vmem:[%s6535_s25 + $0x50] sm:$0x1] }
  0x8e   : > { %5851 = vmatmul.mubr.msk.f32.gmra.mrb[26].mxu1 %vm410_vm1, %v6949_v13 }
  0x8f   : > { %6077 = vmatmul.mubr.msk.f32.gmra.mrb[10].mxu0 %vm410_vm1, %v2903_v11  ;;  %5853 = vmatprep.mubr.msk.f32.mxu1 %vm410_vm1, %v6958_v36  ;;  %v992_v11 = vld [vmem:[%s6535_s25 + $0x24] sm:$0xe]  ;;  %8508 = vst [vmem:[#allocation2_spill] sm:$0xff] %v7388_v2 }
  0x90   : > { %6079 = vmatprep.mubr.msk.f32.mxu0 %vm410_vm1, %v6780_v47  ;;  %v2907_v47 = vunpack.c.l.bf16 %v7318_v60  ;;  %v1008_v48 = vunpack.c.l.bf16 %v992_v11  ;;  %v7372_v60 = vld [vmem:[%s6535_s25 + $0x3c] sm:$0xff]   ;;  %v7384_v11 = vunpack.c.h.bf16 %v7356_v16 }
  0x91   : > { %v8514_v18 = vunpack.c.h.bf16 %v7372_v60 }
  0x92   : > { %5854 = vmatmul.mubr.msk.f32.gmra.mrb[28].mxu1 %vm410_vm1, %v6960_v51  ;;  %v1053_v61 = vrot.slane %v1008_v48, 2 }
  0x93   : > { %6080 = vmatmul.mubr.msk.f32.gmra.mrb[12].mxu0 %vm410_vm1, %v6786_v44  ;;  %5856 = vmatprep.mubr.msk.f32.mxu1 %vm410_vm1, %v8503_v6  ;;  %v7347_v44 = vunpack.c.h.bf16 %v7323_v7  ;;  %v7362_v6 = vld [vmem:[%s6535_s25 + $0x38] sm:$0x1]  ;;  %v7438_v52 = vrot.slane %v8514_v18, 2  ;;  %v7453_v18 = vld [vmem:[%s8338_s1 + $0x20] sm:$0xff] }
  0x94   : > { %6082 = vmatprep.mubr.msk.f32.mxu0 %vm410_vm1, %v2906_v27  ;;  %v8399_v27 = vunpack.c.l.bf16 %v7328_v34  ;;  %8518 = vst [vmem:[#allocation36_spill] sm:$0xff] %v7453_v18 }
  0x95   : > { %v8404_v50 = vrot.slane %v7347_v44, 2 }
  0x96   : > { %5857 = vmatmul.mubr.msk.f32.gmra.mrb[30].mxu1 %vm410_vm1, %v7003_v28  ;;  %v3877_v9 = vrot.slane %v8399_v27, 2  ;;  %v8513_v27 = vunpack.c.l.bf16 %v7362_v6 }
  0x97   : > { %6083 = vmatmul.mubr.msk.f32.gmra.mrb[14].mxu0 %vm410_vm1, %v2907_v47  ;;  %5861 = vmatprep.mubr.msk.f32.mxu1 %vm410_vm1, %v1040_v14  ;;  %v1047_v47 = vsel %vm1037_vm2, %v1044_v35, %v1046_v3  ;;  %v7393_v14 = vld [vmem:[%s6535_s25 + $0x48] sm:$0xff]   ;;  %v8510_v3 = vunpack.c.l.bf16 %v7350_v29 }
  0x98   : > { %6085 = vmatprep.mubr.msk.f32.mxu0 %vm410_vm1, %v6838_v54  ;;  %v7398_v54 = vsel %vm1037_vm2, %v8404_v50, %v3877_v9  ;;  %v8511_v9 = vld [vmem:[#allocation10_spill] sm:$0xff]  ;;  %v7416_v50 = vld [vmem:[%s6535_s25 + $0x54] sm:$0xff]   ;;  %v7431_v48 = vunpack.c.h.bf16 %v7393_v14 }
  0x99   : > { %8509 = vst [vmem:[#allocation3_spill] sm:$0xff] %v7398_v54  ;;  %v3882_v19 = vrot.slane %v8510_v3, 2  ;;  %v1052_v3 = vsel %vm1037_vm2, %v8511_v9, %v1051_v31  ;;  %v7434_v31 = vld [vmem:[%s6535_s25 + $0x60] sm:$0xff]   ;;  %8515 = vst [vmem:[#allocation10_spill] sm:$0xff] %v7438_v52 }
  0x9a   : > { %5862 = vmatmul.mubr.msk.f32.vlgmr.msra.gmra.mrb[0].mxu1 %vm410_vm1, %v1042_v0  ;;  %v3887_v0 = vrot.slane %v8513_v27, 2  ;;  %v1009_v27 = vunpack.c.l.bf16 %v993_v12 }
  0x9b   : > { %6086 = vmatmul.mubr.msk.f32.gmra.mrb[16].mxu0 %vm410_vm1, %v6841_v15  ;;  %v7423_v35 = vsel %vm1037_vm2, %v7388_v2, %v3882_v19  ;;  %5910 = vmatpush3.msra.mxu1 %v7108_v46  ;;  %v2914_v15 = vunpack.c.l.bf16 %v7102_v21  ;;  %v8516_v19 = vunpack.c.l.bf16 %v7375_v32  ;;  %v1050_v46 = vsel %vm1037_vm2, %v1048_v37, %v8511_v9  ;;  %v7464_v9 = vld [vmem:[%s6535_s25 + $0x6c] sm:$0xff]   ;;  %v7502_v2 = vld [vmem:[%s6535_s25 + $0x80] sm:$0x1] }
  0x9c   : > { %8512 = vst [vmem:[#allocation4_spill] sm:$0xff] %v7423_v35  ;;  %5864 = vmatprep.mubr.msk.f32.mxu1 %vm410_vm1, %v1045_v62  ;;  %6088 = vmatprep.mubr.msk.f32.mxu0 %vm410_vm1, %v2910_v23  ;;  %v994_v62 = vld [vmem:[%s6535_s25 + $0x3c] sm:$0xe]  ;;  %v7477_v37 = vunpack.c.h.bf16 %v7434_v31  ;;  %v7480_v35 = vld [vmem:[%s6535_s25 + $0x74] sm:$0x1]  ;;  %v1058_v54 = vrot.slane %v1009_v27, 2  ;;  %v8532_v27 = vunpack.c.l.bf16 %v7448_v20 }
  0x9d   : > { %v3892_v56 = vrot.slane %v8516_v19, 2  ;;  %6209 = vmatprep.subr.mxu1 %v7453_v18  ;;  %v8519_v19 = vrot.slane %v7384_v11, 2  ;;  %v7553_v20 = vld [vmem:[%s6535_s25 + $0x90] sm:$0xff]  }
  0x9e   : > { %5865 = vmatmul.mubr.msk.f32.gmra.mrb[2].mxu1 %vm410_vm1, %v1047_v47  ;;  %v1010_v47 = vunpack.c.l.bf16 %v994_v62 }
  0x9f   : > { %v7459_v23 = vsel %vm1037_vm2, %v8519_v19, %v3887_v0  ;;  %v7468_v21 = vsel %vm1037_vm2, %v7438_v52, %v3892_v56  ;;  %6089 = vmatmul.mubr.msk.f32.gmra.mrb[18].mxu0 %vm410_vm1, %v2911_v5  ;;  %v1055_v0 = vsel %vm1037_vm2, %v1053_v61, %v1054_v55  ;;  %v8522_v19 = vld [vmem:[#allocation5_spill] sm:$0xff]  ;;  %v8524_v56 = vunpack.c.l.bf16 %v7407_v43  ;;  %5867 = vmatprep.mubr.msk.f32.mxu1 %vm410_vm1, %v1050_v46  ;;  %v995_v61 = vld [vmem:[%s6535_s25 + $0x48] sm:$0xe] }
  0xa0   : > { %8520 = vst [vmem:[#allocation37_spill] sm:$0xff] %v7459_v23  ;;  %8521 = vst [vmem:[#allocation38_spill] sm:$0xff] %v7468_v21  ;;  %v8523_v12 = vunpack.c.l.bf16 %v8522_v19  ;;  %6091 = vmatprep.mubr.msk.f32.mxu0 %vm410_vm1, %v6897_v59  ;;  %v7488_v5 = vld [vmem:[%s6535_s25 + $0xa0] ss:$24 sps:$4 sm:$0xff]   ;;  %v8527_v21 = vunpack.c.l.bf16 %v7419_v10  ;;  %v8529_v59 = vrot.slane %v7431_v48, 2 }
  0xa1   : > { %v3897_v39 = vrot.slane %v8524_v56, 2  ;;  %v7499_v46 = vld [vmem:[%s6535_s25 + $0x78] sm:$0xff]   ;;  %v3907_v56 = vrot.slane %v8532_v27, 2  ;;  %v7535_v27 = vld [vmem:[%s6535_s25 + $0x84] sm:$0xff]  }
  0xa2   : > { %v1056_v23 = vrot.slane %v8523_v12, 2  ;;  %v8525_v12 = vunpack.c.h.bf16 %v7416_v50  ;;  %v3902_v52 = vrot.slane %v8527_v21, 2  ;;  %8528 = vst [vmem:[#allocation39_spill] sm:$0xff] %v7499_v46  ;;  %5868 = vmatmul.mubr.msk.f32.gmra.mrb[4].mxu1 %vm410_vm1, %v1052_v3  ;;  %v7531_v3 = vunpack.c.h.bf16 %v7499_v46 }
  0xa3   : > { %v7507_v62 = vsel %vm1037_vm2, %v8529_v59, %v3897_v39  ;;  %6092 = vmatmul.mubr.msk.f32.gmra.mrb[20].mxu0 %vm410_vm1, %v6904_v17  ;;  %v2915_v59 = vunpack.c.l.bf16 %v7488_v5  ;;  %5870 = vmatprep.mubr.msk.f32.mxu1 %vm410_vm1, %v1055_v0  ;;  %v1060_v0 = vsel %vm1037_vm2, %v1058_v54, %v6911_v38  ;;  %v8538_v17 = vld [vmem:[#allocation6_spill] sm:$0xff]  ;;  %v8541_v38 = vunpack.c.l.bf16 %v7502_v2 }
  0xa4   : > { %v7493_v19 = vrot.slane %v8525_v12, 2  ;;  %8530 = vst [vmem:[#allocation40_spill] sm:$0xff] %v7507_v62  ;;  %v1057_v39 = vsel %vm1037_vm2, %v1054_v55, %v1056_v23  ;;  %v8533_v12 = vunpack.c.h.bf16 %v7464_v9  ;;  %6094 = vmatprep.mubr.msk.f32.mxu0 %vm410_vm1, %v2914_v15  ;;  %v8535_v55 = vrot.slane %v7477_v37, 2 }
  0xa5   : > { %v1063_v15 = vrot.slane %v1010_v47, 2  ;;  %v1064_v62 = vrot.slane %v6716_v1, 2  ;;  %v8539_v46 = vunpack.c.l.bf16 %v8538_v17  ;;  %v3917_v1 = vrot.slane %v8541_v38, 2  ;;  %v997_v17 = vld [vmem:[%s6535_s25 + $0x60] sm:$0xe] }
  0xa6   : > { %8526 = vst [vmem:[#allocation5_spill] sm:$0xff] %v7493_v19  ;;  %v7514_v21 = vsel %vm1037_vm2, %v7493_v19, %v3902_v52  ;;  %v7525_v18 = vrot.slane %v8533_v12, 2  ;;  %v996_v52 = vld [vmem:[%s6535_s25 + $0x54] sm:$0xe]  ;;  %v7540_v23 = vsel %vm1037_vm2, %v8535_v55, %v3907_v56  ;;  %v8537_v12 = vunpack.c.l.bf16 %v7480_v35  ;;  %5871 = vmatmul.mubr.msk.f32.gmra.mrb[6].mxu1 %vm410_vm1, %v1057_v39 }
  0xa7   : > { %8531 = vst [vmem:[#allocation41_spill] sm:$0xff] %v7514_v21  ;;  %8536 = vst [vmem:[#allocation43_spill] sm:$0xff] %v7540_v23  ;;  %v1011_v19 = vunpack.c.l.bf16 %v995_v61  ;;  %v1066_v28 = vrot.slane %v8539_v46, 2  ;;  %v8420_v55 = vrot.slane %v7531_v3, 2  ;;  %6095 = vmatmul.mubr.msk.f32.gmra.mrb[22].mxu0 %vm410_vm1, %v2915_v59  ;;  %v1012_v54 = vunpack.c.l.bf16 %v996_v52  ;;  %5873 = vmatprep.mubr.msk.f32.mxu1 %vm410_vm1, %v1060_v0 }
  0xa8   : > { %8534 = vst [vmem:[#allocation42_spill] sm:$0xff] %v7525_v18  ;;  %v3912_v21 = vrot.slane %v8537_v12, 2  ;;  %v8421_v47 = vunpack.c.h.bf16 %v7535_v27  ;;  %6097 = vmatprep.mubr.msk.f32.mxu0 %vm410_vm1, %v6958_v36  ;;  %v2918_v61 = vunpack.c.l.bf16 %v7151_v58  ;;  %v8422_v46 = vunpack.c.l.bf16 %v7548_v40  ;;  %v7584_v36 = vld [vmem:[%s6535_s25 + $0x9c] sm:$0xff]   ;;  %v7624_v58 = vld [vmem:[%s6535_s25 + $0xb0] sm:$0x1] }
  0xa9   : > { %v7576_v39 = vsel %vm1037_vm2, %v8420_v55, %v3917_v1  ;;  %v1065_v59 = vsel %vm1037_vm2, %v1063_v15, %v1064_v62  ;;  %v1068_v52 = vrot.slane %v1011_v19, 2  ;;  %v7581_v12 = vunpack.c.h.bf16 %v7553_v20  ;;  %v7611_v55 = vld [vmem:[%s6535_s25 + $0xa8] sm:$0xff]  }
  0xaa   : > { %v7557_v56 = vsel %vm1037_vm2, %v7525_v18, %v3912_v21  ;;  %v7571_v21 = vld [vmem:[%s6535_s25 + $0x98] sm:$0x1]  ;;  %8542 = vst [vmem:[#allocation44_spill] sm:$0xff] %v7576_v39  ;;  %v7588_v0 = vrot.slane %v8421_v47, 2  ;;  %v1067_v38 = vsel %vm1037_vm2, %v1064_v62, %v1066_v28  ;;  %v2919_v1 = vunpack.c.h.bf16 %v7488_v5  ;;  %5874 = vmatmul.mubr.msk.f32.gmra.mrb[8].mxu1 %vm410_vm1, %v7181_v22  ;;  %v7602_v5 = vld [vmem:[%s6535_s25 + $0xa4] sm:$0x1] }
  0xab   : > { %8540 = vst [vmem:[#allocation6_spill] sm:$0xff] %v7557_v56  ;;  %v3922_v19 = vrot.slane %v8422_v46, 2  ;;  %6098 = vmatmul.mubr.msk.f32.gmra.mrb[24].mxu0 %vm410_vm1, %v6960_v51  ;;  %v1073_v15 = vrot.slane %v1012_v54, 2  ;;  %v1074_v47 = vrot.slane %v6778_v33, 2  ;;  %v8424_v28 = vunpack.c.l.bf16 %v7571_v21  ;;  %5876 = vmatprep.mubr.msk.f32.mxu1 %vm410_vm1, %v1065_v59  ;;  %v5031_v46 = vld [vmem:[%s6535_s25 + $0xcc] sm:$0xff]   ;;  %8544 = vst [vmem:[#allocation46_spill] sm:$0xff] %v7611_v55 }
  0xac   : > { %8543 = vst [vmem:[#allocation45_spill] sm:$0xff] %v7588_v0  ;;  %6100 = vmatprep.mubr.msk.f32.mxu0 %vm410_vm1, %v2918_v61  ;;  %v1013_v22 = vunpack.c.l.bf16 %v997_v17  ;;  %v8426_v54 = vunpack.c.h.bf16 %v7584_v36  ;;  %v1070_v62 = vsel %vm1037_vm2, %v1068_v52, %v6977_v25  ;;  %v998_v61 = vld [vmem:[%s6535_s25 + $0x6c] sm:$0xe]  ;;  %v7638_v39 = vld [vmem:[%s6535_s25 + $0xb4] sm:$0xff]   ;;  %v8549_v17 = vrot.slane %v7581_v12, 2 }
  0xad   : > { %v7615_v33 = vsel %vm1037_vm2, %v7588_v0, %v3922_v19  ;;  %v3927_v59 = vrot.slane %v8424_v28, 2  ;;  %v2922_v19 = vunpack.c.l.bf16 %v5031_v46  ;;  %v8547_v25 = vld [vmem:[#allocation7_spill] sm:$0xff]  ;;  %v7635_v28 = vunpack.c.h.bf16 %v7611_v55  ;;  %v999_v56 = vld [vmem:[%s6535_s25 + $0x78] sm:$0xe] }
  0xae   : > { %8545 = vst [vmem:[#allocation47_spill] sm:$0xff] %v7615_v33  ;;  %v7628_v51 = vrot.slane %v8426_v54, 2  ;;  %5877 = vmatmul.mubr.msk.f32.gmra.mrb[10].mxu1 %vm410_vm1, %v1067_v38  ;;  %v8548_v52 = vunpack.c.l.bf16 %v8547_v25  ;;  %v8551_v38 = vunpack.c.l.bf16 %v7177_v42  ;;  %v1078_v25 = vrot.slane %v1013_v22, 2 }
  0xaf   : > { %6101 = vmatmul.mubr.msk.f32.gmra.mrb[26].mxu0 %vm410_vm1, %v2919_v1  ;;  %v7643_v0 = vsel %vm1037_vm2, %v8549_v17, %v3927_v59  ;;  %5879 = vmatprep.mubr.msk.f32.mxu1 %vm410_vm1, %v1070_v62  ;;  %v1075_v1 = vsel %vm1037_vm2, %v1073_v15, %v1074_v47  ;;  %v8553_v23 = vunpack.c.l.bf16 %v7602_v5  ;;  %v3424_v55 = vrot.slane %v7347_v44, 1  ;;  %v7658_v62 = vld [vmem:[%s6535_s25 + $0xbc] sm:$0x1] }
  0xb0   : > { %8546 = vst [vmem:[#allocation48_spill] sm:$0xff] %v7628_v51  ;;  %v1076_v33 = vrot.slane %v8548_v52, 2  ;;  %8550 = vst [vmem:[#allocation7_spill] sm:$0xff] %v7643_v0  ;;  %6103 = vmatprep.mubr.msk.f32.mxu0 %vm410_vm1, %v8551_v38  ;;  %v8552_v52 = vunpack.c.l.bf16 %v7323_v7  ;;  %v1014_v59 = vunpack.c.l.bf16 %v998_v61  ;;  %v8430_v17 = vunpack.c.l.bf16 %v7624_v58 }
  0xb1   : > { %v3932_v18 = vrot.slane %v8553_v23, 2  ;;  %v2923_v38 = vunpack.c.h.bf16 %v5031_v46  ;;  %v3330_v15 = vunpack.c.l.bf16 %v7336_v8  ;;  %v8555_v46 = vunpack.c.l.bf16 %v7328_v34 }
  0xb2   : > { %v3423_v54 = vrot.slane %v8552_v52, 1  ;;  %5880 = vmatmul.mubr.msk.f32.gmra.mrb[12].mxu1 %vm410_vm1, %v7201_v4  ;;  %v1077_v23 = vsel %vm1037_vm2, %v1074_v47, %v1076_v33  ;;  %v1015_v0 = vunpack.c.l.bf16 %v999_v56  ;;  %v3937_v22 = vrot.slane %v8430_v17, 2  ;;  %v7690_v17 = vld [vmem:[%s6535_s25 + $0xcc] sm:$0xff]  }
  0xb3   : > { %v7665_v52 = vsel %vm1037_vm2, %v7628_v51, %v3932_v18  ;;  %6104 = vmatmul.mubr.msk.f32.gmra.mrb[28].mxu0 %vm410_vm1, %v7197_v30  ;;  %v3426_v61 = vrot.slane %v8555_v46, 1  ;;  %5882 = vmatprep.mubr.msk.f32.mxu1 %vm410_vm1, %v1075_v1  ;;  %v1080_v4 = vsel %vm1037_vm2, %v1078_v25, %v7034_v57  ;;  %v1084_v18 = vrot.slane %v6823_v24, 2  ;;  %v1000_v1 = vld [vmem:[%s6535_s25 + $0x84] sm:$0xe]  ;;  %v8559_v51 = vld [vmem:[#allocation8_spill] sm:$0xff] }
  0xb4   : > { %8554 = vst [vmem:[#allocation49_spill] sm:$0xff] %v7665_v52  ;;  %6106 = vmatprep.mubr.msk.f32.mxu0 %vm410_vm1, %v2922_v19  ;;  %v8556_v47 = vunpack.c.h.bf16 %v7638_v39  ;;  %v3425_v56 = vsel %vm327_vm0, %v3423_v54, %v3424_v55  ;;  %v1083_v33 = vrot.slane %v1014_v59, 2  ;;  %v8557_v19 = vrot.slane %v7635_v28, 2 }
  0xb5   : > { %v3428_v24 = vrot.slane %v3330_v15, 1  ;;  %v8558_v25 = vunpack.c.h.bf16 %v7336_v8  ;;  %v8561_v54 = vunpack.c.l.bf16 %v7658_v62  ;;  %v8562_v46 = vunpack.c.l.bf16 %v7350_v29 }
  0xb6   : > { %v7684_v34 = vrot.slane %v8556_v47, 2  ;;  %v7695_v57 = vsel %vm1037_vm2, %v8557_v19, %v3937_v22  ;;  %v8560_v47 = vunpack.c.l.bf16 %v8559_v51  ;;  %5883 = vmatmul.mubr.msk.f32.gmra.mrb[14].mxu1 %vm410_vm1, %v1077_v23  ;;  %v1088_v22 = vrot.slane %v1015_v0, 2  ;;  %v7708_v19 = vld [vmem:[%s6535_s25 + $0xd4] sm:$0x1] }
  0xb7   : > { %v3429_v52 = vrot.slane %v8558_v25, 1  ;;  %v3942_v59 = vrot.slane %v8561_v54, 2  ;;  %6107 = vmatmul.mubr.msk.f32.gmra.mrb[30].mxu0 %vm410_vm1, %v2923_v38  ;;  %v3431_v42 = vrot.slane %v8562_v46, 1  ;;  %5885 = vmatprep.mubr.msk.f32.mxu1 %vm410_vm1, %v1080_v4  ;;  %v3427_v8 = vsel %vm327_vm0, %v3424_v55, %v3426_v61  ;;  %v1001_v25 = vld [vmem:[%s6535_s25 + $0x90] sm:$0xe] }
  0xb8   : > { %v1086_v30 = vrot.slane %v8560_v47, 2  ;;  %6111 = vmatprep.mubr.msk.f32.mxu0 %vm410_vm1, %v3425_v56  ;;  %v1016_v51 = vunpack.c.l.bf16 %v1000_v1  ;;  %v3373_v15 = vunpack.c.h.bf16 %v7690_v17  ;;  %v1085_v38 = vsel %vm1037_vm2, %v1083_v33, %v1084_v18 }
  0xb9   : > { %v7716_v23 = vsel %vm1037_vm2, %v7684_v34, %v3942_v59  ;;  %v8563_v29 = vunpack.c.l.bf16 %v7356_v16  ;;  %v3434_v46 = vrot.slane %v7384_v11, 1  ;;  %v3336_v4 = vunpack.c.l.bf16 %v7372_v60 }
  0xba   : > { %v3430_v56 = vsel %vm327_vm0, %v3428_v24, %v3429_v52  ;;  %v1087_v55 = vsel %vm1037_vm2, %v1084_v18, %v1086_v30  ;;  %v3374_v61 = vunpack.c.l.bf16 %v7708_v19  ;;  %v7729_v1 = vrot.slane %v3373_v15, 2  ;;  %5886 = vmatmul.mubr.msk.f32.gmra.mrb[16].mxu1 %vm410_vm1, %v7226_v53  ;;  %v8564_v24 = vld [vmem:[#allocation9_spill] sm:$0xff] }
  0xbb   : > { %v3433_v0 = vrot.slane %v8563_v29, 1  ;;  %6112 = vmatmul.mubr.msk.f32.vlgmr.msra.gmra.mrb[0].mxu0 %vm410_vm1, %v3427_v8  ;;  %v3432_v33 = vsel %vm327_vm0, %v3429_v52, %v3431_v42  ;;  %v1090_v47 = vsel %vm1037_vm2, %v1088_v22, %v7081_v63  ;;  %v8565_v54 = vunpack.c.l.bf16 %v8564_v24  ;;  %5888 = vmatprep.mubr.msk.f32.mxu1 %vm410_vm1, %v1085_v38 }
  0xbc   : > { %v8566_v18 = vunpack.c.l.bf16 %v7362_v6  ;;  %6160 = vmatpush3.msra.mxu0 %v7263_v49  ;;  %v1093_v29 = vrot.slane %v1016_v51, 2  ;;  %v1094_v53 = vrot.slane %v6868_v45, 2  ;;  %v1017_v8 = vunpack.c.l.bf16 %v1001_v25  ;;  %6114 = vmatprep.mubr.msk.f32.mxu0 %vm410_vm1, %v3430_v56  ;;  %v1002_v49 = vld [vmem:[%s6535_s25 + $0x9c] sm:$0xe] }
  0xbd   : > { %v1091_v30 = vrot.slane %v8565_v54, 2  ;;  %v3952_v42 = vrot.slane %v3374_v61, 2  ;;  %v3435_v52 = vsel %vm327_vm0, %v3433_v0, %v3434_v46  ;;  %v3438_v22 = vrot.slane %v3336_v4, 1  ;;  %v8568_v0 = vld [vmem:[#allocation11_spill] sm:$0xff] }
  0xbe   : > { %v3436_v59 = vrot.slane %v8566_v18, 1  ;;  %v8567_v24 = vunpack.c.h.bf16 %v7372_v60  ;;  %v5401_v54 = vunpack.c.l.bf16 %v7393_v14  ;;  %5889 = vmatmul.mubr.msk.f32.gmra.mrb[18].mxu1 %vm410_vm1, %v1087_v55  ;;  %v8569_v60 = vunpack.c.l.bf16 %v8568_v0 }
  0xbf   : > { %v7754_v51 = vsel %vm1037_vm2, %v7729_v1, %v3952_v42  ;;  %6115 = vmatmul.mubr.msk.f32.gmra.mrb[2].mxu0 %vm410_vm1, %v3432_v33  ;;  %v1092_v45 = vsel %vm1037_vm2, %v7081_v63, %v1091_v30  ;;  %v8570_v25 = vunpack.c.l.bf16 %v7375_v32  ;;  %5891 = vmatprep.mubr.msk.f32.mxu1 %vm410_vm1, %v1090_v47  ;;  %v1095_v18 = vsel %vm1037_vm2, %v1093_v29, %v1094_v53  ;;  %v8571_v29 = vld [vmem:[#allocation13_spill] sm:$0xff] }
  0xc0   : > { %v3439_v6 = vrot.slane %v8567_v24, 1  ;;  %v3437_v38 = vsel %vm327_vm0, %v3434_v46, %v3436_v59  ;;  %v1096_v4 = vrot.slane %v8569_v60, 2  ;;  %6117 = vmatprep.mubr.msk.f32.mxu0 %vm410_vm1, %v3435_v52  ;;  %v1098_v55 = vrot.slane %v1017_v8, 2  ;;  %v1003_v59 = vld [vmem:[%s6535_s25 + $0xa8] sm:$0xe] }
  0xc1   : > { %v3441_v56 = vrot.slane %v8570_v25, 1  ;;  %v1018_v42 = vunpack.c.l.bf16 %v1002_v49  ;;  %v3443_v63 = vrot.slane %v5401_v54, 1  ;;  %v3444_v46 = vrot.slane %v7431_v48, 1  ;;  %v1004_v25 = vld [vmem:[%s6535_s25 + $0xb4] sm:$0xe] }
  0xc2   : > { %v3440_v33 = vsel %vm327_vm0, %v3438_v22, %v3439_v6  ;;  %v3342_v30 = vunpack.c.l.bf16 %v7416_v50  ;;  %5892 = vmatmul.mubr.msk.f32.gmra.mrb[20].mxu1 %vm410_vm1, %v1092_v45  ;;  %v1097_v32 = vsel %vm1037_vm2, %v1094_v53, %v1096_v4  ;;  %v8572_v8 = vunpack.c.l.bf16 %v8571_v29 }
  0xc3   : > { %6118 = vmatmul.mubr.msk.f32.gmra.mrb[4].mxu0 %vm410_vm1, %v3437_v38  ;;  %v3442_v47 = vsel %vm327_vm0, %v3439_v6, %v3441_v56  ;;  %v8573_v22 = vunpack.c.l.bf16 %v7407_v43  ;;  %5894 = vmatprep.mubr.msk.f32.mxu1 %vm410_vm1, %v1095_v18  ;;  %v1100_v49 = vsel %vm1037_vm2, %v1098_v55, %v7122_v41  ;;  %v1103_v45 = vrot.slane %v1018_v42, 2 }
  0xc4   : > { %v1101_v52 = vrot.slane %v8572_v8, 2  ;;  %6120 = vmatprep.mubr.msk.f32.mxu0 %vm410_vm1, %v3440_v33  ;;  %v1104_v38 = vrot.slane %v6949_v13, 2  ;;  %v1019_v0 = vunpack.c.l.bf16 %v1003_v59  ;;  %v3445_v53 = vsel %vm327_vm0, %v3443_v63, %v3444_v46  ;;  %v8575_v13 = vld [vmem:[#allocation14_spill] sm:$0xff]  ;;  %v8578_v8 = vld [vmem:[#allocation16_spill] sm:$0xff] }
  0xc5   : > { %v3446_v24 = vrot.slane %v8573_v22, 1  ;;  %v3448_v6 = vrot.slane %v3342_v30, 1  ;;  %v8574_v60 = vunpack.c.h.bf16 %v7416_v50  ;;  %v5405_v43 = vunpack.c.l.bf16 %v7434_v31 }
  0xc6   : > { %5895 = vmatmul.mubr.msk.f32.gmra.mrb[22].mxu1 %vm410_vm1, %v1097_v32  ;;  %v1102_v56 = vsel %vm1037_vm2, %v7122_v41, %v1101_v52  ;;  %v8576_v55 = vunpack.c.l.bf16 %v8575_v13  ;;  %v8577_v33 = vunpack.c.l.bf16 %v7419_v10  ;;  %v1105_v50 = vsel %vm1037_vm2, %v1103_v45, %v1104_v38 }
  0xc7   : > { %v3449_v4 = vrot.slane %v8574_v60, 1  ;;  %6121 = vmatmul.mubr.msk.f32.gmra.mrb[6].mxu0 %vm410_vm1, %v3442_v47  ;;  %v3447_v18 = vsel %vm327_vm0, %v3444_v46, %v3446_v24  ;;  %5897 = vmatprep.mubr.msk.f32.mxu1 %vm410_vm1, %v1100_v49  ;;  %v1108_v30 = vrot.slane %v1019_v0, 2  ;;  %v1020_v59 = vunpack.c.l.bf16 %v1004_v25  ;;  %v8580_v49 = vld [vmem:[#allocation35_spill] sm:$0xff] }
  0xc8   : > { %v1106_v42 = vrot.slane %v8576_v55, 2  ;;  %v3451_v63 = vrot.slane %v8577_v33, 1  ;;  %6123 = vmatprep.mubr.msk.f32.mxu0 %vm410_vm1, %v3445_v53  ;;  %v3453_v41 = vrot.slane %v5405_v43, 1  ;;  %v3454_v46 = vrot.slane %v7477_v37, 1  ;;  %v8585_v33 = vld [vmem:[#allocation19_spill] sm:$0xff] }
  0xc9   : > { %v3450_v32 = vsel %vm327_vm0, %v3448_v6, %v3449_v4  ;;  %v3348_v47 = vunpack.c.l.bf16 %v7464_v9  ;;  %v8579_v52 = vunpack.c.l.bf16 %v8578_v8  ;;  %v1110_v24 = vsel %vm1037_vm2, %v1108_v30, %v7168_v26  ;;  %v8582_v6 = vld [vmem:[#allocation18_spill] sm:$0xff] }
  0xca   : > { %5898 = vmatmul.mubr.msk.f32.gmra.mrb[24].mxu1 %vm410_vm1, %v1102_v56  ;;  %v1107_v10 = vsel %vm1037_vm2, %v1104_v38, %v1106_v42  ;;  %v3452_v29 = vsel %vm327_vm0, %v3449_v4, %v3451_v63  ;;  %v8581_v45 = vunpack.c.l.bf16 %v8580_v49  ;;  %v1113_v53 = vrot.slane %v1020_v59, 2 }
  0xcb   : > { %6124 = vmatmul.mubr.msk.f32.gmra.mrb[8].mxu0 %vm410_vm1, %v3447_v18  ;;  %v1111_v22 = vrot.slane %v8579_v52, 2  ;;  %5900 = vmatprep.mubr.msk.f32.mxu1 %vm410_vm1, %v1105_v50  ;;  %v1114_v60 = vrot.slane %v8582_v6, 2  ;;  %v3455_v38 = vsel %vm327_vm0, %v3453_v41, %v3454_v46  ;;  %v3458_v4 = vrot.slane %v3348_v47, 1  ;;  %v8584_v18 = vld [vmem:[#allocation39_spill] sm:$0xff] }
  0xcc   : > { %6126 = vmatprep.mubr.msk.f32.mxu0 %vm410_vm1, %v3450_v32  ;;  %v3456_v0 = vrot.slane %v8581_v45, 1  ;;  %v8583_v25 = vunpack.c.h.bf16 %v7464_v9  ;;  %v5409_v13 = vunpack.c.l.bf16 %v8584_v18  ;;  %v8586_v63 = vunpack.c.l.bf16 %v8585_v33  ;;  %v4806_v41 = vld [vmem:[%s6535_s25 + $0xc] sm:$0xff]  }
  0xcd   : > { %v1112_v55 = vsel %vm1037_vm2, %v7168_v26, %v1111_v22  ;;  %v8587_v9 = vunpack.c.l.bf16 %v7480_v35  ;;  %v1115_v59 = vsel %vm1037_vm2, %v1113_v53, %v1114_v60  ;;  %v3354_v26 = vunpack.c.l.bf16 %v7535_v27 }
  0xce   : > { %v3459_v56 = vrot.slane %v8583_v25, 1  ;;  %5901 = vmatmul.mubr.msk.f32.gmra.mrb[26].mxu1 %vm410_vm1, %v1107_v10  ;;  %v3457_v42 = vsel %vm327_vm0, %v3454_v46, %v3456_v0  ;;  %v1116_v50 = vrot.slane %v8586_v63, 2  ;;  %v3463_v47 = vrot.slane %v5409_v13, 1 }
  0xcf   : > { %6127 = vmatmul.mubr.msk.f32.gmra.mrb[10].mxu0 %vm410_vm1, %v3452_v29  ;;  %5903 = vmatprep.mubr.msk.f32.mxu1 %vm410_vm1, %v1110_v24  ;;  %v3461_v30 = vrot.slane %v8587_v9, 1  ;;  %v3464_v10 = vrot.slane %v7531_v3, 1  ;;  %v1474_v29 = vunpack.c.l.bf16 %v4806_v41  ;;  %v8588_v8 = vunpack.c.l.bf16 %v7502_v2 }
  0xd0   : > { %6129 = vmatprep.mubr.msk.f32.mxu0 %vm410_vm1, %v3455_v38  ;;  %v3460_v32 = vsel %vm327_vm0, %v3458_v4, %v3459_v56  ;;  %v1117_v35 = vsel %vm1037_vm2, %v1114_v60, %v1116_v50  ;;  %v5413_v24 = vunpack.c.l.bf16 %v7553_v20  ;;  %v3468_v49 = vrot.slane %v3354_v26, 1  ;;  %v4810_v38 = vld [vmem:[%s6535_s25 + $0x24] sm:$0xff]  }
  0xd1   : > { %v3462_v46 = vsel %vm327_vm0, %v3459_v56, %v3461_v30  ;;  %v3466_v52 = vrot.slane %v8588_v8, 1  ;;  %v3465_v22 = vsel %vm327_vm0, %v3463_v47, %v3464_v10  ;;  %v8589_v45 = vunpack.c.h.bf16 %v7535_v27 }
  0xd2   : > { %5904 = vmatmul.mubr.msk.f32.gmra.mrb[28].mxu1 %vm410_vm1, %v1112_v55  ;;  %v1475_v53 = vunpack.c.h.bf16 %v4806_v41  ;;  %v8590_v6 = vunpack.c.l.bf16 %v7548_v40  ;;  %v3473_v4 = vrot.slane %v5413_v24, 1  ;;  %v3474_v27 = vrot.slane %v7581_v12, 1  ;;  %v8591_v55 = vld [vmem:[#allocation36_spill] sm:$0xff]  ;;  %v8595_v41 = vld [vmem:[#allocation46_spill] sm:$0xff] }
  0xd3   : > { %6130 = vmatmul.mubr.msk.f32.gmra.mrb[12].mxu0 %vm410_vm1, %v3457_v42  ;;  %5906 = vmatprep.mubr.msk.f32.mxu1 %vm410_vm1, %v1115_v59  ;;  %v3469_v0 = vrot.slane %v8589_v45, 1  ;;  %v3467_v2 = vsel %vm327_vm0, %v3464_v10, %v3466_v52  ;;  %v3360_v25 = vunpack.c.l.bf16 %v7584_v36  ;;  %v8592_v42 = vunpack.c.l.bf16 %v7323_v7 }
  0xd4   : > { %6132 = vmatprep.mubr.msk.f32.mxu0 %vm410_vm1, %v3460_v32  ;;  %v3471_v60 = vrot.slane %v8590_v6, 1  ;;  %v1478_v33 = vunpack.c.l.bf16 %v4810_v38  ;;  %v8593_v63 = vunpack.c.l.bf16 %v7571_v21  ;;  %v3475_v9 = vsel %vm327_vm0, %v3473_v4, %v3474_v27 }
  0xd5   : > { %v3470_v56 = vsel %vm327_vm0, %v3468_v49, %v3469_v0  ;;  %v3478_v30 = vrot.slane %v3360_v25, 1  ;;  %v8594_v59 = vunpack.c.h.bf16 %v7584_v36  ;;  %v5417_v47 = vunpack.c.l.bf16 %v8595_v41  ;;  %v4818_v25 = vld [vmem:[%s6535_s25 + $0x54] sm:$0xff]  }
  0xd6   : > { %5907 = vmatmul.mubr.msk.f32.gmra.mrb[30].mxu1 %vm410_vm1, %v1117_v35  ;;  %v3472_v40 = vsel %vm327_vm0, %v3469_v0, %v3471_v60  ;;  %v3476_v50 = vrot.slane %v8593_v63, 1  ;;  %v1479_v7 = vunpack.c.h.bf16 %v4810_v38  ;;  %v8596_v10 = vunpack.c.l.bf16 %v7602_v5  ;;  %v4814_v35 = vld [vmem:[%s6535_s25 + $0x3c] sm:$0xff]   ;;  %v7910_v60 = vld [vmem:[%s6535_s25 + $0xc8] sm:$0x1] }
  0xd7   : > { %6133 = vmatmul.mubr.msk.f32.gmra.mrb[14].mxu0 %vm410_vm1, %v3462_v46  ;;  %5911 = vmatprep.mubr.msk.f32.mxu1 %vm410_vm1, %v1474_v29  ;;  %v3479_v32 = vrot.slane %v8594_v59, 1  ;;  %v3483_v46 = vrot.slane %v5417_v47, 1  ;;  %v3484_v29 = vrot.slane %v7635_v28, 1  ;;  %v3366_v8 = vunpack.c.l.bf16 %v7638_v39  ;;  %v8616_v41 = vld [vmem:[#allocation41_spill] sm:$0xff] }
  0xd8   : > { %6135 = vmatprep.mubr.msk.f32.mxu0 %vm410_vm1, %v3465_v22  ;;  %v3477_v21 = vsel %vm327_vm0, %v3474_v27, %v3476_v50  ;;  %v3481_v26 = vrot.slane %v8596_v10, 1  ;;  %v8597_v52 = vunpack.c.l.bf16 %v7356_v16  ;;  %v1482_v22 = vunpack.c.l.bf16 %v4814_v35  ;;  %v5147_v50 = vld [vmem:[%s6535_s25 + $0x18] sm:$0xe] }
  0xd9   : > { %v3480_v36 = vsel %vm327_vm0, %v3478_v30, %v3479_v32  ;;  %v8598_v49 = vunpack.c.l.bf16 %v7624_v58  ;;  %v3485_v0 = vsel %vm327_vm0, %v3483_v46, %v3484_v29  ;;  %v1483_v16 = vunpack.c.h.bf16 %v4814_v35  ;;  %v5149_v46 = vld [vmem:[%s6535_s25 + $0x30] sm:$0xe] }
  0xda   : > { %5912 = vmatmul.mubr.msk.f32.vlgmr.msra.gmra.mrb[0].mxu1 %vm410_vm1, %v1475_v53  ;;  %v3482_v5 = vsel %vm327_vm0, %v3479_v32, %v3481_v26  ;;  %v3488_v53 = vrot.slane %v3366_v8, 1  ;;  %v8600_v38 = vunpack.c.l.bf16 %v7658_v62  ;;  %v3372_v63 = vunpack.c.l.bf16 %v7690_v17  ;;  %v4822_v26 = vld [vmem:[%s6535_s25 + $0x6c] sm:$0xff]  }
  0xdb   : > { %6136 = vmatmul.mubr.msk.f32.gmra.mrb[16].mxu0 %vm410_vm1, %v3467_v2  ;;  %6210 = vmatpush3.msra.mxu1 %v8591_v55  ;;  %v3486_v45 = vrot.slane %v8598_v49, 1  ;;  %v8599_v2 = vunpack.c.h.bf16 %v7638_v39  ;;  %v3371_v39 = vunpack.c.l.bf16 %v7910_v60  ;;  %v3842_v14 = vunpack.c.l.bf16 %v5147_v50 }
  0xdc   : > { %5914 = vmatprep.mubr.msk.f32.mxu1 %vm410_vm1, %v8592_v42  ;;  %6138 = vmatprep.mubr.msk.f32.mxu0 %vm410_vm1, %v3470_v56  ;;  %v3491_v4 = vrot.slane %v8600_v38, 1  ;;  %v8601_v56 = vld [vmem:[#allocation31_spill] sm:$0xff]  ;;  %v3498_v32 = vrot.slane %v3372_v63, 1  ;;  %v3501_v17 = vrot.slane %v3374_v61, 1  ;;  %v1490_v61 = vunpack.c.l.bf16 %v4822_v26  ;;  %v8610_v63 = vld [vmem:[#allocation37_spill] sm:$0xff] }
  0xdd   : > { %v3489_v6 = vrot.slane %v8599_v2, 1  ;;  %v3487_v58 = vsel %vm327_vm0, %v3484_v29, %v3486_v45  ;;  %v8602_v55 = vunpack.c.l.bf16 %v8601_v56  ;;  %v3496_v30 = vrot.slane %v3371_v39, 1  ;;  %v8606_v2 = vld [vmem:[#allocation3_spill] sm:$0xff]  ;;  %v4830_v56 = vld [vmem:[%s6535_s25 + $0x9c] sm:$0xff]  }
  0xde   : > { %5915 = vmatmul.mubr.msk.f32.gmra.mrb[2].mxu1 %vm410_vm1, %v7347_v44  ;;  %v8604_v29 = vrot.slane %v7347_v44, 2  ;;  %v1491_v31 = vunpack.c.h.bf16 %v4822_v26  ;;  %v4826_v44 = vld [vmem:[%s6535_s25 + $0x84] sm:$0xff]   ;;  %v1498_v50 = vunpack.c.l.bf16 %v4830_v56  ;;  %v1499_v20 = vunpack.c.h.bf16 %v4830_v56 }
  0xdf   : > { %6139 = vmatmul.mubr.msk.f32.gmra.mrb[18].mxu0 %vm410_vm1, %v3472_v40  ;;  %5917 = vmatprep.mubr.msk.f32.mxu1 %vm410_vm1, %v1478_v33  ;;  %v3490_v27 = vsel %vm327_vm0, %v3488_v53, %v3489_v6  ;;  %v3493_v42 = vrot.slane %v8602_v55, 1  ;;  %v8603_v40 = vld [vmem:[#allocation32_spill] sm:$0xff]  ;;  %v3492_v62 = vsel %vm327_vm0, %v3489_v6, %v3491_v4  ;;  %v5151_v53 = vld [vmem:[%s6535_s25 + $0x48] sm:$0xe]  ;;  %v1494_v6 = vunpack.c.l.bf16 %v4826_v44 }
  0xe0   : > { %6141 = vmatprep.mubr.msk.f32.mxu0 %vm410_vm1, %v3475_v9  ;;  %v7926_v33 = vrot.slane %v8603_v40, 1  ;;  %v1486_v9 = vunpack.c.l.bf16 %v4818_v25  ;;  %v3846_v4 = vunpack.c.l.bf16 %v5151_v53  ;;  %v1495_v18 = vunpack.c.h.bf16 %v4826_v44  ;;  %v5153_v40 = vld [vmem:[%s6535_s25 + $0x60] sm:$0xe] }
  0xe2   : > { %5918 = vmatmul.mubr.msk.f32.gmra.mrb[4].mxu1 %vm410_vm1, %v1479_v7  ;;  %v3495_v59 = vsel %vm327_vm0, %v3493_v42, %v7926_v33  ;;  %v3499_v7 = vrot.slane %v3373_v15, 1  ;;  %v3497_v10 = vsel %vm327_vm0, %v7926_v33, %v3496_v30  ;;  %v3894_v55 = vrot.slane %v3846_v4, 2 }
  0xe3   : > { %6142 = vmatmul.mubr.msk.f32.gmra.mrb[20].mxu0 %vm410_vm1, %v3477_v21  ;;  %5920 = vmatprep.mubr.msk.f32.mxu1 %vm410_vm1, %v8597_v52  ;;  %v5148_v21 = vld [vmem:[%s6535_s25 + $0x24] sm:$0xe] }
  0xe4   : > { %6144 = vmatprep.mubr.msk.f32.mxu0 %vm410_vm1, %v3480_v36  ;;  %v3500_v15 = vsel %vm327_vm0, %v3498_v32, %v3499_v7  ;;  %v3874_v36 = vrot.slane %v3842_v14, 2  ;;  %v3843_v35 = vunpack.c.l.bf16 %v5148_v21  ;;  %v3502_v19 = vsel %vm327_vm0, %v3499_v7, %v3501_v17  ;;  %v5154_v32 = vld [vmem:[%s6535_s25 + $0x6c] sm:$0xe]  ;;  %v8612_v7 = vld [vmem:[#allocation38_spill] sm:$0xff]  ;;  %v4834_v14 = vld [vmem:[%s6535_s25 + $0xb4] sm:$0xff]  }
  0xe5   : > { %v5155_v17 = vld [vmem:[%s6535_s25 + $0x78] sm:$0xe]  ;;  %v1502_v26 = vunpack.c.l.bf16 %v4834_v14 }
  0xe6   : > { %5921 = vmatmul.mubr.msk.f32.gmra.mrb[6].mxu1 %vm410_vm1, %v7384_v11  ;;  %v3876_v8 = vsel %vm1037_vm2, %v3874_v36, %v8604_v29  ;;  %v3879_v52 = vrot.slane %v3843_v35, 2  ;;  %v8615_v36 = vrot.slane %v7477_v37, 2  ;;  %v3850_v29 = vunpack.c.l.bf16 %v5155_v17  ;;  %v4907_v17 = vld [vmem:[%s6535_s25 + $0x9c] ss:$24 sps:$4 sm:$0xff]  }
  0xe7   : > { %6145 = vmatmul.mubr.msk.f32.gmra.mrb[22].mxu0 %vm410_vm1, %v3482_v5  ;;  %5923 = vmatprep.mubr.msk.f32.mxu1 %vm410_vm1, %v1482_v22  ;;  %v3844_v5 = vunpack.c.l.bf16 %v5149_v46  ;;  %v5150_v22 = vld [vmem:[%s6535_s25 + $0x3c] sm:$0xe]  ;;  %v5437_v46 = vld [vmem:[%s6535_s25 + $0xc0] sm:$0xff]  }
  0xe8   : > { %6147 = vmatprep.mubr.msk.f32.mxu0 %vm410_vm1, %v3485_v0  ;;  %v3845_v0 = vunpack.c.l.bf16 %v5150_v22  ;;  %v5326_v4 = vunpack.c.h.bf16 %v5437_v46 }
  0xe9   : > { %v3884_v45 = vrot.slane %v3844_v5, 2 }
  0xea   : > { %5924 = vmatmul.mubr.msk.f32.gmra.mrb[8].mxu1 %vm410_vm1, %v1483_v16  ;;  %v8607_v16 = vrot.slane %v7384_v11, 2  ;;  %v3889_v38 = vrot.slane %v3845_v0, 2  ;;  %v3914_v0 = vrot.slane %v3850_v29, 2  ;;  %v8634_v29 = vrot.slane %v7581_v12, 2 }
  0xeb   : > { %6148 = vmatmul.mubr.msk.f32.gmra.mrb[24].mxu0 %vm410_vm1, %v3487_v58  ;;  %5926 = vmatprep.mubr.msk.f32.mxu1 %vm410_vm1, %v5401_v54  ;;  %v1487_v54 = vunpack.c.h.bf16 %v4818_v25  ;;  %v8608_v25 = vld [vmem:[#allocation4_spill] sm:$0xff] }
  0xec   : > { %6150 = vmatprep.mubr.msk.f32.mxu0 %vm410_vm1, %v3490_v27  ;;  %v3886_v58 = vsel %vm1037_vm2, %v3884_v45, %v8607_v16  ;;  %v5152_v27 = vld [vmem:[%s6535_s25 + $0x54] sm:$0xe] }
  0xed   : > { %v3847_v42 = vunpack.c.l.bf16 %v5152_v27 }
  0xee   : > { %5927 = vmatmul.mubr.msk.f32.gmra.mrb[10].mxu1 %vm410_vm1, %v7431_v48 }
  0xef   : > { %6151 = vmatmul.mubr.msk.f32.gmra.mrb[26].mxu0 %vm410_vm1, %v3492_v62  ;;  %5929 = vmatprep.mubr.msk.f32.mxu1 %vm410_vm1, %v1486_v9  ;;  %v8611_v62 = vrot.slane %v7431_v48, 2  ;;  %v3899_v30 = vrot.slane %v3847_v42, 2  ;;  %v5158_v42 = vld [vmem:[%s6535_s25 + $0x9c] sm:$0xe] }
  0xf0   : > { %6153 = vmatprep.mubr.msk.f32.mxu0 %vm410_vm1, %v3495_v59  ;;  %v3848_v59 = vunpack.c.l.bf16 %v5153_v40  ;;  %v8624_v40 = vld [vmem:[#allocation6_spill] sm:$0xff] }
  0xf1   : > { %v3896_v9 = vsel %vm1037_vm2, %v3894_v55, %v8611_v62 }
  0xf2   : > { %5930 = vmatmul.mubr.msk.f32.gmra.mrb[12].mxu1 %vm410_vm1, %v1487_v54  ;;  %v3904_v21 = vrot.slane %v3848_v59, 2  ;;  %v3849_v54 = vunpack.c.l.bf16 %v5154_v32 }
  0xf3   : > { %6154 = vmatmul.mubr.msk.f32.gmra.mrb[28].mxu0 %vm410_vm1, %v3497_v10  ;;  %5932 = vmatprep.mubr.msk.f32.mxu1 %vm410_vm1, %v5405_v43  ;;  %v8605_v43 = vld [vmem:[#allocation2_spill] sm:$0xff] }
  0xf4   : > { %6156 = vmatprep.mubr.msk.f32.mxu0 %vm410_vm1, %v3500_v15  ;;  %v3881_v49 = vsel %vm1037_vm2, %v3879_v52, %v8605_v43  ;;  %v4895_v10 = vld [vmem:[%s6535_s25 + $0x6c] ss:$24 sps:$4 sm:$0xff]   ;;  %v8614_v15 = vld [vmem:[#allocation40_spill] sm:$0xff]  ;;  %v3906_v35 = vsel %vm1037_vm2, %v3904_v21, %v8615_v36 }
  0xf5   : > { %v8617_v52 = vld [vmem:[#allocation20_spill] sm:$0xff] }
  0xf6   : > { %5933 = vmatmul.mubr.msk.f32.gmra.mrb[14].mxu1 %vm410_vm1, %v7477_v37  ;;  %v5325_v37 = vunpack.c.l.bf16 %v5437_v46  ;;  %v8618_v5 = vunpack.c.h.bf16 %v8617_v52  ;;  %v6478_v21 = vld [vmem:[%s6535_s25 + $0x90] sm:$0xff]  }
  0xf7   : > { %6157 = vmatmul.mubr.msk.f32.gmra.mrb[30].mxu0 %vm410_vm1, %v3502_v19  ;;  %5935 = vmatprep.mubr.msk.f32.mxu1 %vm410_vm1, %v1490_v61  ;;  %v3909_v19 = vrot.slane %v3849_v54, 2  ;;  %v1933_v61 = vunpack.c.l.bf16 %v4895_v10  ;;  %v5349_v54 = vunpack.c.l.bf16 %v6478_v21  ;;  %v8632_v36 = vld [vmem:[#allocation24_spill] sm:$0xff] }
  0xf8   : > { %6161 = vmatprep.mubr.msk.f32.mxu0 %vm410_vm1, %v3876_v8  ;;  %v5156_v8 = vld [vmem:[%s6535_s25 + $0x84] sm:$0xe]  ;;  %v2046_v22 = vrot.slane %v8618_v5, 1  ;;  %v5160_v5 = vld [vmem:[%s6535_s25 + $0xb4] sm:$0xe] }
  0xf9   : > { %v2045_v45 = vrot.slane %v1933_v61, 1  ;;  %v3851_v53 = vunpack.c.l.bf16 %v5156_v8 }
  0xfa   : > { %5936 = vmatmul.mubr.msk.f32.gmra.mrb[16].mxu1 %vm410_vm1, %v1491_v31  ;;  %v6477_v31 = vld [vmem:[%s6535_s25 + $0x78] sm:$0xff]  }
  0xfb   : > { %6162 = vmatmul.mubr.msk.f32.vlgmr.msra.gmra.mrb[0].mxu0 %vm410_vm1, %v8606_v2  ;;  %5938 = vmatprep.mubr.msk.f32.mxu1 %vm410_vm1, %v5409_v13  ;;  %v8609_v13 = vld [vmem:[#allocation10_spill] sm:$0xff]  ;;  %v5345_v43 = vunpack.c.l.bf16 %v6477_v31  ;;  %v5157_v2 = vld [vmem:[%s6535_s25 + $0x90] sm:$0xe]  ;;  %v3919_v55 = vrot.slane %v3851_v53, 2  ;;  %v6479_v53 = vld [vmem:[%s6535_s25 + $0xa8] sm:$0xff]  }
  0xfc   : > { %6164 = vmatprep.mubr.msk.f32.mxu0 %vm410_vm1, %v3881_v49  ;;  %v3891_v11 = vsel %vm1037_vm2, %v3889_v38, %v8609_v13  ;;  %v8619_v49 = vld [vmem:[#allocation42_spill] sm:$0xff]  ;;  %v8622_v38 = vld [vmem:[#allocation43_spill] sm:$0xff]  ;;  %v2047_v13 = vsel %vm327_vm0, %v2045_v45, %v2046_v22 }
  0xfd   : > { %v3911_v44 = vsel %vm1037_vm2, %v3909_v19, %v8619_v49  ;;  %v2050_v27 = vrot.slane %v5345_v43, 1 }
  0xfe   : > { %5939 = vmatmul.mubr.msk.f32.gmra.mrb[18].mxu1 %vm410_vm1, %v7531_v3 }
  0xff   : > { %6165 = vmatmul.mubr.msk.f32.gmra.mrb[2].mxu0 %vm410_vm1, %v8608_v25  ;;  %5941 = vmatprep.mubr.msk.f32.mxu1 %vm410_vm1, %v1494_v6  ;;  %v8620_v6 = vld [vmem:[#allocation21_spill] sm:$0xff]  ;;  %v1939_v25 = vunpack.c.h.bf16 %v4895_v10  ;;  %v3853_v10 = vunpack.c.l.bf16 %v5158_v42 }
 0x100   : > { %6167 = vmatprep.mubr.msk.f32.mxu0 %vm410_vm1, %v3886_v58  ;;  %v8621_v16 = vunpack.c.l.bf16 %v8620_v6  ;;  %v3855_v6 = vunpack.c.l.bf16 %v5160_v5 }
 0x102   : > { %5942 = vmatmul.mubr.msk.f32.gmra.mrb[20].mxu1 %vm410_vm1, %v1495_v18  ;;  %v2048_v58 = vrot.slane %v8621_v16, 1  ;;  %v3852_v18 = vunpack.c.l.bf16 %v5157_v2  ;;  %v5353_v2 = vunpack.c.l.bf16 %v6479_v53  ;;  %v8640_v16 = vld [vmem:[#allocation15_spill] sm:$0xff] }
 0x103   : > { %6168 = vmatmul.mubr.msk.f32.gmra.mrb[4].mxu0 %vm410_vm1, %v8610_v63  ;;  %5944 = vmatprep.mubr.msk.f32.mxu1 %vm410_vm1, %v5413_v24  ;;  %v8613_v24 = vld [vmem:[#allocation5_spill] sm:$0xff] }
 0x104   : > { %6170 = vmatprep.mubr.msk.f32.mxu0 %vm410_vm1, %v3891_v11  ;;  %v3901_v48 = vsel %vm1037_vm2, %v3899_v30, %v8613_v24  ;;  %v8623_v11 = vrot.slane %v7531_v3, 2  ;;  %v2049_v63 = vsel %vm327_vm0, %v2046_v22, %v2048_v58  ;;  %v8627_v30 = vld [vmem:[#allocation23_spill] sm:$0xff] }
 0x105   : > { %v8628_v59 = vunpack.c.h.bf16 %v8627_v30  ;;  %v8635_v22 = vld [vmem:[#allocation47_spill] sm:$0xff] }
 0x106   : > { %5945 = vmatmul.mubr.msk.f32.gmra.mrb[22].mxu1 %vm410_vm1, %v7581_v12  ;;  %v3916_v56 = vsel %vm1037_vm2, %v3914_v0, %v8623_v11  ;;  %v8636_v12 = vld [vmem:[#allocation25_spill] sm:$0xff]  ;;  %v8643_v11 = vld [vmem:[#allocation27_spill] sm:$0xff] }
 0x107   : > { %6171 = vmatmul.mubr.msk.f32.gmra.mrb[6].mxu0 %vm410_vm1, %v8612_v7  ;;  %5947 = vmatprep.mubr.msk.f32.mxu1 %vm410_vm1, %v1498_v50  ;;  %v8625_v50 = vld [vmem:[#allocation22_spill] sm:$0xff]  ;;  %v2056_v32 = vrot.slane %v8628_v59, 1  ;;  %v3924_v7 = vrot.slane %v3852_v18, 2  ;;  %v8637_v43 = vunpack.c.l.bf16 %v8636_v12  ;;  %v5162_v59 = vld [vmem:[%s6535_s25 + $0xcc] sm:$0xe] }
 0x108   : > { %6173 = vmatprep.mubr.msk.f32.mxu0 %vm410_vm1, %v3896_v9  ;;  %v8626_v62 = vunpack.c.l.bf16 %v8625_v50  ;;  %v2055_v9 = vrot.slane %v1939_v25, 1  ;;  %v5161_v18 = vld [vmem:[%s6535_s25 + $0xc0] sm:$0xe] }
 0x109   : > { %v3926_v8 = vsel %vm1037_vm2, %v3924_v7, %v8634_v29  ;;  %v2063_v49 = vrot.slane %v8637_v43, 1  ;;  %v3856_v30 = vunpack.c.l.bf16 %v5161_v18 }
 0x10a   : > { %5948 = vmatmul.mubr.msk.f32.gmra.mrb[24].mxu1 %vm410_vm1, %v1499_v20  ;;  %v2053_v3 = vrot.slane %v8626_v62, 1  ;;  %v8629_v20 = vld [vmem:[#allocation12_spill] sm:$0xff]  ;;  %v2057_v61 = vsel %vm327_vm0, %v2055_v9, %v2056_v32  ;;  %v8645_v62 = vrot.slane %v7635_v28, 2  ;;  %v1951_v9 = vunpack.c.h.bf16 %v4907_v17 }
 0x10b   : > { %6174 = vmatmul.mubr.msk.f32.gmra.mrb[8].mxu0 %vm410_vm1, %v8614_v15  ;;  %5950 = vmatprep.mubr.msk.f32.mxu1 %vm410_vm1, %v5417_v47  ;;  %v1503_v47 = vunpack.c.h.bf16 %v4834_v14  ;;  %v2052_v24 = vsel %vm327_vm0, %v2050_v27, %v8629_v20  ;;  %v5159_v15 = vld [vmem:[%s6535_s25 + $0xa8] sm:$0xe]  ;;  %v2064_v42 = vsel %vm327_vm0, %v8640_v16, %v2063_v49 }
 0x10c   : > { %6176 = vmatprep.mubr.msk.f32.mxu0 %vm410_vm1, %v3901_v48  ;;  %v8630_v48 = vld [vmem:[#allocation45_spill] sm:$0xff]  ;;  %v2054_v19 = vsel %vm327_vm0, %v8629_v20, %v2053_v3  ;;  %v3854_v52 = vunpack.c.l.bf16 %v5159_v15  ;;  %v8647_v20 = vld [vmem:[#allocation28_spill] sm:$0xff]  ;;  %v2075_v15 = vrot.slane %v1951_v9, 1 }
 0x10d   : > { %v3921_v14 = vsel %vm1037_vm2, %v3919_v55, %v8630_v48 }
 0x10e   : > { %5951 = vmatmul.mubr.msk.f32.gmra.mrb[26].mxu1 %vm410_vm1, %v7635_v28  ;;  %v3934_v25 = vrot.slane %v3854_v52, 2  ;;  %v8649_v28 = vld [vmem:[#allocation17_spill] sm:$0xff] }
 0x10f   : > { %6177 = vmatmul.mubr.msk.f32.gmra.mrb[10].mxu0 %vm410_vm1, %v8616_v41  ;;  %5953 = vmatprep.mubr.msk.f32.mxu1 %vm410_vm1, %v1502_v26  ;;  %v8631_v26 = vld [vmem:[#allocation44_spill] sm:$0xff]  ;;  %v2060_v41 = vrot.slane %v5349_v54, 1  ;;  %v8650_v54 = vld [vmem:[#allocation29_spill] sm:$0xff] }
 0x110   : > { %6179 = vmatprep.mubr.msk.f32.mxu0 %vm410_vm1, %v3906_v35  ;;  %v8633_v35 = vunpack.c.l.bf16 %v8632_v36  ;;  %v3936_v3 = vsel %vm1037_vm2, %v3934_v25, %v8645_v62  ;;  %v6480_v36 = vld [vmem:[%s6535_s25 + $0xc0] sm:$0xff]  }
 0x111   : > { %v2062_v58 = vsel %vm327_vm0, %v2060_v41, %v8640_v16 }
 0x112   : > { %5954 = vmatmul.mubr.msk.f32.gmra.mrb[28].mxu1 %vm410_vm1, %v1503_v47  ;;  %v2058_v46 = vrot.slane %v8633_v35, 1  ;;  %v3929_v47 = vrot.slane %v3853_v10, 2  ;;  %v8651_v10 = vunpack.c.h.bf16 %v8650_v54  ;;  %v5357_v35 = vunpack.c.l.bf16 %v6480_v36 }
 0x113   : > { %6180 = vmatmul.mubr.msk.f32.gmra.mrb[12].mxu0 %vm410_vm1, %v8622_v38  ;;  %5956 = vmatprep.mubr.msk.f32.mxu1 %vm410_vm1, %v5325_v37  ;;  %v1945_v37 = vunpack.c.l.bf16 %v4907_v17  ;;  %v8641_v38 = vld [vmem:[#allocation48_spill] sm:$0xff] }
 0x114   : > { %6182 = vmatprep.mubr.msk.f32.mxu0 %vm410_vm1, %v3911_v44  ;;  %v2059_v31 = vsel %vm327_vm0, %v2056_v32, %v2058_v46  ;;  %v8638_v44 = vld [vmem:[#allocation26_spill] sm:$0xff]  ;;  %v8646_v32 = vld [vmem:[#allocation49_spill] sm:$0xff]  ;;  %v2076_v17 = vrot.slane %v8651_v10, 1  ;;  %v3857_v46 = vunpack.c.l.bf16 %v5162_v59  ;;  %v2080_v52 = vrot.slane %v5357_v35, 1 }
 0x115   : > { %v8639_v45 = vunpack.c.h.bf16 %v8638_v44  ;;  %v2065_v27 = vrot.slane %v1945_v37, 1 }
 0x116   : > { %5957 = vmatmul.mubr.msk.f32.gmra.mrb[30].mxu1 %vm410_vm1, %v5326_v4  ;;  %v3931_v4 = vsel %vm1037_vm2, %v3929_v47, %v8641_v38  ;;  %v2077_v41 = vsel %vm327_vm0, %v2075_v15, %v2076_v17  ;;  %v8654_v47 = vld [vmem:[#allocation34_spill] sm:$0xff]  ;;  %v2082_v12 = vsel %vm327_vm0, %v2080_v52, %v7926_v33 }
 0x117   : > { %6183 = vmatmul.mubr.msk.f32.gmra.mrb[14].mxu0 %vm410_vm1, %v8624_v40  ;;  %5985 = vmatprep.mubr.msk.f32.mxu1 %vm410_vm1, %v2047_v13  ;;  %v2066_v0 = vrot.slane %v8639_v45, 1  ;;  %v8642_v13 = vld [vmem:[#allocation7_spill] sm:$0xff]  ;;  %v2070_v40 = vrot.slane %v5353_v2, 1 }
 0x118   : > { %6185 = vmatprep.mubr.msk.f32.mxu0 %vm410_vm1, %v3916_v56  ;;  %v8644_v56 = vunpack.c.l.bf16 %v8643_v11 }
 0x119   : > { %v2067_v50 = vsel %vm327_vm0, %v2065_v27, %v2066_v0 }
 0x11a   : > { %5986 = vmatmul.mubr.msk.f32.vlgmr.msra.gmra.mrb[16].mxu1 %vm410_vm1, %v2049_v63  ;;  %v2068_v55 = vrot.slane %v8644_v56, 1  ;;  %v3939_v63 = vrot.slane %v3855_v6, 2 }
 0x11b   : > { %6186 = vmatmul.mubr.msk.f32.gmra.mrb[16].mxu0 %vm410_vm1, %v8631_v26  ;;  %5988 = vmatprep.mubr.msk.f32.mxu1 %vm410_vm1, %v2052_v24  ;;  %v8648_v24 = vunpack.c.l.bf16 %v8647_v20  ;;  %v3944_v26 = vrot.slane %v3856_v30, 2 }
 0x11c   : > { %6188 = vmatprep.mubr.msk.f32.mxu0 %vm410_vm1, %v3921_v14  ;;  %v2069_v7 = vsel %vm327_vm0, %v2066_v0, %v2068_v55  ;;  %v2072_v14 = vsel %vm327_vm0, %v2070_v40, %v8649_v28  ;;  %v3941_v21 = vsel %vm1037_vm2, %v3939_v63, %v7684_v34 }
 0x11d   : > { %v2073_v48 = vrot.slane %v8648_v24, 1  ;;  %v3946_v37 = vsel %vm1037_vm2, %v3944_v26, %v8654_v47 }
 0x11e   : > { %5989 = vmatmul.mubr.msk.f32.gmra.mrb[18].mxu1 %vm410_vm1, %v2054_v19  ;;  %v8652_v19 = vld [vmem:[#allocation30_spill] sm:$0xff] }
 0x11f   : > { %6189 = vmatmul.mubr.msk.f32.gmra.mrb[18].mxu0 %vm410_vm1, %v8635_v22  ;;  %5991 = vmatprep.mubr.msk.f32.mxu1 %vm410_vm1, %v2057_v61  ;;  %v2074_v34 = vsel %vm327_vm0, %v8649_v28, %v2073_v48  ;;  %v8653_v61 = vunpack.c.l.bf16 %v8652_v19 }
 0x120   : > { %6191 = vmatprep.mubr.msk.f32.mxu0 %vm410_vm1, %v3926_v8  ;;  %v3947_v8 = vrot.slane %v3371_v39, 2  ;;  %v8655_v39 = vld [vmem:[#allocation33_spill] sm:$0xff] }
 0x121   : > { %v2078_v29 = vrot.slane %v8653_v61, 1  ;;  %v8656_v22 = vunpack.c.l.bf16 %v8655_v39 }
 0x122   : > { %5992 = vmatmul.mubr.msk.f32.gmra.mrb[20].mxu1 %vm410_vm1, %v2059_v31  ;;  %v3948_v60 = vsel %vm1037_vm2, %v8654_v47, %v3947_v8 }
 0x123   : > { %6192 = vmatmul.mubr.msk.f32.gmra.mrb[20].mxu0 %vm410_vm1, %v8642_v13  ;;  %5994 = vmatprep.mubr.msk.f32.mxu1 %vm410_vm1, %v2062_v58  ;;  %v2079_v5 = vsel %vm327_vm0, %v2076_v17, %v2078_v29  ;;  %v2083_v31 = vrot.slane %v8656_v22, 1 }
 0x124   : > { %6194 = vmatprep.mubr.msk.f32.mxu0 %vm410_vm1, %v3931_v4 }
 0x126   : > { %5995 = vmatmul.mubr.msk.f32.gmra.mrb[22].mxu1 %vm410_vm1, %v2064_v42 }
 0x127   : > { %6195 = vmatmul.mubr.msk.f32.gmra.mrb[22].mxu0 %vm410_vm1, %v8646_v32  ;;  %5997 = vmatprep.mubr.msk.f32.mxu1 %vm410_vm1, %v2067_v50 }
 0x128   : > { %6197 = vmatprep.mubr.msk.f32.mxu0 %vm410_vm1, %v3936_v3 }
 0x12a   : > { %5998 = vmatmul.mubr.msk.f32.gmra.mrb[24].mxu1 %vm410_vm1, %v2069_v7 }
 0x12b   : > { %6198 = vmatmul.mubr.msk.f32.gmra.mrb[24].mxu0 %vm410_vm1, %v7695_v57  ;;  %6000 = vmatprep.mubr.msk.f32.mxu1 %vm410_vm1, %v2072_v14  ;;  %v3949_v57 = vrot.slane %v3857_v46, 2 }
 0x12c   : > { %6200 = vmatprep.mubr.msk.f32.mxu0 %vm410_vm1, %v3941_v21 }
 0x12d   : > { %v3951_v43 = vsel %vm1037_vm2, %v3949_v57, %v7729_v1 }
 0x12e   : > { %6001 = vmatmul.mubr.msk.f32.gmra.mrb[26].mxu1 %vm410_vm1, %v2074_v34 }
 0x12f   : > { %6201 = vmatmul.mubr.msk.f32.gmra.mrb[26].mxu0 %vm410_vm1, %v7716_v23  ;;  %6003 = vmatprep.mubr.msk.f32.mxu1 %vm410_vm1, %v2077_v41  ;;  %v2084_v23 = vsel %vm327_vm0, %v7926_v33, %v2083_v31 }
 0x130   : > { %6203 = vmatprep.mubr.msk.f32.mxu0 %vm410_vm1, %v3946_v37 }
 0x132   : > { %6004 = vmatmul.mubr.msk.f32.gmra.mrb[28].mxu1 %vm410_vm1, %v2079_v5 }
 0x133   : > { %6204 = vmatmul.mubr.msk.f32.gmra.mrb[28].mxu0 %vm410_vm1, %v3948_v60  ;;  %6006 = vmatprep.mubr.msk.f32.mxu1 %vm410_vm1, %v2082_v12 }
 0x134   : > { %6206 = vmatprep.mubr.msk.f32.mxu0 %vm410_vm1, %v3951_v43 }
 0x136   : > { %6007 = vmatmul.mubr.msk.f32.gmra.mrb[30].mxu1 %vm410_vm1, %v2084_v23 }
 0x137   : > { %6207 = vmatmul.mubr.msk.f32.gmra.mrb[30].mxu0 %vm410_vm1, %v7754_v51 }
 0x1ad   : > { %v5913_v49 = vpop.f32.mrb[0].mxu1 }
 0x1ae   : > { %v1670_v44 = vpop.f32.mrb[1].mxu1 }
 0x1b1   : > { %v5916_v1 = vpop.f32.mrb[2].mxu1 }
 0x1b2   : > { %v1680_v45 = vpop.f32.mrb[3].mxu1 }
 0x1b5   : > { %v5919_v0 = vpop.f32.mrb[4].mxu1 }
 0x1b6   : > { %v1690_v53 = vpop.f32.mrb[5].mxu1 }
 0x1b9   : > { %v5922_v2 = vpop.f32.mrb[6].mxu1 }
 0x1ba   : > { %v8168_v6 = vpop.f32.mrb[7].mxu1 }
 0x1bd   : > { %v8170_v16 = vpop.f32.mrb[8].mxu1 }
 0x1be   : > { %v8172_v58 = vpop.f32.mrb[9].mxu1 }
 0x1c1   : > { %v8174_v33 = vpop.f32.mrb[10].mxu1 }
 0x1c2   : > { %v8176_v38 = vpop.f32.mrb[11].mxu1 }
 0x1c5   : > { %v8178_v4 = vpop.f32.mrb[12].mxu1 }
 0x1c6   : > { %v8180_v51 = vpop.f32.mrb[13].mxu1 }
 0x1c9   : > { %v8182_v27 = vpop.f32.mrb[14].mxu1 }
 0x1ca   : > { %v8184_v25 = vpop.f32.mrb[15].mxu1 }
 0x1ce   : > { %v6163_v18 = vpop.f32.mrb[0].mxu0 }
 0x1cf   : > { %v6211_v13 = vadd.f32 %v6163_v18, %v5913_v49  ;;  %v4086_v11 = vpop.f32.mrb[1].mxu0 }
 0x1d0   : > { %v6212_v56 = vadd.f32 %v4086_v11, %v1670_v44 }
 0x1d1   : > { %v5232_v55 = vpack.c.bf16 %v6211_v13, %v6211_v13  ;;  %v4439_v42 = vsel %vm410_vm1, %v6211_v13, 0.0  ;;  %v4508_v40 = vmul.f32 %v6211_v13, %v6211_v13 }
 0x1d2   : > { %v5231_v63 = vpack.c.bf16 %v6212_v56, %v6212_v56  ;;  %v4438_v50 = vsel %vm410_vm1, %v6212_v56, 0.0  ;;  %v4507_v62 = vmul.f32 %v6212_v56, %v6212_v56  ;;  %v6166_v3 = vpop.f32.mrb[2].mxu0 }
 0x1d3   : > { %4407 = vst.msk [vmem:[%s8190_s16 + $0x4] sm:$0xf] %vm4405_vm3, %v5232_v55  ;;  %v4540_v9 = vsel %vm410_vm1, %v4508_v40, 0.0  ;;  %v4440_v30 = vadd.f32 %v4439_v42, %v4438_v50  ;;  %v6213_v59 = vadd.f32 %v6166_v3, %v5916_v1  ;;  %v4096_v32 = vpop.f32.mrb[3].mxu0 }
 0x1d4   : > { %4406 = vst.msk [vmem:[%s8190_s16] sm:$0xf] %vm4405_vm3, %v5231_v63  ;;  %v4539_v7 = vsel %vm410_vm1, %v4507_v62, 0.0  ;;  %v6214_v20 = vadd.f32 %v4096_v32, %v1680_v45 }
 0x1d5   : > { %v4541_v24 = vadd.f32 %v4540_v9, %v4539_v7  ;;  %v5234_v48 = vpack.c.bf16 %v6213_v59, %v6213_v59  ;;  %v4510_v28 = vmul.f32 %v6213_v59, %v6213_v59  ;;  %v4443_v36 = vsel %vm410_vm1, %v6213_v59, 0.0 }
 0x1d6   : > { %v5233_v14 = vpack.c.bf16 %v6214_v20, %v6214_v20  ;;  %v4441_v21 = vsel %vm410_vm1, %v6214_v20, 0.0  ;;  %v4509_v54 = vmul.f32 %v6214_v20, %v6214_v20  ;;  %v6169_v10 = vpop.f32.mrb[4].mxu0 }
 0x1d7   : > { %4409 = vst.msk [vmem:[%s8190_s16 + $0xc] sm:$0xf] %vm4405_vm3, %v5234_v48  ;;  %v4442_v17 = vadd.f32 %v4441_v21, %v4440_v30  ;;  %v6215_v15 = vadd.f32 %v6169_v10, %v5919_v0  ;;  %v4106_v26 = vpop.f32.mrb[5].mxu0  ;;  %v4544_v34 = vsel %vm410_vm1, %v4510_v28, 0.0 }
 0x1d8   : > { %4408 = vst.msk [vmem:[%s8190_s16 + $0x8] sm:$0xf] %vm4405_vm3, %v5233_v14  ;;  %v4542_v35 = vsel %vm410_vm1, %v4509_v54, 0.0  ;;  %v6216_v46 = vadd.f32 %v4106_v26, %v1690_v53 }
 0x1d9   : > { %v4543_v19 = vadd.f32 %v4542_v35, %v4541_v24  ;;  %v5236_v61 = vpack.c.bf16 %v6215_v15, %v6215_v15  ;;  %v4512_v29 = vmul.f32 %v6215_v15, %v6215_v15  ;;  %v4444_v41 = vadd.f32 %v4443_v36, %v4442_v17 }
 0x1da   : > { %v5235_v8 = vpack.c.bf16 %v6216_v46, %v6216_v46  ;;  %v4445_v47 = vsel %vm410_vm1, %v6216_v46, 0.0  ;;  %v4511_v37 = vmul.f32 %v6216_v46, %v6216_v46  ;;  %v6172_v52 = vpop.f32.mrb[6].mxu0  ;;  %v4447_v39 = vsel %vm410_vm1, %v6215_v15, 0.0 }
 0x1db   : > { %4411 = vst.msk [vmem:[%s8190_s16 + $0x14] sm:$0xf] %vm4405_vm3, %v5236_v61  ;;  %v4545_v57 = vadd.f32 %v4544_v34, %v4543_v19  ;;  %v6217_v5 = vadd.f32 %v6172_v52, %v5922_v2  ;;  %v4116_v60 = vpop.f32.mrb[7].mxu0  ;;  %v4446_v22 = vadd.f32 %v4445_v47, %v4444_v41  ;;  %v4548_v43 = vsel %vm410_vm1, %v4512_v29, 0.0 }
 0x1dc   : > { %4410 = vst.msk [vmem:[%s8190_s16 + $0x10] sm:$0xf] %vm4405_vm3, %v5235_v8  ;;  %v4546_v31 = vsel %vm410_vm1, %v4511_v37, 0.0  ;;  %v6218_v12 = vadd.f32 %v4116_v60, %v8168_v6 }
 0x1dd   : > { %v4547_v23 = vadd.f32 %v4546_v31, %v4545_v57  ;;  %v5238_v49 = vpack.c.bf16 %v6217_v5, %v6217_v5  ;;  %v4514_v44 = vmul.f32 %v6217_v5, %v6217_v5  ;;  %v4448_v45 = vadd.f32 %v4447_v39, %v4446_v22 }
 0x1de   : > { %v5237_v1 = vpack.c.bf16 %v6218_v12, %v6218_v12  ;;  %v4449_v0 = vsel %vm410_vm1, %v6218_v12, 0.0  ;;  %v4513_v53 = vmul.f32 %v6218_v12, %v6218_v12  ;;  %v6175_v2 = vpop.f32.mrb[8].mxu0  ;;  %v4451_v6 = vsel %vm410_vm1, %v6217_v5, 0.0 }
 0x1df   : > { %4413 = vst.msk [vmem:[%s8190_s16 + $0x1c] sm:$0xf] %vm4405_vm3, %v5238_v49  ;;  %v4549_v18 = vadd.f32 %v4548_v43, %v4547_v23  ;;  %v6219_v13 = vadd.f32 %v6175_v2, %v8170_v16  ;;  %v4126_v11 = vpop.f32.mrb[9].mxu0  ;;  %v4450_v56 = vadd.f32 %v4449_v0, %v4448_v45  ;;  %v4552_v40 = vsel %vm410_vm1, %v4514_v44, 0.0 }
 0x1e0   : > { %4412 = vst.msk [vmem:[%s8190_s16 + $0x18] sm:$0xf] %vm4405_vm3, %v5237_v1  ;;  %v4550_v55 = vsel %vm410_vm1, %v4513_v53, 0.0  ;;  %v6220_v42 = vadd.f32 %v4126_v11, %v8172_v58 }
 0x1e1   : > { %v4551_v63 = vadd.f32 %v4550_v55, %v4549_v18  ;;  %v5240_v50 = vpack.c.bf16 %v6219_v13, %v6219_v13  ;;  %v4516_v62 = vmul.f32 %v6219_v13, %v6219_v13  ;;  %v4452_v9 = vadd.f32 %v4451_v6, %v4450_v56 }
 0x1e2   : > { %v5239_v3 = vpack.c.bf16 %v6220_v42, %v6220_v42  ;;  %v4453_v16 = vsel %vm410_vm1, %v6220_v42, 0.0  ;;  %v4515_v30 = vmul.f32 %v6220_v42, %v6220_v42  ;;  %v6178_v59 = vpop.f32.mrb[10].mxu0  ;;  %v4455_v58 = vsel %vm410_vm1, %v6219_v13, 0.0 }
 0x1e3   : > { %4415 = vst.msk [vmem:[%s8190_s16 + $0x24] sm:$0xf] %vm4405_vm3, %v5240_v50  ;;  %v4553_v32 = vadd.f32 %v4552_v40, %v4551_v63  ;;  %v6221_v7 = vadd.f32 %v6178_v59, %v8174_v33  ;;  %v4136_v20 = vpop.f32.mrb[11].mxu0  ;;  %v4454_v24 = vadd.f32 %v4453_v16, %v4452_v9  ;;  %v4556_v14 = vsel %vm410_vm1, %v4516_v62, 0.0 }
 0x1e4   : > { %4414 = vst.msk [vmem:[%s8190_s16 + $0x20] sm:$0xf] %vm4405_vm3, %v5239_v3  ;;  %v4554_v48 = vsel %vm410_vm1, %v4515_v30, 0.0  ;;  %v6222_v28 = vadd.f32 %v4136_v20, %v8176_v38 }
 0x1e5   : > { %v4555_v21 = vadd.f32 %v4554_v48, %v4553_v32  ;;  %v5242_v54 = vpack.c.bf16 %v6221_v7, %v6221_v7  ;;  %v4518_v10 = vmul.f32 %v6221_v7, %v6221_v7  ;;  %v4456_v15 = vadd.f32 %v4455_v58, %v4454_v24 }
 0x1e6   : > { %v5241_v17 = vpack.c.bf16 %v6222_v28, %v6222_v28  ;;  %v4457_v33 = vsel %vm410_vm1, %v6222_v28, 0.0  ;;  %v4517_v26 = vmul.f32 %v6222_v28, %v6222_v28  ;;  %v6181_v36 = vpop.f32.mrb[12].mxu0  ;;  %v4459_v38 = vsel %vm410_vm1, %v6221_v7, 0.0 }
 0x1e7   : > { %4417 = vst.msk [vmem:[%s8190_s16 + $0x2c] sm:$0xf] %vm4405_vm3, %v5242_v54  ;;  %v4557_v35 = vadd.f32 %v4556_v14, %v4555_v21  ;;  %v6223_v46 = vadd.f32 %v6181_v36, %v8178_v4  ;;  %v4146_v34 = vpop.f32.mrb[13].mxu0  ;;  %v4458_v19 = vadd.f32 %v4457_v33, %v4456_v15  ;;  %v4560_v8 = vsel %vm410_vm1, %v4518_v10, 0.0 }
 0x1e8   : > { %4416 = vst.msk [vmem:[%s8190_s16 + $0x28] sm:$0xf] %vm4405_vm3, %v5241_v17  ;;  %v4558_v61 = vsel %vm410_vm1, %v4517_v26, 0.0  ;;  %v6224_v29 = vadd.f32 %v4146_v34, %v8180_v51 }
 0x1e9   : > { %v4559_v41 = vadd.f32 %v4558_v61, %v4557_v35  ;;  %v5244_v47 = vpack.c.bf16 %v6223_v46, %v6223_v46  ;;  %v4520_v37 = vmul.f32 %v6223_v46, %v6223_v46  ;;  %v4460_v57 = vadd.f32 %v4459_v38, %v4458_v19 }
 0x1ea   : > { %v5243_v52 = vpack.c.bf16 %v6224_v29, %v6224_v29  ;;  %v4461_v4 = vsel %vm410_vm1, %v6224_v29, 0.0  ;;  %v4519_v5 = vmul.f32 %v6224_v29, %v6224_v29  ;;  %v6184_v60 = vpop.f32.mrb[14].mxu0  ;;  %v4463_v51 = vsel %vm410_vm1, %v6223_v46, 0.0 }
 0x1eb   : > { %4419 = vst.msk [vmem:[%s8190_s16 + $0x34] sm:$0xf] %vm4405_vm3, %v5244_v47  ;;  %v4561_v39 = vadd.f32 %v4560_v8, %v4559_v41  ;;  %v6225_v22 = vadd.f32 %v6184_v60, %v8182_v27  ;;  %v4156_v31 = vpop.f32.mrb[15].mxu0  ;;  %v4462_v12 = vadd.f32 %v4461_v4, %v4460_v57  ;;  %v4564_v49 = vsel %vm410_vm1, %v4520_v37, 0.0 }
 0x1ec   : > { %4418 = vst.msk [vmem:[%s8190_s16 + $0x30] sm:$0xf] %vm4405_vm3, %v5243_v52  ;;  %v4562_v43 = vsel %vm410_vm1, %v4519_v5, 0.0  ;;  %v6226_v23 = vadd.f32 %v4156_v31, %v8184_v25 }
 0x1ed   : > { %v4563_v44 = vadd.f32 %v4562_v43, %v4561_v39  ;;  %v5246_v1 = vpack.c.bf16 %v6225_v22, %v6225_v22  ;;  %v4522_v45 = vmul.f32 %v6225_v22, %v6225_v22  ;;  %v4464_v53 = vadd.f32 %v4463_v51, %v4462_v12  ;;  %v5987_v18 = vpop.f32.mrb[16].mxu1 }
 0x1ee   : > { %v5245_v0 = vpack.c.bf16 %v6226_v23, %v6226_v23  ;;  %v4465_v27 = vsel %vm410_vm1, %v6226_v23, 0.0  ;;  %v4521_v2 = vmul.f32 %v6226_v23, %v6226_v23  ;;  %v6187_v13 = vpop.f32.mrb[16].mxu0  ;;  %v2297_v56 = vpop.f32.mrb[17].mxu1  ;;  %v4467_v25 = vsel %vm410_vm1, %v6225_v22, 0.0 }
 0x1ef   : > { %4421 = vst.msk [vmem:[%s8190_s16 + $0x3c] sm:$0xf] %vm4405_vm3, %v5246_v1  ;;  %v4565_v11 = vadd.f32 %v4564_v49, %v4563_v44  ;;  %v6227_v6 = vadd.f32 %v6187_v13, %v5987_v18  ;;  %v4166_v55 = vpop.f32.mrb[17].mxu0  ;;  %v4466_v42 = vadd.f32 %v4465_v27, %v4464_v53  ;;  %v4568_v50 = vsel %vm410_vm1, %v4522_v45, 0.0 }
 0x1f0   : > { %4420 = vst.msk [vmem:[%s8190_s16 + $0x38] sm:$0xf] %vm4405_vm3, %v5245_v0  ;;  %v4566_v40 = vsel %vm410_vm1, %v4521_v2, 0.0  ;;  %v6228_v63 = vadd.f32 %v4166_v55, %v2297_v56 }
 0x1f1   : > { %v4567_v62 = vadd.f32 %v4566_v40, %v4565_v11  ;;  %v5248_v3 = vpack.c.bf16 %v6227_v6, %v6227_v6  ;;  %v4524_v9 = vmul.f32 %v6227_v6, %v6227_v6  ;;  %v4468_v30 = vadd.f32 %v4467_v25, %v4466_v42  ;;  %v5990_v7 = vpop.f32.mrb[18].mxu1 }
 0x1f2   : > { %v5247_v16 = vpack.c.bf16 %v6228_v63, %v6228_v63  ;;  %v4469_v59 = vsel %vm410_vm1, %v6228_v63, 0.0  ;;  %v4523_v32 = vmul.f32 %v6228_v63, %v6228_v63  ;;  %v6190_v20 = vpop.f32.mrb[18].mxu0  ;;  %v2307_v48 = vpop.f32.mrb[19].mxu1  ;;  %v4471_v14 = vsel %vm410_vm1, %v6227_v6, 0.0 }
 0x1f3   : > { %4423 = vst.msk [vmem:[%s8190_s16 + $0x44] sm:$0xf] %vm4405_vm3, %v5248_v3  ;;  %v4569_v58 = vadd.f32 %v4568_v50, %v4567_v62  ;;  %v6229_v24 = vadd.f32 %v6190_v20, %v5990_v7  ;;  %v4176_v28 = vpop.f32.mrb[19].mxu0  ;;  %v4470_v21 = vadd.f32 %v4469_v59, %v4468_v30  ;;  %v4572_v17 = vsel %vm410_vm1, %v4524_v9, 0.0 }
 0x1f4   : > { %4422 = vst.msk [vmem:[%s8190_s16 + $0x40] sm:$0xf] %vm4405_vm3, %v5247_v16  ;;  %v4570_v54 = vsel %vm410_vm1, %v4523_v32, 0.0  ;;  %v6230_v10 = vadd.f32 %v4176_v28, %v2307_v48 }
 0x1f5   : > { %v4571_v15 = vadd.f32 %v4570_v54, %v4569_v58  ;;  %v5250_v33 = vpack.c.bf16 %v6229_v24, %v6229_v24  ;;  %v4526_v26 = vmul.f32 %v6229_v24, %v6229_v24  ;;  %v4472_v35 = vadd.f32 %v4471_v14, %v4470_v21  ;;  %v5993_v38 = vpop.f32.mrb[20].mxu1 }
 0x1f6   : > { %v5249_v36 = vpack.c.bf16 %v6230_v10, %v6230_v10  ;;  %v4473_v46 = vsel %vm410_vm1, %v6230_v10, 0.0  ;;  %v4525_v34 = vmul.f32 %v6230_v10, %v6230_v10  ;;  %v6193_v19 = vpop.f32.mrb[20].mxu0  ;;  %v2317_v8 = vpop.f32.mrb[21].mxu1  ;;  %v4475_v47 = vsel %vm410_vm1, %v6229_v24, 0.0 }
 0x1f7   : > { %4425 = vst.msk [vmem:[%s8190_s16 + $0x4c] sm:$0xf] %vm4405_vm3, %v5250_v33  ;;  %v4573_v61 = vadd.f32 %v4572_v17, %v4571_v15  ;;  %v6231_v29 = vadd.f32 %v6193_v19, %v5993_v38  ;;  %v4186_v41 = vpop.f32.mrb[21].mxu0  ;;  %v4474_v37 = vadd.f32 %v4473_v46, %v4472_v35  ;;  %v4576_v4 = vsel %vm410_vm1, %v4526_v26, 0.0 }
 0x1f8   : > { %4424 = vst.msk [vmem:[%s8190_s16 + $0x48] sm:$0xf] %vm4405_vm3, %v5249_v36  ;;  %v4574_v52 = vsel %vm410_vm1, %v4525_v34, 0.0  ;;  %v6232_v57 = vadd.f32 %v4186_v41, %v2317_v8 }
 0x1f9   : > { %v4575_v5 = vadd.f32 %v4574_v52, %v4573_v61  ;;  %v5252_v60 = vpack.c.bf16 %v6231_v29, %v6231_v29  ;;  %v4528_v39 = vmul.f32 %v6231_v29, %v6231_v29  ;;  %v4476_v31 = vadd.f32 %v4475_v47, %v4474_v37  ;;  %v5996_v43 = vpop.f32.mrb[22].mxu1 }
 0x1fa   : > { %v5251_v22 = vpack.c.bf16 %v6232_v57, %v6232_v57  ;;  %v4477_v51 = vsel %vm410_vm1, %v6232_v57, 0.0  ;;  %v4527_v12 = vmul.f32 %v6232_v57, %v6232_v57  ;;  %v6196_v23 = vpop.f32.mrb[22].mxu0  ;;  %v2327_v1 = vpop.f32.mrb[23].mxu1  ;;  %v4479_v0 = vsel %vm410_vm1, %v6231_v29, 0.0 }
 0x1fb   : > { %4427 = vst.msk [vmem:[%s8190_s16 + $0x54] sm:$0xf] %vm4405_vm3, %v5252_v60  ;;  %v4577_v49 = vadd.f32 %v4576_v4, %v4575_v5  ;;  %v6233_v44 = vadd.f32 %v6196_v23, %v5996_v43  ;;  %v4196_v45 = vpop.f32.mrb[23].mxu0  ;;  %v4478_v53 = vadd.f32 %v4477_v51, %v4476_v31  ;;  %v4580_v18 = vsel %vm410_vm1, %v4528_v39, 0.0 }
 0x1fc   : > { %4426 = vst.msk [vmem:[%s8190_s16 + $0x50] sm:$0xf] %vm4405_vm3, %v5251_v22  ;;  %v4578_v27 = vsel %vm410_vm1, %v4527_v12, 0.0  ;;  %v6234_v2 = vadd.f32 %v4196_v45, %v2327_v1 }
 0x1fd   : > { %v4579_v13 = vadd.f32 %v4578_v27, %v4577_v49  ;;  %v5254_v11 = vpack.c.bf16 %v6233_v44, %v6233_v44  ;;  %v4530_v6 = vmul.f32 %v6233_v44, %v6233_v44  ;;  %v4480_v55 = vadd.f32 %v4479_v0, %v4478_v53  ;;  %v5999_v40 = vpop.f32.mrb[24].mxu1 }
 0x1fe   : > { %v5253_v56 = vpack.c.bf16 %v6234_v2, %v6234_v2  ;;  %v4481_v25 = vsel %vm410_vm1, %v6234_v2, 0.0  ;;  %v4529_v42 = vmul.f32 %v6234_v2, %v6234_v2  ;;  %v6199_v63 = vpop.f32.mrb[24].mxu0  ;;  %v2337_v3 = vpop.f32.mrb[25].mxu1  ;;  %v4483_v16 = vsel %vm410_vm1, %v6233_v44, 0.0 }
 0x1ff   : > { %4429 = vst.msk [vmem:[%s8190_s16 + $0x5c] sm:$0xf] %vm4405_vm3, %v5254_v11  ;;  %v4581_v50 = vadd.f32 %v4580_v18, %v4579_v13  ;;  %v6235_v62 = vadd.f32 %v6199_v63, %v5999_v40  ;;  %v4206_v9 = vpop.f32.mrb[25].mxu0  ;;  %v4482_v30 = vadd.f32 %v4481_v25, %v4480_v55  ;;  %v4584_v7 = vsel %vm410_vm1, %v4530_v6, 0.0 }
 0x200   : > { %4428 = vst.msk [vmem:[%s8190_s16 + $0x58] sm:$0xf] %vm4405_vm3, %v5253_v56  ;;  %v4582_v59 = vsel %vm410_vm1, %v4529_v42, 0.0  ;;  %v6236_v32 = vadd.f32 %v4206_v9, %v2337_v3 }
 0x201   : > { %v4583_v20 = vadd.f32 %v4582_v59, %v4581_v50  ;;  %v5256_v58 = vpack.c.bf16 %v6235_v62, %v6235_v62  ;;  %v4532_v24 = vmul.f32 %v6235_v62, %v6235_v62  ;;  %v4484_v28 = vadd.f32 %v4483_v16, %v4482_v30  ;;  %v6002_v54 = vpop.f32.mrb[26].mxu1 }
 0x202   : > { %v5255_v48 = vpack.c.bf16 %v6236_v32, %v6236_v32  ;;  %v4485_v14 = vsel %vm410_vm1, %v6236_v32, 0.0  ;;  %v4531_v21 = vmul.f32 %v6236_v32, %v6236_v32  ;;  %v6202_v10 = vpop.f32.mrb[26].mxu0  ;;  %v2347_v33 = vpop.f32.mrb[27].mxu1  ;;  %v4487_v36 = vsel %vm410_vm1, %v6235_v62, 0.0 }
 0x203   : > { %4431 = vst.msk [vmem:[%s8190_s16 + $0x64] sm:$0xf] %vm4405_vm3, %v5256_v58  ;;  %v4585_v17 = vadd.f32 %v4584_v7, %v4583_v20  ;;  %v6237_v15 = vadd.f32 %v6202_v10, %v6002_v54  ;;  %v4216_v26 = vpop.f32.mrb[27].mxu0  ;;  %v4486_v35 = vadd.f32 %v4485_v14, %v4484_v28  ;;  %v4588_v38 = vsel %vm410_vm1, %v4532_v24, 0.0 }
 0x204   : > { %4430 = vst.msk [vmem:[%s8190_s16 + $0x60] sm:$0xf] %vm4405_vm3, %v5255_v48  ;;  %v4586_v46 = vsel %vm410_vm1, %v4531_v21, 0.0  ;;  %v6238_v34 = vadd.f32 %v4216_v26, %v2347_v33 }
 0x205   : > { %v4587_v19 = vadd.f32 %v4586_v46, %v4585_v17  ;;  %v5258_v61 = vpack.c.bf16 %v6237_v15, %v6237_v15  ;;  %v4534_v29 = vmul.f32 %v6237_v15, %v6237_v15  ;;  %v4488_v41 = vadd.f32 %v4487_v36, %v4486_v35  ;;  %v6005_v52 = vpop.f32.mrb[28].mxu1 }
 0x206   : > { %v5257_v8 = vpack.c.bf16 %v6238_v34, %v6238_v34  ;;  %v4489_v47 = vsel %vm410_vm1, %v6238_v34, 0.0  ;;  %v4533_v37 = vmul.f32 %v6238_v34, %v6238_v34  ;;  %v6205_v57 = vpop.f32.mrb[28].mxu0  ;;  %v2357_v60 = vpop.f32.mrb[29].mxu1  ;;  %v4491_v22 = vsel %vm410_vm1, %v6237_v15, 0.0 }
 0x207   : > { %4433 = vst.msk [vmem:[%s8190_s16 + $0x6c] sm:$0xf] %vm4405_vm3, %v5258_v61  ;;  %v4589_v4 = vadd.f32 %v4588_v38, %v4587_v19  ;;  %v6239_v5 = vadd.f32 %v6205_v57, %v6005_v52  ;;  %v4226_v39 = vpop.f32.mrb[29].mxu0  ;;  %v4490_v31 = vadd.f32 %v4489_v47, %v4488_v41  ;;  %v4592_v43 = vsel %vm410_vm1, %v4534_v29, 0.0 }
 0x208   : > { %4432 = vst.msk [vmem:[%s8190_s16 + $0x68] sm:$0xf] %vm4405_vm3, %v5257_v8  ;;  %v4590_v51 = vsel %vm410_vm1, %v4533_v37, 0.0  ;;  %v6240_v12 = vadd.f32 %v4226_v39, %v2357_v60 }
 0x209   : > { %v4591_v23 = vadd.f32 %v4590_v51, %v4589_v4  ;;  %v5260_v49 = vpack.c.bf16 %v6239_v5, %v6239_v5  ;;  %v4536_v44 = vmul.f32 %v6239_v5, %v6239_v5  ;;  %v4492_v45 = vadd.f32 %v4491_v22, %v4490_v31  ;;  %v6008_v27 = vpop.f32.mrb[30].mxu1 }
 0x20a   : > { %v5259_v1 = vpack.c.bf16 %v6240_v12, %v6240_v12  ;;  %v4493_v0 = vsel %vm410_vm1, %v6240_v12, 0.0  ;;  %v4535_v53 = vmul.f32 %v6240_v12, %v6240_v12  ;;  %v6208_v2 = vpop.f32.mrb[30].mxu0  ;;  %v2367_v11 = vpop.f32.mrb[31].mxu1  ;;  %v4495_v56 = vsel %vm410_vm1, %v6239_v5, 0.0 }
 0x20b   : > { %4435 = vst.msk [vmem:[%s8190_s16 + $0x74] sm:$0xf] %vm4405_vm3, %v5260_v49  ;;  %v4593_v18 = vadd.f32 %v4592_v43, %v4591_v23  ;;  %v6241_v13 = vadd.f32 %v6208_v2, %v6008_v27  ;;  %v4236_v6 = vpop.f32.mrb[31].mxu0  ;;  %v4494_v55 = vadd.f32 %v4493_v0, %v4492_v45  ;;  %v4596_v40 = vsel %vm410_vm1, %v4536_v44, 0.0 }
 0x20c   : > { %4434 = vst.msk [vmem:[%s8190_s16 + $0x70] sm:$0xf] %vm4405_vm3, %v5259_v1  ;;  %v4594_v25 = vsel %vm410_vm1, %v4535_v53, 0.0  ;;  %v6242_v42 = vadd.f32 %v4236_v6, %v2367_v11 }
 0x20d   : > { %v4595_v63 = vadd.f32 %v4594_v25, %v4593_v18  ;;  %v5262_v50 = vpack.c.bf16 %v6241_v13, %v6241_v13  ;;  %v4538_v62 = vmul.f32 %v6241_v13, %v6241_v13  ;;  %v4496_v9 = vadd.f32 %v4495_v56, %v4494_v55 }
 0x20e   : > { %v5261_v3 = vpack.c.bf16 %v6242_v42, %v6242_v42  ;;  %v4497_v16 = vsel %vm410_vm1, %v6242_v42, 0.0  ;;  %v4537_v30 = vmul.f32 %v6242_v42, %v6242_v42  ;;  %v4499_v20 = vsel %vm410_vm1, %v6241_v13, 0.0 }
 0x20f   : > { %4437 = vst.msk [vmem:[%s8190_s16 + $0x7c] sm:$0xf] %vm4405_vm3, %v5262_v50  ;;  %v4597_v59 = vadd.f32 %v4596_v40, %v4595_v63  ;;  %v4498_v32 = vadd.f32 %v4497_v16, %v4496_v9  ;;  %v4600_v24 = vsel %vm410_vm1, %v4538_v62, 0.0 }
 0x210   : > { %4436 = vst.msk [vmem:[%s8190_s16 + $0x78] sm:$0xf] %vm4405_vm3, %v5261_v3  ;;  %v4598_v7 = vsel %vm410_vm1, %v4537_v30, 0.0 }
 0x211   : > { %v4599_v58 = vadd.f32 %v4598_v7, %v4597_v59  ;;  %v4500_v48 = vadd.f32 %v4499_v20, %v4498_v32 }
 0x213   : > { %v4601_v28 = vadd.f32 %v4600_v24, %v4599_v58  ;;  %v4501_v14 = vrot.slane %v4500_v48, 4 }
 0x215   : > { %v4602_v21 = vrot.slane %v4601_v28, 4  ;;  %v4502_v54 = vadd.f32 %v4501_v14, %v4500_v48 }
 0x217   : > { %v4603_v10 = vadd.f32 %v4602_v21, %v4601_v28  ;;  %v4503_v17 = vrot.slane %v4502_v54, 2 }
 0x219   : > { %v4604_v15 = vrot.slane %v4603_v10, 2  ;;  %v4504_v33 = vadd.f32 %v4503_v17, %v4502_v54 }
 0x21b   : > { %v4605_v26 = vadd.f32 %v4604_v15, %v4603_v10  ;;  %v4505_v36 = vrot.slane %v4504_v33, 1 }
 0x21d   : > { %v4606_v35 = vrot.slane %v4605_v26, 1  ;;  %v4506_v46 = vadd.f32 %v4505_v36, %v4504_v33 }
 0x21f   : > { %v4607_v34 = vadd.f32 %v4606_v35, %v4605_v26 }
 0x221   : > { %v4609_v38 = vsel %vm4608_vm4, %v4506_v46, %v4607_v34 }
 0x222   : > { %v4611_v19 = vsel %vm4610_vm5, %v4609_v38, 0.0 }
 0x223   : > { %4612 = vst.msk [vmem:[%s181_s20] sm:$0xff] %vm410_vm1, %v4611_v19 }
 0x224 PF: > { %s14_s12 = sadd.s32 1, %s6487_s12  }
 0x225   : > { %p11_p4 = scmp.ge.s32.totalorder %s14_s12, 4  }
 0x227   :  { %13 = sbr.rel (!%p11_p4) target bundleno = 1 (0x1), region = 80 }

// kernel: unet_down_forward.11
= control target key start
LH: loop header
LB: loop body
LE: loop exit
PB: predicated region body
PF: predicated region fallthrough
CT: control target
= control target key end

     0   :  { %s407_s12 = smov 0   ;;  %s445_s0 = inlined_call_operand.vmem [shape: bf16[2,64,8], index: 0, kind: input, shape index: {}, may-alias: {0,3}]   ;;  %s446_s1 = inlined_call_operand.vmem [shape: f32[1,8], index: 1, kind: input, shape index: {}]   ;;  %s447_s2 = inlined_call_operand.vmem [shape: f32[1,8], index: 2, kind: input, shape index: {}]   ;;  %s448_s3 = inlined_call_operand.vmem [shape: bf16[2,64,8], index: 3, kind: output, shape index: {}, may-alias: {0,3}]  }
   0x1 LB: > { %s321_s13 = sadd.s32 4294967295, %s385_s12   ;;  %p325_p0 = scmp.ge.s32.totalorder %s385_s12, 1  ;;  %s385_s12 = sphi %s407_s12, %s13_s12  }
   0x2   : > { %p137_p1 = scmp.lt.s32.totalorder %s385_s12, 3 }
   0x4   : > { %p138_p2 = pnand %p325_p0, %p137_p1 }
   0x5   : > { %p161_p3 = scmp.lt.s32.totalorder (!%p138_p2), %s321_s13, 1  ;;  %v330_v0 = vld [vmem:[%s446_s1] ss:$0 sm:$0xff] (!%p138_p2)  ;;  %vm257_vm0 = vcmask (!%p138_p2), 60416  }
   0x6   : > { %141 = sbr.rel (%p138_p2) target bundleno = 31 (0x1f), region = 32  ;;  %v331_v9 = vld [vmem:[%s447_s2] ss:$0 sm:$0xff] (!%p138_p2) }
   0xd   : > { %s450_s13 = smov (!%p161_p3, %s321_s13), 1 }
   0xe   : > { %s342_s14 = sshll.u32 %s450_s13, 5 }
   0xf   : > { %s165_s17 = scalar_lea.vmem %s445_s0, %s342_s14  ;;  %s170_s24 = scalar_lea.vmem %s448_s3, %s342_s14 }
  0x10   : > { %v353_v1 = vld [vmem:[%s165_s17] sm:$0xff]   ;;  %v368_v2 = vld [vmem:[%s165_s17 + $0x8] sm:$0xff]   ;;  %v369_v3 = vld [vmem:[%s165_s17 + $0x10] sm:$0xff]  }
  0x11   : > { %v354_v4 = vunpack.c.l.bf16 %v353_v1  ;;  %v370_v5 = vld [vmem:[%s165_s17 + $0x18] sm:$0xff]   ;;  %v355_v6 = vunpack.c.h.bf16 %v353_v1  ;;  %v358_v7 = vunpack.c.l.bf16 %v368_v2  ;;  %v359_v8 = vunpack.c.h.bf16 %v368_v2 }
  0x12   : > { %v362_v10 = vunpack.c.l.bf16 %v369_v3  ;;  %v363_v11 = vunpack.c.h.bf16 %v369_v3  ;;  %v366_v12 = vunpack.c.l.bf16 %v370_v5  ;;  %v367_v13 = vunpack.c.h.bf16 %v370_v5 }
  0x13   : > { %v194_v14 = vmul.f32 %v354_v4, %v330_v0  ;;  %v195_v15 = vmul.f32 %v355_v6, %v330_v0  ;;  %v196_v16 = vmul.f32 %v358_v7, %v330_v0  ;;  %v197_v17 = vmul.f32 %v359_v8, %v330_v0 }
  0x14   : > { %v198_v18 = vmul.f32 %v362_v10, %v330_v0  ;;  %v199_v19 = vmul.f32 %v363_v11, %v330_v0  ;;  %v200_v20 = vmul.f32 %v366_v12, %v330_v0  ;;  %v201_v21 = vmul.f32 %v367_v13, %v330_v0 }
  0x15   : > { %v209_v22 = vadd.f32 %v331_v9, %v194_v14  ;;  %v210_v23 = vadd.f32 %v331_v9, %v195_v15  ;;  %v211_v24 = vadd.f32 %v331_v9, %v196_v16  ;;  %v212_v25 = vadd.f32 %v331_v9, %v197_v17 }
  0x16   : > { %v213_v26 = vadd.f32 %v331_v9, %v198_v18  ;;  %v214_v27 = vadd.f32 %v331_v9, %v199_v19  ;;  %v215_v28 = vadd.f32 %v331_v9, %v200_v20  ;;  %v216_v29 = vadd.f32 %v331_v9, %v201_v21 }
  0x17   : > { %v217_v30 = vmax.f32 %v209_v22, 0.0  ;;  %v218_v31 = vmax.f32 %v210_v23, 0.0  ;;  %v219_v32 = vmax.f32 %v211_v24, 0.0  ;;  %v220_v33 = vmax.f32 %v212_v25, 0.0 }
  0x18   : > { %v221_v34 = vmax.f32 %v213_v26, 0.0  ;;  %v222_v35 = vmax.f32 %v214_v27, 0.0  ;;  %v223_v36 = vmax.f32 %v215_v28, 0.0  ;;  %v224_v37 = vmax.f32 %v216_v29, 0.0 }
  0x19   : > { %v344_v38 = vpack.c.bf16 %v217_v30, %v217_v30  ;;  %v345_v39 = vpack.c.bf16 %v218_v31, %v218_v31  ;;  %v346_v40 = vpack.c.bf16 %v219_v32, %v219_v32  ;;  %v347_v41 = vpack.c.bf16 %v220_v33, %v220_v33 }
  0x1a   : > { %v348_v42 = vpack.c.bf16 %v221_v34, %v221_v34  ;;  %v349_v43 = vpack.c.bf16 %v222_v35, %v222_v35  ;;  %v350_v44 = vpack.c.bf16 %v223_v36, %v223_v36  ;;  %v351_v45 = vpack.c.bf16 %v224_v37, %v224_v37 }
  0x1b   : > { %258 = vst.msk [vmem:[%s170_s24] sm:$0xf] %vm257_vm0, %v344_v38  ;;  %259 = vst.msk [vmem:[%s170_s24 + $0x4] sm:$0xf] %vm257_vm0, %v345_v39 }
  0x1c   : > { %260 = vst.msk [vmem:[%s170_s24 + $0x8] sm:$0xf] %vm257_vm0, %v346_v40  ;;  %261 = vst.msk [vmem:[%s170_s24 + $0xc] sm:$0xf] %vm257_vm0, %v347_v41 }
  0x1d   : > { %262 = vst.msk [vmem:[%s170_s24 + $0x10] sm:$0xf] %vm257_vm0, %v348_v42  ;;  %263 = vst.msk [vmem:[%s170_s24 + $0x14] sm:$0xf] %vm257_vm0, %v349_v43 }
  0x1e   : > { %264 = vst.msk [vmem:[%s170_s24 + $0x18] sm:$0xf] %vm257_vm0, %v350_v44  ;;  %265 = vst.msk [vmem:[%s170_s24 + $0x1c] sm:$0xf] %vm257_vm0, %v351_v45 }
  0x1f PF: > { %s13_s12 = sadd.s32 1, %s385_s12  }
  0x20   : > { %p10_p4 = scmp.ge.s32.totalorder %s13_s12, 4  }
  0x22   :  { %12 = sbr.rel (!%p10_p4) target bundleno = 1 (0x1), region = 62 }

// kernel: unet_down_forward.10
= control target key start
LH: loop header
LB: loop body
LE: loop exit
PB: predicated region body
PF: predicated region fallthrough
CT: control target
= control target key end

     0   :  { %s1372_s12 = smov 0   ;;  %s1622_s0 = inlined_call_operand.vmem [shape: bf16[2,9,9,32], index: 0, kind: input, shape index: {}]   ;;  %s1623_s1 = inlined_call_operand.vmem [shape: f32[4,32,8], index: 1, kind: input, shape index: {}]   ;;  %s1624_s2 = inlined_call_operand.vmem [shape: bf16[2,64,8], index: 2, kind: output, shape index: {0}]   ;;  %s1625_s3 = inlined_call_operand.vmem [shape: f32[2,8,8], index: 3, kind: output, shape index: {1}]  }
   0x1 LB: > { %s1055_s13 = sadd.s32 4294967295, %s1350_s12   ;;  %p1059_p0 = scmp.ge.s32.totalorder %s1350_s12, 1  ;;  %s1350_s12 = sphi %s1372_s12, %s14_s12  }
   0x2   : > { %p140_p1 = scmp.lt.s32.totalorder %s1350_s12, 3 }
   0x4   : > { %p141_p2 = pnand %p1059_p0, %p140_p1 }
   0x5   : > { %v1092_v0 = vld [vmem:[%s1623_s1 + $0x40] sm:$0xff] (!%p141_p2)  ;;  %v1093_v1 = vld [vmem:[%s1623_s1 + $0x48] sm:$0xff] (!%p141_p2)  ;;  %p168_p3 = scmp.lt.s32.totalorder (!%p141_p2), %s1055_s13, 1  ;;  %v1094_v5 = vld [vmem:[%s1623_s1 + $0x50] sm:$0xff] (!%p141_p2)  ;;  %vm264_vm0 = vcmask (!%p141_p2), 261120   ;;  %vm234_vm1 = vcmask (!%p141_p2), 1046528  }
   0x6   : > { %144 = sbr.rel (%p141_p2) target bundleno = 290 (0x122), region = 28  ;;  %v1064_v2 = vld [vmem:[%s1623_s1 + $0x20] sm:$0xff] (!%p141_p2)  ;;  %v1295_v3 = vpack.c.bf16 (!%p141_p2), %v1093_v1, %v1092_v0  ;;  %v1065_v4 = vld [vmem:[%s1623_s1 + $0x28] sm:$0xff] (!%p141_p2)  ;;  %v1095_v6 = vld [vmem:[%s1623_s1 + $0x58] sm:$0xff] (!%p141_p2)  ;;  %vm913_vm2 = vcmask (!%p141_p2), 64512   ;;  %vm904_vm3 = vcmask (!%p141_p2), 60416  }
   0x7   : > { %v1279_v7 = vpack.c.bf16 (!%p141_p2), %v1065_v4, %v1064_v2  ;;  %v1299_v8 = vpack.c.bf16 (!%p141_p2), %v1095_v6, %v1094_v5  ;;  %v1066_v9 = vld [vmem:[%s1623_s1 + $0x30] sm:$0xff] (!%p141_p2)  ;;  %v1067_v10 = vld [vmem:[%s1623_s1 + $0x38] sm:$0xff] (!%p141_p2)  ;;  %v198_v11 = vld [vmem:[%s1623_s1] sm:$0xff] (!%p141_p2)  ;;  %vm964_vm4 = vcmask (!%p141_p2), 1040384   ;;  %vm966_vm5 = vcmask (!%p141_p2), 1041408  }
   0x8   : > { %1296 = vmatprep.subr.bf16.mxu0 (!%p141_p2), %v1295_v3  ;;  %v1283_v12 = vpack.c.bf16 (!%p141_p2), %v1067_v10, %v1066_v9  ;;  %v199_v13 = vld [vmem:[%s1623_s1 + $0x8] sm:$0xff] (!%p141_p2)  ;;  %v1120_v14 = vld [vmem:[%s1623_s1 + $0x60] sm:$0xff] (!%p141_p2)  ;;  %v200_v16 = vld [vmem:[%s1623_s1 + $0x10] sm:$0xff] (!%p141_p2) }
   0x9   : > { %v1121_v15 = vld [vmem:[%s1623_s1 + $0x68] sm:$0xff] (!%p141_p2)  ;;  %1298 = vmatpush3.bf16.msra.mxu0 (!%p141_p2), %v1295_v3  ;;  %1280 = vmatprep.subr.bf16.mxu1 (!%p141_p2), %v1279_v7  ;;  %v201_v17 = vld [vmem:[%s1623_s1 + $0x18] sm:$0xff] (!%p141_p2)  ;;  %v1122_v18 = vld [vmem:[%s1623_s1 + $0x70] sm:$0xff] (!%p141_p2)  ;;  %v1287_v21 = vpack.c.bf16 (!%p141_p2), %v199_v13, %v198_v11 }
   0xa   : > { %1282 = vmatpush3.bf16.msra.mxu1 (!%p141_p2), %v1279_v7  ;;  %1300 = vmatprep.subr.bf16.mxu0 (!%p141_p2), %v1299_v8  ;;  %v1303_v19 = vpack.c.bf16 (!%p141_p2), %v1121_v15, %v1120_v14  ;;  %v1123_v20 = vld [vmem:[%s1623_s1 + $0x78] sm:$0xff] (!%p141_p2)  ;;  %v1441_v25 = vpack.c.bf16 (!%p141_p2), %v201_v17, %v200_v16 }
   0xb   : > { %1284 = vmatprep.subr.bf16.mxu1 (!%p141_p2), %v1283_v12  ;;  %v1443_v26 = vpack.c.bf16 (!%p141_p2), %v1123_v20, %v1122_v18 }
   0xd   : > { %s1627_s13 = smov (!%p168_p3, %s1055_s13), 1  ;;  %1302 = vmatpush3.bf16.msra.mxu0 %v1299_v8 }
   0xe   : > { %s1335_s11 = smul.u32 72, %s1627_s13  ;;  %1286 = vmatpush3.bf16.msra.mxu1 %v1283_v12  ;;  %1304 = vmatprep.subr.bf16.mxu0 %v1303_v19  ;;  %s1142_s25 = sshll.u32 %s1627_s13, 5 }
   0xf   : > { %1288 = vmatprep.subr.bf16.mxu1 %v1287_v21  ;;  %s1580_s28 = scalar_lea.vmem %s1624_s2, %s1142_s25  ;;  %s1063_s29 = sshll.u32 %s1627_s13, 3 }
  0x10   : > { %s1434_s24 = scalar_lea.vmem %s1622_s0, %s1335_s11  ;;  %s181_s5 = scalar_lea.vmem %s1625_s3, %s1063_s29 }
  0x11   : > { %v1084_v22 = vld [vmem:[%s1434_s24 + $0x8] ss:$8 sps:$4 sm:$0xff]   ;;  %v202_v24 = vld [vmem:[%s1434_s24 + $0x4] sm:$0x1]  ;;  %v203_v31 = vld [vmem:[%s1434_s24 + $0xc] sm:$0x1] }
  0x12   : > { %v1438_v23 = vld [vmem:[%s1434_s24] ss:$8 sps:$4 sm:$0xff]   ;;  %v516_v27 = vunpack.c.l.bf16 %v1084_v22  ;;  %v517_v28 = vunpack.c.h.bf16 %v1084_v22  ;;  %v210_v30 = vunpack.c.l.bf16 %v202_v24  ;;  %v1449_v33 = vld [vmem:[%s1434_s24 + $0x10] ss:$8 sps:$4 sm:$0xff]   ;;  %v211_v35 = vunpack.c.l.bf16 %v203_v31  ;;  %v204_v38 = vld [vmem:[%s1434_s24 + $0x14] sm:$0x1] }
  0x13   : > { %v190_v29 = vunpack.c.l.bf16 %v1438_v23  ;;  %v1086_v32 = vld [vmem:[%s1434_s24 + $0x18] ss:$8 sps:$4 sm:$0xff]   ;;  %v191_v34 = vunpack.c.h.bf16 %v1438_v23  ;;  %v205_v39 = vld [vmem:[%s1434_s24 + $0x1c] sm:$0x1]  ;;  %v1455_v40 = vld [vmem:[%s1434_s24 + $0x28] ss:$8 sps:$4 sm:$0xff]   ;;  %v192_v43 = vunpack.c.l.bf16 %v1449_v33  ;;  %v212_v44 = vunpack.c.l.bf16 %v204_v38 }
  0x14   : > { %v518_v36 = vunpack.c.l.bf16 %v1086_v32  ;;  %v519_v37 = vunpack.c.h.bf16 %v1086_v32  ;;  %1247 = vmatprep.mubr.msk.f32.mxu0 %vm264_vm0, %v516_v27  ;;  %v236_v42 = vrot.slane %v210_v30, 1  ;;  %v239_v46 = vrot.slane %v211_v35, 1  ;;  %v1466_v49 = vld [vmem:[%s1434_s24 + $0x20] ss:$8 sps:$4 sm:$0xff]   ;;  %v206_v50 = vld [vmem:[%s1434_s24 + $0x24] sm:$0x1] }
  0x15   : > { %v235_v41 = vrot.slane %v190_v29, 1  ;;  %1248 = vmatmul.mubr.msk.f32.vlgmr.msra.gmra.mrb[0].mxu0 %vm264_vm0, %v517_v28  ;;  %v238_v45 = vrot.slane %v191_v34, 1  ;;  %v193_v47 = vunpack.c.h.bf16 %v1449_v33  ;;  %v213_v48 = vunpack.c.l.bf16 %v205_v39  ;;  %v207_v55 = vld [vmem:[%s1434_s24 + $0x2c] sm:$0x1]  ;;  %v1476_v56 = vld [vmem:[%s1434_s24 + $0x38] ss:$8 sps:$4 sm:$0xff]  }
  0x16   : > { %1250 = vmatprep.mubr.msk.f32.mxu0 %vm264_vm0, %v518_v36  ;;  %1306 = vmatpush3.bf16.msra.mxu0 %v1303_v19  ;;  %v241_v52 = vrot.slane %v192_v43, 1  ;;  %v242_v53 = vrot.slane %v212_v44, 1  ;;  %v520_v54 = vunpack.c.l.bf16 %v1455_v40  ;;  %v521_v60 = vunpack.c.h.bf16 %v1455_v40  ;;  %v1485_v61 = vld [vmem:[%s1434_s24 + $0x30] ss:$8 sps:$4 sm:$0xff]   ;;  %v208_v2 = vld [vmem:[%s1434_s24 + $0x34] sm:$0x1] }
  0x17   : > { %v237_v51 = vsel %vm234_vm1, %v235_v41, %v236_v42  ;;  %v240_v57 = vsel %vm234_vm1, %v238_v45, %v239_v46  ;;  %v244_v58 = vrot.slane %v193_v47, 1  ;;  %v245_v59 = vrot.slane %v213_v48, 1  ;;  %1308 = vmatprep.subr.bf16.mxu0 %v1443_v26  ;;  %v209_v3 = vld [vmem:[%s1434_s24 + $0x3c] sm:$0x1]  ;;  %v1104_v8 = vld [vmem:[%s1434_s24 + $0x8] ss:$8 sps:$4 sm:$0xff]  }
  0x18   : > { %1207 = vmatprep.mubr.msk.f32.mxu1 %vm264_vm0, %v237_v51  ;;  %v243_v62 = vsel %vm234_vm1, %v241_v52, %v242_v53  ;;  %v194_v63 = vunpack.c.l.bf16 %v1466_v49  ;;  %v214_v0 = vunpack.c.l.bf16 %v206_v50  ;;  %v195_v1 = vunpack.c.h.bf16 %v1466_v49  ;;  %v1105_v9 = vld [vmem:[%s1434_s24 + $0xc] sm:$0x1]  ;;  %v1107_v18 = vld [vmem:[%s1434_s24 + $0x14] sm:$0x1]  ;;  %v1108_v24 = vld [vmem:[%s1434_s24 + $0x18] ss:$8 sps:$4 sm:$0xff]  }
  0x19   : > { %1208 = vmatmul.mubr.msk.f32.vlgmr.msra.gmra.mrb[0].mxu1 %vm264_vm0, %v240_v57  ;;  %1251 = vmatmul.mubr.msk.f32.gmra.mrb[2].mxu0 %vm264_vm0, %v519_v37  ;;  %v246_v4 = vsel %vm234_vm1, %v244_v58, %v245_v59  ;;  %v215_v5 = vunpack.c.l.bf16 %v207_v55  ;;  %v522_v6 = vunpack.c.l.bf16 %v1476_v56  ;;  %v523_v7 = vunpack.c.h.bf16 %v1476_v56  ;;  %v1109_v27 = vld [vmem:[%s1434_s24 + $0x1c] sm:$0x1]  ;;  %v1111_v38 = vld [vmem:[%s1434_s24 + $0x24] sm:$0x1]  ;;  %v1112_v39 = vld [vmem:[%s1434_s24 + $0x28] ss:$8 sps:$4 sm:$0xff]  }
  0x1a   : > { %1290 = vmatpush3.bf16.msra.mxu1 %v1287_v21  ;;  %1210 = vmatprep.mubr.msk.f32.mxu1 %vm264_vm0, %v243_v62  ;;  %v247_v10 = vrot.slane %v194_v63, 1  ;;  %v248_v11 = vrot.slane %v214_v0, 1  ;;  %v250_v12 = vrot.slane %v195_v1, 1  ;;  %v196_v13 = vunpack.c.l.bf16 %v1485_v61  ;;  %v1113_v45 = vld [vmem:[%s1434_s24 + $0x2c] sm:$0x1] }
  0x1b   : > { %1253 = vmatprep.mubr.msk.f32.mxu0 %vm264_vm0, %v520_v54  ;;  %1292 = vmatprep.subr.bf16.mxu1 %v1441_v25  ;;  %v251_v14 = vrot.slane %v215_v5, 1  ;;  %v216_v15 = vunpack.c.l.bf16 %v208_v2  ;;  %v197_v16 = vunpack.c.h.bf16 %v1485_v61  ;;  %v217_v17 = vunpack.c.l.bf16 %v209_v3  ;;  %v1115_v51 = vld [vmem:[%s1434_s24 + $0x34] sm:$0x1]  ;;  %v1116_v56 = vld [vmem:[%s1434_s24 + $0x38] ss:$8 sps:$4 sm:$0xff]  }
  0x1c   : > { %1310 = vmatpush3.bf16.msra.mxu0 %v1443_v26  ;;  %v249_v19 = vsel %vm234_vm1, %v247_v10, %v248_v11  ;;  %v253_v20 = vrot.slane %v196_v13, 1  ;;  %v682_v21 = vunpack.c.l.bf16 %v1104_v8  ;;  %v683_v22 = vunpack.c.l.bf16 %v1105_v9  ;;  %v1117_v57 = vld [vmem:[%s1434_s24 + $0x3c] sm:$0x1]  ;;  %v1119_v5 = vld [vmem:[%s1434_s24 + $0x44] sm:$0x1] }
  0x1d   : > { %1211 = vmatmul.mubr.msk.f32.gmra.mrb[2].mxu1 %vm264_vm0, %v246_v4  ;;  %1254 = vmatmul.mubr.msk.f32.gmra.mrb[4].mxu0 %vm264_vm0, %v521_v60  ;;  %v252_v26 = vsel %vm234_vm1, %v250_v12, %v251_v14  ;;  %v254_v28 = vrot.slane %v216_v15, 1  ;;  %v256_v30 = vrot.slane %v197_v16, 1  ;;  %v257_v31 = vrot.slane %v217_v17, 1 }
  0x1e   : > { %1213 = vmatprep.mubr.msk.f32.mxu1 %vm264_vm0, %v249_v19  ;;  %1294 = vmatpush3.bf16.msra.mxu1 %v1441_v25  ;;  %v714_v32 = vrot.slane %v682_v21, 1  ;;  %v715_v35 = vrot.slane %v683_v22, 1  ;;  %v684_v36 = vunpack.c.h.bf16 %v1104_v8  ;;  %v685_v37 = vunpack.c.l.bf16 %v1107_v18 }
  0x1f   : > { %1256 = vmatprep.mubr.msk.f32.mxu0 %vm264_vm0, %v522_v6  ;;  %v255_v40 = vsel %vm234_vm1, %v253_v20, %v254_v28  ;;  %v258_v41 = vsel %vm234_vm1, %v256_v30, %v257_v31  ;;  %v686_v42 = vunpack.c.l.bf16 %v1108_v24  ;;  %v687_v44 = vunpack.c.l.bf16 %v1109_v27 }
  0x20   : > { %v716_v25 = vsel %vm234_vm1, %v714_v32, %v715_v35  ;;  %v717_v46 = vrot.slane %v684_v36, 1  ;;  %v718_v48 = vrot.slane %v685_v37, 1  ;;  %v688_v50 = vunpack.c.h.bf16 %v1108_v24 }
  0x21   : > { %1214 = vmatmul.mubr.msk.f32.gmra.mrb[4].mxu1 %vm264_vm0, %v252_v26  ;;  %1257 = vmatmul.mubr.msk.f32.gmra.mrb[6].mxu0 %vm264_vm0, %v523_v7  ;;  %v720_v52 = vrot.slane %v686_v42, 1  ;;  %v721_v53 = vrot.slane %v687_v44, 1  ;;  %v689_v54 = vunpack.c.l.bf16 %v1111_v38  ;;  %v690_v55 = vunpack.c.l.bf16 %v1112_v39 }
  0x22   : > { %1216 = vmatprep.mubr.msk.f32.mxu1 %vm264_vm0, %v255_v40  ;;  %1267 = vmatprep.mubr.msk.f32.mxu0 %vm264_vm0, %v716_v25  ;;  %v719_v58 = vsel %vm234_vm1, %v717_v46, %v718_v48  ;;  %v723_v59 = vrot.slane %v688_v50, 1  ;;  %v691_v60 = vunpack.c.l.bf16 %v1113_v45  ;;  %v692_v62 = vunpack.c.h.bf16 %v1112_v39 }
  0x23   : > { %v722_v0 = vsel %vm234_vm1, %v720_v52, %v721_v53  ;;  %v724_v2 = vrot.slane %v689_v54, 1  ;;  %v726_v3 = vrot.slane %v690_v55, 1  ;;  %v693_v4 = vunpack.c.l.bf16 %v1115_v51 }
  0x24   : > { %v727_v6 = vrot.slane %v691_v60, 1  ;;  %v694_v7 = vunpack.c.l.bf16 %v1116_v56  ;;  %v695_v8 = vunpack.c.l.bf16 %v1117_v57  ;;  %v729_v9 = vrot.slane %v692_v62, 1 }
  0x25   : > { %1217 = vmatmul.mubr.msk.f32.gmra.mrb[6].mxu1 %vm264_vm0, %v258_v41  ;;  %1268 = vmatmul.mubr.msk.f32.vlgmr.msra.gmra.mrb[0].mxu0 %vm264_vm0, %v719_v58  ;;  %v725_v10 = vsel %vm234_vm1, %v723_v59, %v724_v2  ;;  %v730_v11 = vrot.slane %v693_v4, 1  ;;  %v696_v12 = vunpack.c.h.bf16 %v1116_v56  ;;  %v697_v14 = vunpack.c.l.bf16 %v1119_v5 }
  0x26   : > { %1227 = vmatprep.mubr.msk.f32.mxu1 %vm264_vm0, %v190_v29  ;;  %1270 = vmatprep.mubr.msk.f32.mxu0 %vm264_vm0, %v722_v0  ;;  %v728_v15 = vsel %vm234_vm1, %v726_v3, %v727_v6  ;;  %v732_v17 = vrot.slane %v694_v7, 1  ;;  %v733_v18 = vrot.slane %v695_v8, 1 }
  0x27   : > { %v731_v29 = vsel %vm234_vm1, %v729_v9, %v730_v11  ;;  %v735_v19 = vrot.slane %v696_v12, 1  ;;  %v736_v20 = vrot.slane %v697_v14, 1 }
  0x28   : > { %v734_v21 = vsel %vm234_vm1, %v732_v17, %v733_v18 }
  0x29   : > { %1228 = vmatmul.mubr.msk.f32.vlgmr.msra.gmra.mrb[0].mxu1 %vm264_vm0, %v191_v34  ;;  %1271 = vmatmul.mubr.msk.f32.gmra.mrb[2].mxu0 %vm264_vm0, %v725_v10  ;;  %v737_v23 = vsel %vm234_vm1, %v735_v19, %v736_v20 }
  0x2a   : > { %1230 = vmatprep.mubr.msk.f32.mxu1 %vm264_vm0, %v192_v43  ;;  %1273 = vmatprep.mubr.msk.f32.mxu0 %vm264_vm0, %v728_v15 }
  0x2d   : > { %1231 = vmatmul.mubr.msk.f32.gmra.mrb[2].mxu1 %vm264_vm0, %v193_v47  ;;  %1274 = vmatmul.mubr.msk.f32.gmra.mrb[4].mxu0 %vm264_vm0, %v731_v29 }
  0x2e   : > { %1233 = vmatprep.mubr.msk.f32.mxu1 %vm264_vm0, %v194_v63  ;;  %1276 = vmatprep.mubr.msk.f32.mxu0 %vm264_vm0, %v734_v21 }
  0x31   : > { %1234 = vmatmul.mubr.msk.f32.gmra.mrb[4].mxu1 %vm264_vm0, %v195_v1  ;;  %1277 = vmatmul.mubr.msk.f32.gmra.mrb[6].mxu0 %vm264_vm0, %v737_v23 }
  0x32   : > { %1236 = vmatprep.mubr.msk.f32.mxu1 %vm264_vm0, %v196_v13 }
  0x35   : > { %1237 = vmatmul.mubr.msk.f32.gmra.mrb[6].mxu1 %vm264_vm0, %v197_v16 }
  0xf8   : > { %v1269_v33 = vpop.f32.mrb[0].mxu0 }
  0xf9   : > { %v825_v34 = vpop.f32.mrb[1].mxu0 }
  0xfc   : > { %v1229_v43 = vpop.f32.mrb[0].mxu1  ;;  %v1272_v49 = vpop.f32.mrb[2].mxu0 }
  0xfd   : > { %v1311_v47 = vadd.f32 %v1269_v33, %v1229_v43  ;;  %v468_v63 = vpop.f32.mrb[1].mxu1  ;;  %v835_v61 = vpop.f32.mrb[3].mxu0 }
  0xfe   : > { %v1312_v1 = vadd.f32 %v825_v34, %v468_v63 }
  0xff   : > { %v1144_v13 = vpack.c.bf16 %v1311_v47, %v1311_v47  ;;  %v915_v16 = vsel %vm913_vm2, %v1311_v47, 0.0  ;;  %v936_v22 = vmul.f32 %v1311_v47, %v1311_v47 }
 0x100   : > { %v1143_v24 = vpack.c.bf16 %v1312_v1, %v1312_v1  ;;  %v914_v27 = vsel %vm913_vm2, %v1312_v1, 0.0  ;;  %v935_v26 = vmul.f32 %v1312_v1, %v1312_v1  ;;  %v1232_v28 = vpop.f32.mrb[2].mxu1  ;;  %v1275_v36 = vpop.f32.mrb[4].mxu0 }
 0x101   : > { %906 = vst.msk [vmem:[%s1580_s28 + $0x4] sm:$0xf] %vm904_vm3, %v1144_v13  ;;  %v944_v30 = vsel %vm913_vm2, %v936_v22, 0.0  ;;  %v916_v31 = vadd.f32 %v915_v16, %v914_v27  ;;  %v1313_v32 = vadd.f32 %v1272_v49, %v1232_v28  ;;  %v478_v35 = vpop.f32.mrb[3].mxu1  ;;  %v845_v39 = vpop.f32.mrb[5].mxu0 }
 0x102   : > { %905 = vst.msk [vmem:[%s1580_s28] sm:$0xf] %vm904_vm3, %v1143_v24  ;;  %v943_v37 = vsel %vm913_vm2, %v935_v26, 0.0  ;;  %v1314_v38 = vadd.f32 %v835_v61, %v478_v35 }
 0x103   : > { %v945_v40 = vadd.f32 %v944_v30, %v943_v37  ;;  %v1146_v41 = vpack.c.bf16 %v1313_v32, %v1313_v32  ;;  %v938_v42 = vmul.f32 %v1313_v32, %v1313_v32  ;;  %v919_v53 = vsel %vm913_vm2, %v1313_v32, 0.0 }
 0x104   : > { %v1145_v44 = vpack.c.bf16 %v1314_v38, %v1314_v38  ;;  %v917_v45 = vsel %vm913_vm2, %v1314_v38, 0.0  ;;  %v937_v25 = vmul.f32 %v1314_v38, %v1314_v38  ;;  %v1235_v46 = vpop.f32.mrb[4].mxu1  ;;  %v1278_v52 = vpop.f32.mrb[6].mxu0 }
 0x105   : > { %908 = vst.msk [vmem:[%s1580_s28 + $0xc] sm:$0xf] %vm904_vm3, %v1146_v41  ;;  %v918_v48 = vadd.f32 %v917_v45, %v916_v31  ;;  %v1315_v50 = vadd.f32 %v1275_v36, %v1235_v46  ;;  %v488_v51 = vpop.f32.mrb[5].mxu1  ;;  %v855_v56 = vpop.f32.mrb[7].mxu0  ;;  %v948_v57 = vsel %vm913_vm2, %v938_v42, 0.0 }
 0x106   : > { %907 = vst.msk [vmem:[%s1580_s28 + $0x8] sm:$0xf] %vm904_vm3, %v1145_v44  ;;  %v946_v54 = vsel %vm913_vm2, %v937_v25, 0.0  ;;  %v1316_v55 = vadd.f32 %v845_v39, %v488_v51 }
 0x107   : > { %v947_v58 = vadd.f32 %v946_v54, %v945_v40  ;;  %v1148_v59 = vpack.c.bf16 %v1315_v50, %v1315_v50  ;;  %v940_v60 = vmul.f32 %v1315_v50, %v1315_v50  ;;  %v920_v0 = vadd.f32 %v919_v53, %v918_v48 }
 0x108   : > { %v1147_v62 = vpack.c.bf16 %v1316_v55, %v1316_v55  ;;  %v921_v2 = vsel %vm913_vm2, %v1316_v55, 0.0  ;;  %v939_v3 = vmul.f32 %v1316_v55, %v1316_v55  ;;  %v1238_v4 = vpop.f32.mrb[6].mxu1  ;;  %v923_v8 = vsel %vm913_vm2, %v1315_v50, 0.0 }
 0x109   : > { %910 = vst.msk [vmem:[%s1580_s28 + $0x14] sm:$0xf] %vm904_vm3, %v1148_v59  ;;  %v949_v5 = vadd.f32 %v948_v57, %v947_v58  ;;  %v1317_v6 = vadd.f32 %v1278_v52, %v1238_v4  ;;  %v498_v7 = vpop.f32.mrb[7].mxu1  ;;  %v922_v9 = vadd.f32 %v921_v2, %v920_v0  ;;  %v952_v12 = vsel %vm913_vm2, %v940_v60, 0.0 }
 0x10a   : > { %909 = vst.msk [vmem:[%s1580_s28 + $0x10] sm:$0xf] %vm904_vm3, %v1147_v62  ;;  %v950_v10 = vsel %vm913_vm2, %v939_v3, 0.0  ;;  %v1318_v11 = vadd.f32 %v855_v56, %v498_v7 }
 0x10b   : > { %v951_v14 = vadd.f32 %v950_v10, %v949_v5  ;;  %v1150_v15 = vpack.c.bf16 %v1317_v6, %v1317_v6  ;;  %v942_v17 = vmul.f32 %v1317_v6, %v1317_v6  ;;  %v924_v29 = vadd.f32 %v923_v8, %v922_v9 }
 0x10c   : > { %v1149_v18 = vpack.c.bf16 %v1318_v11, %v1318_v11  ;;  %v925_v19 = vsel %vm913_vm2, %v1318_v11, 0.0  ;;  %v941_v20 = vmul.f32 %v1318_v11, %v1318_v11  ;;  %v927_v34 = vsel %vm913_vm2, %v1317_v6, 0.0 }
 0x10d   : > { %912 = vst.msk [vmem:[%s1580_s28 + $0x1c] sm:$0xf] %vm904_vm3, %v1150_v15  ;;  %v953_v21 = vadd.f32 %v952_v12, %v951_v14  ;;  %v926_v23 = vadd.f32 %v925_v19, %v924_v29  ;;  %v956_v47 = vsel %vm913_vm2, %v942_v17, 0.0 }
 0x10e   : > { %911 = vst.msk [vmem:[%s1580_s28 + $0x18] sm:$0xf] %vm904_vm3, %v1149_v18  ;;  %v954_v33 = vsel %vm913_vm2, %v941_v20, 0.0 }
 0x10f   : > { %v955_v43 = vadd.f32 %v954_v33, %v953_v21  ;;  %v928_v63 = vadd.f32 %v927_v34, %v926_v23 }
 0x111   : > { %v957_v49 = vadd.f32 %v956_v47, %v955_v43  ;;  %v929_v1 = vrot.slane %v928_v63, 4 }
 0x113   : > { %v958_v61 = vrot.slane %v957_v49, 4  ;;  %v930_v13 = vadd.f32 %v929_v1, %v928_v63 }
 0x115   : > { %v959_v16 = vadd.f32 %v958_v61, %v957_v49  ;;  %v931_v22 = vrot.slane %v930_v13, 2 }
 0x117   : > { %v960_v24 = vrot.slane %v959_v16, 2  ;;  %v932_v27 = vadd.f32 %v931_v22, %v930_v13 }
 0x119   : > { %v961_v26 = vadd.f32 %v960_v24, %v959_v16  ;;  %v933_v28 = vrot.slane %v932_v27, 1 }
 0x11b   : > { %v962_v30 = vrot.slane %v961_v26, 1  ;;  %v934_v31 = vadd.f32 %v933_v28, %v932_v27 }
 0x11d   : > { %v963_v32 = vadd.f32 %v962_v30, %v961_v26 }
 0x11f   : > { %v965_v35 = vsel %vm964_vm4, %v934_v31, %v963_v32 }
 0x120   : > { %v967_v36 = vsel %vm966_vm5, %v965_v35, 0.0 }
 0x121   : > { %968 = vst.msk [vmem:[%s181_s5] sm:$0xff] %vm913_vm2, %v967_v36 }
 0x122 PF: > { %s14_s12 = sadd.s32 1, %s1350_s12  }
 0x123   : > { %p11_p4 = scmp.ge.s32.totalorder %s14_s12, 4  }
 0x125   :  { %13 = sbr.rel (!%p11_p4) target bundleno = 1 (0x1), region = 74 }

</bundles_post_ra>
